<compile_context>
chip_gen: v5e
topology: v5e:2x2
jax: 0.10.0
libtpu: 0.0.40
codegen_flags: <defaults>
</compile_context>

<pallas_src>
import functools

import jax
import jax.numpy as jnp
from jax.experimental import pallas as pl
from jax.experimental.pallas import tpu as pltpu


# OGB get_atom_feature_dims() (ogb.utils.features): fixed atom-feature vocab sizes.
FULL_ATOM_FEATURE_DIMS = [119, 5, 12, 12, 10, 6, 6, 2, 2]

_LANE = 128  # TPU lane width (vreg minor dimension)


def _atom_encoder_kernel(x_ref, table_ref, out_ref, *, block_feats, sub_n):
    """Embedding-bag gather via (multi-hot @ table) on the MXU.

    x_ref     : (TN, F)        int32 -- raw per-feature indices (no pre-offset)
    table_ref : (V_pad, E_pad) f32   -- concatenated, lane-aligned embedding table
    out_ref   : (TN, E_pad)    f32
    block_feats : static tuple over 128-lane vocab blocks; each entry is a
                  tuple of (feature_index, offset_within_block) pairs.
    """
    tn = out_ref.shape[0]
    table = table_ref[...]  # constant block: resident in VMEM across grid steps

    # Unrolled loop over sub_n-row sub-tiles keeps the (sub_n, V_pad) one-hot
    # working set in registers while the grid block stays large (amortizing
    # grid-step overhead and using big DMAs).
    for r0 in range(0, tn, sub_n):
        idx = x_ref[r0:r0 + sub_n, :]                            # (sub_n, F) int32
        # Local lane iota (0..127), shared by every vocab block of this sub-tile.
        iota = jax.lax.broadcasted_iota(jnp.int32, (sub_n, _LANE), 1)

        block_cols = []
        for feats in block_feats:                                # static Python loop
            mask = None
            # Each feature's vocab range lies entirely inside this 128-lane
            # block, and ranges are disjoint, so boolean OR == exact sum of
            # one-hots.  `rel` (static int) folds the concat-table offset in.
            for (i, rel) in feats:
                eq = iota == (idx[:, i][:, None] + rel)
                mask = eq if mask is None else (mask | eq)
            if mask is None:
                block_cols.append(jnp.zeros((sub_n, _LANE), jnp.float32))
            else:
                block_cols.append(mask.astype(jnp.float32))

        multi_hot = jnp.concatenate(block_cols, axis=-1)         # (sub_n, V_pad)
        out_ref[r0:r0 + sub_n, :] = jnp.dot(
            multi_hot, table, preferred_element_type=jnp.float32)


def atom_encoder_forward(x, table, block_feats, emb_dim, *, tile_n=256, sub_n=128):
    """x: int [N, F]; table: f32 [V_pad, E_pad] -> f32 [N, emb_dim]."""
    n, f = x.shape
    v_pad, e_pad = table.shape
    x = x.astype(jnp.int32)

    # Tile sizing: sublane-aligned tiles, pad N up to a tile multiple.
    tile_n = max(8, min(tile_n, ((n + 7) // 8) * 8))
    n_pad = ((n + tile_n - 1) // tile_n) * tile_n
    if n_pad != n:
        # Padded rows look up table row 0 and are sliced off below.
        x = jnp.pad(x, ((0, n_pad - n), (0, 0)))
    sub_n = min(sub_n, tile_n)
    assert tile_n % sub_n == 0 and sub_n % 8 == 0

    kernel = functools.partial(_atom_encoder_kernel,
                               block_feats=block_feats, sub_n=sub_n)

    out = pl.pallas_call(
        kernel,
        out_shape=jax.ShapeDtypeStruct((n_pad, e_pad), jnp.float32),
        grid_spec=pl.GridSpec(
            grid=(n_pad // tile_n,),
            in_specs=[
                pl.BlockSpec((tile_n, f), lambda i: (i, 0)),     # node-index tile
                # Constant index_map: the full concat table is NOT re-DMA'd per
                # grid step -- it stays resident in VMEM.
                pl.BlockSpec((v_pad, e_pad), lambda i: (0, 0)),
            ],
            out_specs=pl.BlockSpec((tile_n, e_pad), lambda i: (i, 0)),
        ),
        compiler_params=pltpu.CompilerParams(
            dimension_semantics=("parallel",)),
    )(x, table)

    # Slice off node padding and the lane-padding on the embedding dimension.
    return out[:n, :emb_dim]


def build_params(emb_dim, key):
    """Xavier-uniform init per feature + max_norm=1 renormalization (PyTorch
    Embedding(max_norm=1) forward semantics), concatenated into one
    lane-group-aligned padded table [V_pad, E_pad]."""
    tables = []
    offsets = []
    off = 0
    for i, dim in enumerate(FULL_ATOM_FEATURE_DIMS):
        # Lane-group alignment: never let a feature's vocab range straddle a
        # 128-lane boundary, so the kernel compares each feature against only
        # one 128-wide column block.
        if off // _LANE != (off + dim - 1) // _LANE:
            off = ((off + _LANE - 1) // _LANE) * _LANE

        k = jax.random.fold_in(key, i)
        bound = (6.0 / (dim + emb_dim)) ** 0.5                   # xavier_uniform_
        w = jax.random.uniform(k, (dim, emb_dim), jnp.float32, -bound, bound)
        # max_norm=1 renorm (torch renormalizes accessed rows during forward;
        # renormalizing every row is forward-output-equivalent).
        norm = jnp.linalg.norm(w, axis=1, keepdims=True)
        scale = jnp.where(norm > 1.0, 1.0 / (norm + 1e-7), 1.0)
        w = w * scale

        tables.append(w)
        offsets.append(off)
        off += dim

    total = off                                                  # 178 with lane align
    v_pad = ((total + _LANE - 1) // _LANE) * _LANE               # -> 256 (one MXU K pass)
    e_pad = ((emb_dim + _LANE - 1) // _LANE) * _LANE             # lane-dense output

    table = jnp.zeros((v_pad, e_pad), jnp.float32)
    for w, o in zip(tables, offsets):
        table = table.at[o:o + w.shape[0], :emb_dim].set(w)

    # Static map: for each 128-lane vocab block, the (feature_index,
    # offset-within-block) pairs whose vocab range lives in that block.
    num_blocks = v_pad // _LANE
    block_feats = tuple(
        tuple((i, o - b * _LANE) for i, o in enumerate(offsets) if o // _LANE == b)
        for b in range(num_blocks))

    return table, block_feats, tables


def reference_forward(x, tables):
    """Pure-JAX reference matching the PyTorch loop."""
    out = 0
    for i, w in enumerate(tables):
        out = out + w[x[:, i]]
    return out


if __name__ == "__main__":
    key = jax.random.PRNGKey(0)
    emb_dim = 32
    n_nodes = 512          # multiple of tile_n; grid of 2 keeps both v7x TCs busy
    n_feats = len(FULL_ATOM_FEATURE_DIMS)

    table, block_feats, tables = build_params(emb_dim, key)

    # Deterministic synthetic atom-feature indices, each column < its vocab size.
    kx = jax.random.fold_in(key, 1000)
    cols = []
    for i, dim in enumerate(FULL_ATOM_FEATURE_DIMS):
        cols.append(jax.random.randint(jax.random.fold_in(kx, i),
                                       (n_nodes, 1), 0, dim, jnp.int32))
    x = jnp.concatenate(cols, axis=1)                            # [N, F] int32

    out = atom_encoder_forward(x, table, block_feats, emb_dim,
                               tile_n=256, sub_n=128)
    out = jax.block_until_ready(out)

    ref = reference_forward(x, tables)
    assert out.shape == (n_nodes, emb_dim)
    assert jnp.allclose(out, ref, atol=1e-5, rtol=1e-5), "mismatch vs reference"

    print("KERNEL_OK")
</pallas_src>

<mosaic_0001>
module attributes {stable_mosaic.version = 11 : i64} {
  func.func @_atom_encoder_kernel(%arg0: i32, %arg1: memref<256x9xi32, #tpu.memory_space<vmem>>, %arg2: memref<256x128xf32, #tpu.memory_space<vmem>>, %arg3: memref<256x128xf32, #tpu.memory_space<vmem>>) attributes {dimension_semantics = [#tpu.dimension_semantics<parallel>], iteration_bounds = array<i64: 2>, scalar_prefetch = 0 : i64, scratch_operands = 0 : i64, tpu.core_type = #tpu.core_type<tc>, window_params = [{transform_indices = @transform_0, window_bounds = array<i64: 256, 9>}, {pipeline_mode = #tpu.pipeline_mode<synchronous>, transform_indices = @transform_1, window_bounds = array<i64: 256, 128>}, {transform_indices = @transform_2, window_bounds = array<i64: 256, 128>}]} {
    %c0 = arith.constant 0 : index
    %c0_0 = arith.constant 0 : index
    %0 = vector.load %arg2[%c0, %c0_0] : memref<256x128xf32, #tpu.memory_space<vmem>>, vector<256x128xf32>
    %c0_1 = arith.constant 0 : index
    %c0_2 = arith.constant 0 : index
    %1 = vector.load %arg1[%c0_1, %c0_2] : memref<256x9xi32, #tpu.memory_space<vmem>>, vector<128x9xi32>
    %2 = tpu.iota {dimensions = array<i32: 1>} : vector<128x128xi32>
    %3 = vector.extract_strided_slice %1 {offsets = [0, 0], sizes = [128, 1], strides = [1, 1]} : vector<128x9xi32> to vector<128x1xi32>
    %4 = vector.shape_cast %3 : vector<128x1xi32> to vector<128xi32>
    %5 = vector.shape_cast %4 : vector<128xi32> to vector<128x1xi32>
    %c0_i32 = arith.constant 0 : i32
    %6 = vector.broadcast %c0_i32 : i32 to vector<128x1xi32>
    %7 = arith.addi %5, %6 : vector<128x1xi32>
    %8 = vector.broadcast %7 : vector<128x1xi32> to vector<128x128xi32>
    %9 = arith.cmpi eq, %2, %8 : vector<128x128xi32>
    %10 = vector.extract_strided_slice %1 {offsets = [0, 1], sizes = [128, 1], strides = [1, 1]} : vector<128x9xi32> to vector<128x1xi32>
    %11 = vector.shape_cast %10 : vector<128x1xi32> to vector<128xi32>
    %12 = vector.shape_cast %11 : vector<128xi32> to vector<128x1xi32>
    %c119_i32 = arith.constant 119 : i32
    %13 = vector.broadcast %c119_i32 : i32 to vector<128x1xi32>
    %14 = arith.addi %12, %13 : vector<128x1xi32>
    %15 = vector.broadcast %14 : vector<128x1xi32> to vector<128x128xi32>
    %16 = arith.cmpi eq, %2, %15 : vector<128x128xi32>
    %17 = arith.ori %9, %16 : vector<128x128xi1>
    %18 = arith.extui %17 : vector<128x128xi1> to vector<128x128xi32>
    %19 = arith.sitofp %18 : vector<128x128xi32> to vector<128x128xf32>
    %20 = vector.extract_strided_slice %1 {offsets = [0, 2], sizes = [128, 1], strides = [1, 1]} : vector<128x9xi32> to vector<128x1xi32>
    %21 = vector.shape_cast %20 : vector<128x1xi32> to vector<128xi32>
    %22 = vector.shape_cast %21 : vector<128xi32> to vector<128x1xi32>
    %c0_i32_3 = arith.constant 0 : i32
    %23 = vector.broadcast %c0_i32_3 : i32 to vector<128x1xi32>
    %24 = arith.addi %22, %23 : vector<128x1xi32>
    %25 = vector.broadcast %24 : vector<128x1xi32> to vector<128x128xi32>
    %26 = arith.cmpi eq, %2, %25 : vector<128x128xi32>
    %27 = vector.extract_strided_slice %1 {offsets = [0, 3], sizes = [128, 1], strides = [1, 1]} : vector<128x9xi32> to vector<128x1xi32>
    %28 = vector.shape_cast %27 : vector<128x1xi32> to vector<128xi32>
    %29 = vector.shape_cast %28 : vector<128xi32> to vector<128x1xi32>
    %c12_i32 = arith.constant 12 : i32
    %30 = vector.broadcast %c12_i32 : i32 to vector<128x1xi32>
    %31 = arith.addi %29, %30 : vector<128x1xi32>
    %32 = vector.broadcast %31 : vector<128x1xi32> to vector<128x128xi32>
    %33 = arith.cmpi eq, %2, %32 : vector<128x128xi32>
    %34 = arith.ori %26, %33 : vector<128x128xi1>
    %35 = vector.extract_strided_slice %1 {offsets = [0, 4], sizes = [128, 1], strides = [1, 1]} : vector<128x9xi32> to vector<128x1xi32>
    %36 = vector.shape_cast %35 : vector<128x1xi32> to vector<128xi32>
    %37 = vector.shape_cast %36 : vector<128xi32> to vector<128x1xi32>
    %c24_i32 = arith.constant 24 : i32
    %38 = vector.broadcast %c24_i32 : i32 to vector<128x1xi32>
    %39 = arith.addi %37, %38 : vector<128x1xi32>
    %40 = vector.broadcast %39 : vector<128x1xi32> to vector<128x128xi32>
    %41 = arith.cmpi eq, %2, %40 : vector<128x128xi32>
    %42 = arith.ori %34, %41 : vector<128x128xi1>
    %43 = vector.extract_strided_slice %1 {offsets = [0, 5], sizes = [128, 1], strides = [1, 1]} : vector<128x9xi32> to vector<128x1xi32>
    %44 = vector.shape_cast %43 : vector<128x1xi32> to vector<128xi32>
    %45 = vector.shape_cast %44 : vector<128xi32> to vector<128x1xi32>
    %c34_i32 = arith.constant 34 : i32
    %46 = vector.broadcast %c34_i32 : i32 to vector<128x1xi32>
    %47 = arith.addi %45, %46 : vector<128x1xi32>
    %48 = vector.broadcast %47 : vector<128x1xi32> to vector<128x128xi32>
    %49 = arith.cmpi eq, %2, %48 : vector<128x128xi32>
    %50 = arith.ori %42, %49 : vector<128x128xi1>
    %51 = vector.extract_strided_slice %1 {offsets = [0, 6], sizes = [128, 1], strides = [1, 1]} : vector<128x9xi32> to vector<128x1xi32>
    %52 = vector.shape_cast %51 : vector<128x1xi32> to vector<128xi32>
    %53 = vector.shape_cast %52 : vector<128xi32> to vector<128x1xi32>
    %c40_i32 = arith.constant 40 : i32
    %54 = vector.broadcast %c40_i32 : i32 to vector<128x1xi32>
    %55 = arith.addi %53, %54 : vector<128x1xi32>
    %56 = vector.broadcast %55 : vector<128x1xi32> to vector<128x128xi32>
    %57 = arith.cmpi eq, %2, %56 : vector<128x128xi32>
    %58 = arith.ori %50, %57 : vector<128x128xi1>
    %59 = vector.extract_strided_slice %1 {offsets = [0, 7], sizes = [128, 1], strides = [1, 1]} : vector<128x9xi32> to vector<128x1xi32>
    %60 = vector.shape_cast %59 : vector<128x1xi32> to vector<128xi32>
    %61 = vector.shape_cast %60 : vector<128xi32> to vector<128x1xi32>
    %c46_i32 = arith.constant 46 : i32
    %62 = vector.broadcast %c46_i32 : i32 to vector<128x1xi32>
    %63 = arith.addi %61, %62 : vector<128x1xi32>
    %64 = vector.broadcast %63 : vector<128x1xi32> to vector<128x128xi32>
    %65 = arith.cmpi eq, %2, %64 : vector<128x128xi32>
    %66 = arith.ori %58, %65 : vector<128x128xi1>
    %67 = vector.extract_strided_slice %1 {offsets = [0, 8], sizes = [128, 1], strides = [1, 1]} : vector<128x9xi32> to vector<128x1xi32>
    %68 = vector.shape_cast %67 : vector<128x1xi32> to vector<128xi32>
    %69 = vector.shape_cast %68 : vector<128xi32> to vector<128x1xi32>
    %c48_i32 = arith.constant 48 : i32
    %70 = vector.broadcast %c48_i32 : i32 to vector<128x1xi32>
    %71 = arith.addi %69, %70 : vector<128x1xi32>
    %72 = vector.broadcast %71 : vector<128x1xi32> to vector<128x128xi32>
    %73 = arith.cmpi eq, %2, %72 : vector<128x128xi32>
    %74 = arith.ori %66, %73 : vector<128x128xi1>
    %75 = arith.extui %74 : vector<128x128xi1> to vector<128x128xi32>
    %76 = arith.sitofp %75 : vector<128x128xi32> to vector<128x128xf32>
    %77 = tpu.concatenate %19, %76 in 1 : vector<128x128xf32>, vector<128x128xf32> -> vector<128x256xf32>
    %cst = arith.constant dense<0.000000e+00> : vector<128x128xf32>
    %78 = tpu.matmul %77, %0, %cst {dimension_numbers = #tpu.dot_dimension_numbers<[1], [0], [0], [1], [0, 0, 1, 1], [], []>} : vector<128x256xf32>, vector<256x128xf32>, vector<128x128xf32> -> vector<128x128xf32>
    %c0_4 = arith.constant 0 : index
    %c0_5 = arith.constant 0 : index
    %79 = vector.load %arg3[%c0_4, %c0_5] : memref<256x128xf32, #tpu.memory_space<vmem>>, vector<128x128xf32>
    tpu.vector_store %arg3[%c0_4, %c0_5], %78 {strides = array<i32>} : memref<256x128xf32, #tpu.memory_space<vmem>>, vector<128x128xf32>,
    %c128 = arith.constant 128 : index
    %c0_6 = arith.constant 0 : index
    %80 = vector.load %arg1[%c128, %c0_6] : memref<256x9xi32, #tpu.memory_space<vmem>>, vector<128x9xi32>
    %81 = tpu.iota {dimensions = array<i32: 1>} : vector<128x128xi32>
    %82 = vector.extract_strided_slice %80 {offsets = [0, 0], sizes = [128, 1], strides = [1, 1]} : vector<128x9xi32> to vector<128x1xi32>
    %83 = vector.shape_cast %82 : vector<128x1xi32> to vector<128xi32>
    %84 = vector.shape_cast %83 : vector<128xi32> to vector<128x1xi32>
    %c0_i32_7 = arith.constant 0 : i32
    %85 = vector.broadcast %c0_i32_7 : i32 to vector<128x1xi32>
    %86 = arith.addi %84, %85 : vector<128x1xi32>
    %87 = vector.broadcast %86 : vector<128x1xi32> to vector<128x128xi32>
    %88 = arith.cmpi eq, %81, %87 : vector<128x128xi32>
    %89 = vector.extract_strided_slice %80 {offsets = [0, 1], sizes = [128, 1], strides = [1, 1]} : vector<128x9xi32> to vector<128x1xi32>
    %90 = vector.shape_cast %89 : vector<128x1xi32> to vector<128xi32>
    %91 = vector.shape_cast %90 : vector<128xi32> to vector<128x1xi32>
    %c119_i32_8 = arith.constant 119 : i32
    %92 = vector.broadcast %c119_i32_8 : i32 to vector<128x1xi32>
    %93 = arith.addi %91, %92 : vector<128x1xi32>
    %94 = vector.broadcast %93 : vector<128x1xi32> to vector<128x128xi32>
    %95 = arith.cmpi eq, %81, %94 : vector<128x128xi32>
    %96 = arith.ori %88, %95 : vector<128x128xi1>
    %97 = arith.extui %96 : vector<128x128xi1> to vector<128x128xi32>
    %98 = arith.sitofp %97 : vector<128x128xi32> to vector<128x128xf32>
    %99 = vector.extract_strided_slice %80 {offsets = [0, 2], sizes = [128, 1], strides = [1, 1]} : vector<128x9xi32> to vector<128x1xi32>
    %100 = vector.shape_cast %99 : vector<128x1xi32> to vector<128xi32>
    %101 = vector.shape_cast %100 : vector<128xi32> to vector<128x1xi32>
    %c0_i32_9 = arith.constant 0 : i32
    %102 = vector.broadcast %c0_i32_9 : i32 to vector<128x1xi32>
    %103 = arith.addi %101, %102 : vector<128x1xi32>
    %104 = vector.broadcast %103 : vector<128x1xi32> to vector<128x128xi32>
    %105 = arith.cmpi eq, %81, %104 : vector<128x128xi32>
    %106 = vector.extract_strided_slice %80 {offsets = [0, 3], sizes = [128, 1], strides = [1, 1]} : vector<128x9xi32> to vector<128x1xi32>
    %107 = vector.shape_cast %106 : vector<128x1xi32> to vector<128xi32>
    %108 = vector.shape_cast %107 : vector<128xi32> to vector<128x1xi32>
    %c12_i32_10 = arith.constant 12 : i32
    %109 = vector.broadcast %c12_i32_10 : i32 to vector<128x1xi32>
    %110 = arith.addi %108, %109 : vector<128x1xi32>
    %111 = vector.broadcast %110 : vector<128x1xi32> to vector<128x128xi32>
    %112 = arith.cmpi eq, %81, %111 : vector<128x128xi32>
    %113 = arith.ori %105, %112 : vector<128x128xi1>
    %114 = vector.extract_strided_slice %80 {offsets = [0, 4], sizes = [128, 1], strides = [1, 1]} : vector<128x9xi32> to vector<128x1xi32>
    %115 = vector.shape_cast %114 : vector<128x1xi32> to vector<128xi32>
    %116 = vector.shape_cast %115 : vector<128xi32> to vector<128x1xi32>
    %c24_i32_11 = arith.constant 24 : i32
    %117 = vector.broadcast %c24_i32_11 : i32 to vector<128x1xi32>
    %118 = arith.addi %116, %117 : vector<128x1xi32>
    %119 = vector.broadcast %118 : vector<128x1xi32> to vector<128x128xi32>
    %120 = arith.cmpi eq, %81, %119 : vector<128x128xi32>
    %121 = arith.ori %113, %120 : vector<128x128xi1>
    %122 = vector.extract_strided_slice %80 {offsets = [0, 5], sizes = [128, 1], strides = [1, 1]} : vector<128x9xi32> to vector<128x1xi32>
    %123 = vector.shape_cast %122 : vector<128x1xi32> to vector<128xi32>
    %124 = vector.shape_cast %123 : vector<128xi32> to vector<128x1xi32>
    %c34_i32_12 = arith.constant 34 : i32
    %125 = vector.broadcast %c34_i32_12 : i32 to vector<128x1xi32>
    %126 = arith.addi %124, %125 : vector<128x1xi32>
    %127 = vector.broadcast %126 : vector<128x1xi32> to vector<128x128xi32>
    %128 = arith.cmpi eq, %81, %127 : vector<128x128xi32>
    %129 = arith.ori %121, %128 : vector<128x128xi1>
    %130 = vector.extract_strided_slice %80 {offsets = [0, 6], sizes = [128, 1], strides = [1, 1]} : vector<128x9xi32> to vector<128x1xi32>
    %131 = vector.shape_cast %130 : vector<128x1xi32> to vector<128xi32>
    %132 = vector.shape_cast %131 : vector<128xi32> to vector<128x1xi32>
    %c40_i32_13 = arith.constant 40 : i32
    %133 = vector.broadcast %c40_i32_13 : i32 to vector<128x1xi32>
    %134 = arith.addi %132, %133 : vector<128x1xi32>
    %135 = vector.broadcast %134 : vector<128x1xi32> to vector<128x128xi32>
    %136 = arith.cmpi eq, %81, %135 : vector<128x128xi32>
    %137 = arith.ori %129, %136 : vector<128x128xi1>
    %138 = vector.extract_strided_slice %80 {offsets = [0, 7], sizes = [128, 1], strides = [1, 1]} : vector<128x9xi32> to vector<128x1xi32>
    %139 = vector.shape_cast %138 : vector<128x1xi32> to vector<128xi32>
    %140 = vector.shape_cast %139 : vector<128xi32> to vector<128x1xi32>
    %c46_i32_14 = arith.constant 46 : i32
    %141 = vector.broadcast %c46_i32_14 : i32 to vector<128x1xi32>
    %142 = arith.addi %140, %141 : vector<128x1xi32>
    %143 = vector.broadcast %142 : vector<128x1xi32> to vector<128x128xi32>
    %144 = arith.cmpi eq, %81, %143 : vector<128x128xi32>
    %145 = arith.ori %137, %144 : vector<128x128xi1>
    %146 = vector.extract_strided_slice %80 {offsets = [0, 8], sizes = [128, 1], strides = [1, 1]} : vector<128x9xi32> to vector<128x1xi32>
    %147 = vector.shape_cast %146 : vector<128x1xi32> to vector<128xi32>
    %148 = vector.shape_cast %147 : vector<128xi32> to vector<128x1xi32>
    %c48_i32_15 = arith.constant 48 : i32
    %149 = vector.broadcast %c48_i32_15 : i32 to vector<128x1xi32>
    %150 = arith.addi %148, %149 : vector<128x1xi32>
    %151 = vector.broadcast %150 : vector<128x1xi32> to vector<128x128xi32>
    %152 = arith.cmpi eq, %81, %151 : vector<128x128xi32>
    %153 = arith.ori %145, %152 : vector<128x128xi1>
    %154 = arith.extui %153 : vector<128x128xi1> to vector<128x128xi32>
    %155 = arith.sitofp %154 : vector<128x128xi32> to vector<128x128xf32>
    %156 = tpu.concatenate %98, %155 in 1 : vector<128x128xf32>, vector<128x128xf32> -> vector<128x256xf32>
    %cst_16 = arith.constant dense<0.000000e+00> : vector<128x128xf32>
    %157 = tpu.matmul %156, %0, %cst_16 {dimension_numbers = #tpu.dot_dimension_numbers<[1], [0], [0], [1], [0, 0, 1, 1], [], []>} : vector<128x256xf32>, vector<256x128xf32>, vector<128x128xf32> -> vector<128x128xf32>
    %c128_17 = arith.constant 128 : index
    %c0_18 = arith.constant 0 : index
    %158 = vector.load %arg3[%c128_17, %c0_18] : memref<256x128xf32, #tpu.memory_space<vmem>>, vector<128x128xf32>
    tpu.vector_store %arg3[%c128_17, %c0_18], %157 {strides = array<i32>} : memref<256x128xf32, #tpu.memory_space<vmem>>, vector<128x128xf32>,
    return
  }
  func.func @transform_0(%arg0: i32) -> (i32, i32) {
    %c0_i32 = arith.constant 0 : i32
    %c0_i32_0 = arith.constant 0 : i32
    return %arg0, %c0_i32 : i32, i32
  }
  func.func @transform_1(%arg0: i32) -> (i32, i32) {
    %c0_i32 = arith.constant 0 : i32
    %c0_i32_0 = arith.constant 0 : i32
    %c0_i32_1 = arith.constant 0 : i32
    return %c0_i32, %c0_i32_0 : i32, i32
  }
  func.func @transform_2(%arg0: i32) -> (i32, i32) {
    %c0_i32 = arith.constant 0 : i32
    %c0_i32_0 = arith.constant 0 : i32
    return %arg0, %c0_i32 : i32, i32
  }
}

</mosaic_0001>

<bundles_post_ra>
// kernel: tpu_custom_call.1
= control target key start
LH: loop header
LB: loop body
LE: loop exit
PB: predicated region body
PF: predicated region fallthrough
CT: control target
= control target key end

     0   :  { %7 = vsyncpa [#allocation3], 0  ;;  %s4629_s0 = inlined_call_operand.vmem [shape: s32[512,9], index: 0, kind: input, shape index: {}]   ;;  %s4630_s1 = inlined_call_operand.vmem [shape: f32[256,128], index: 1, kind: input, shape index: {}]   ;;  %s4631_s2 = inlined_call_operand.hbm [shape: f32[512,128], index: 2, kind: output, shape index: {}]  }
   0x1   :  { %9 = vsyncpa [#allocation3 + $0x1], 0  ;;  %s2671_s9 = smov 0   ;;  %s2673_s10 = smov 0  }
   0x2   :  { %s2675_s11 = smov 0   ;;  %s2677_s12 = smov 0  }
   0x3 LB: > { %s2692_s13 = sadd.s32 4294967295, %s2641_s12   ;;  %s2309_s14 = sadd.s32 4294967294, %s2641_s12   ;;  %s2641_s12 = sphi %s2677_s12, %s5007_s12   ;;  %s2637_s11 = sphi %s2675_s11, %s5006_s11   ;;  %s2633_s10 = sphi %s2673_s10, %s5005_s10   ;;  %s2629_s9 = sphi %s2671_s9, %s5004_s9  }
   0x4   : > { %s2696_s15 = sadd.s32 1, %s2641_s12   ;;  %s69_s16 = sadd.s32 1, %s2637_s11 }
   0x5   : > { %s66_s17 = ssub.s32 %s2641_s12, %s2696_s15  ;;  %p79_p0 = scmp.ne.s32.totalorder %s2637_s11, %s2633_s10 }
   0x6   : > { %p67_p1 = scmp.eq.s32.totalorder %s66_s17, 0  ;;  %p80_p2 = scmp.eq.s32.totalorder %s2692_s13, 1 }
   0x7   : > { %p85_p3 = scmp.ne.s32.totalorder %s2633_s10, %s2629_s9  ;;  %p86_p4 = scmp.eq.s32.totalorder %s2309_s14, 1 }
   0x8   : > { %s2707_s18 = scalar_select %p67_p1, %s2637_s11, %s69_s16  }
   0x9   : > { %p2709_p5 = por %p80_p2, %p79_p0  ;;  %p2713_p6 = por %p86_p4, %p85_p3 }
   0xa   : > { %p2312_p7 = scmp.ge.s32.totalorder %s2641_s12, 1  ;;  %p116_p8 = scmp.lt.s32.totalorder %s2641_s12, 3 }
   0xc   : > { %p117_p9 = pnand %p2312_p7, %p116_p8 }
   0xe   : > { %120 = sbr.rel (%p117_p9) target bundleno = 1134 (0x46e), region = 28 }
  0x13   : > { %s2314_s21 = sshll.u32 %s2692_s13, 5  ;;  %v4636_v0 = vmov 0   ;;  %v4634_v19 = vmov 1   ;;  %v4632_v36 = vmov 2   ;;  %v160_v38 = vld [vmem:[%s4630_s1 + $0x78] sm:$0xff]  ;;  %v159_v39 = vld [vmem:[%s4630_s1 + $0x70] sm:$0xff] }
  0x14   : > { %2472 = vset.pattern.permute.xlu2 %v4636_v0  ;;  %2471 = vset.pattern.permute.xlu1 %v4636_v0  ;;  %p139_p10 = scmp.lt.s32.totalorder %s2314_s21, 63  ;;  %v158_v42 = vld [vmem:[%s4630_s1 + $0x68] sm:$0xff]  ;;  %v157_v43 = vld [vmem:[%s4630_s1 + $0x60] sm:$0xff]  ;;  %v156_v44 = vld [vmem:[%s4630_s1 + $0x58] sm:$0xff]  ;;  %s135_s8 = sand.u32 1, %s2633_s10  }
  0x15   : > { %2470 = vset.pattern.permute.xlu0 %v4636_v0  ;;  %1059 = vmatpush.msra.mxu0 %v160_v38  ;;  %v155_v46 = vld [vmem:[%s4630_s1 + $0x50] sm:$0xff]  ;;  %v154_v48 = vld [vmem:[%s4630_s1 + $0x48] sm:$0xff]  ;;  %v153_v49 = vld [vmem:[%s4630_s1 + $0x40] sm:$0xff]  ;;  %s2313_s14 = sshll.u32 %s135_s8, 8  ;;  %s2232_s26 = scalar_lea.sflag [#allocation3], %s135_s8 }
  0x16   : > { %s5009_s21 = smov (!%p139_p10, %s2314_s21), 63  ;;  %2085 = vmatpush.msra.mxu2 %v160_v38  ;;  %v152_v50 = vld [vmem:[%s4630_s1 + $0x38] sm:$0xff]  ;;  %v151_v52 = vld [vmem:[%s4630_s1 + $0x30] sm:$0xff]  ;;  %v150_v57 = vld [vmem:[%s4630_s1 + $0x28] sm:$0xff]  ;;  %s4195_s16 = scalar_lea.vmem [#allocation2], %s2313_s14 }
  0x17   : > { %s2315_s22 = sshll.u32 %s5009_s21, 3  ;;  %1060 = vmatpush.msra.mxu0 %v159_v39  ;;  %v149_v58 = vld [vmem:[%s4630_s1 + $0x20] sm:$0xff]  ;;  %v148_v59 = vld [vmem:[%s4630_s1 + $0x18] sm:$0xff]  ;;  %v147_v61 = vld [vmem:[%s4630_s1 + $0x10] sm:$0xff]  ;;  %s2244_s23 = sshll.u32 %s4195_s16, 4  ;;  %s2245_s23 = int_to_ptr.vmem [resolvable:$true] %s2244_s23 }
  0x18   : > { %s2726_s25 = scalar_lea.vmem %s4629_s0, %s2315_s22  ;;  %2086 = vmatpush.msra.mxu2 %v159_v39  ;;  %s2599_s30 = scalar_lea.hbm %s4631_s2, 512 }
  0x19   : > { %v2729_v1 = vld [vmem:[%s2726_s25 + $0x20] sm:$0xff]  ;;  %v2732_v2 = vld [vmem:[%s2726_s25 + $0x10] sm:$0xff]  ;;  %v2741_v4 = vld [vmem:[%s2726_s25 + $0x28] sm:$0xff]  ;;  %1061 = vmatpush.msra.mxu0 %v158_v42 }
  0x1a   : > { %v2735_v3 = vld [vmem:[%s2726_s25] sm:$0xff]  ;;  %208 = vperm.xlu2 %2472, %v2729_v1   ;;  %202 = vperm.xlu1 %2471, %v2732_v2   ;;  %v2744_v5 = vld [vmem:[%s2726_s25 + $0x18] sm:$0xff]  ;;  %v2747_v6 = vld [vmem:[%s2726_s25 + $0x8] sm:$0xff]  ;;  %v263_v20 = vadd.s32 119, %v2729_v1  ;;  %v264_v25 = vadd.s32 119, %v2741_v4  ;;  %v261_v35 = vadd.s32 119, %v2732_v2 }
  0x1b   : > { %196 = vperm.xlu0 %2470, %v2735_v3   ;;  %v2753_v7 = vld [vmem:[%s2726_s25 + $0x40] sm:$0xff]  ;;  %v2756_v8 = vld [vmem:[%s2726_s25 + $0x38] sm:$0xff]  ;;  %v2759_v9 = vld [vmem:[%s2726_s25 + $0x30] sm:$0xff]  ;;  %v260_v16 = vadd.s32 119, %v2747_v6  ;;  %v259_v18 = vadd.s32 119, %v2735_v3  ;;  %v262_v22 = vadd.s32 119, %v2744_v5  ;;  %2087 = vmatpush.msra.mxu2 %v158_v42 }
  0x1c   : > { %v2765_v10 = vld [vmem:[%s2726_s25 + $0x58] sm:$0xff]  ;;  %v2768_v11 = vld [vmem:[%s2726_s25 + $0x50] sm:$0xff]  ;;  %v2771_v12 = vld [vmem:[%s2726_s25 + $0x48] sm:$0xff]  ;;  %v265_v23 = vadd.s32 119, %v2759_v9  ;;  %v267_v28 = vadd.s32 119, %v2753_v7  ;;  %v266_v40 = vadd.s32 119, %v2756_v8  ;;  %1062 = vmatpush.msra.mxu0 %v157_v43 }
  0x1d   : > { %v2777_v13 = vld [vmem:[%s2726_s25 + $0x70] sm:$0xff]  ;;  %v2780_v14 = vld [vmem:[%s2726_s25 + $0x68] sm:$0xff]  ;;  %v2783_v15 = vld [vmem:[%s2726_s25 + $0x60] sm:$0xff]  ;;  %v268_v26 = vadd.s32 119, %v2771_v12  ;;  %v270_v31 = vadd.s32 119, %v2765_v10  ;;  %v269_v45 = vadd.s32 119, %v2768_v11  ;;  %2088 = vmatpush.msra.mxu2 %v157_v43 }
  0x1e   : > { %v2790_v17 = vld [vmem:[%s2726_s25 + $0x78] sm:$0xff]  ;;  %v2798_v21 = vld [vmem:[%s2726_s25 + $0x88] sm:$0xff]  ;;  %v2804_v24 = vld [vmem:[%s2726_s25 + $0xb0] sm:$0xff]  ;;  %v271_v29 = vadd.s32 119, %v2783_v15  ;;  %v273_v34 = vadd.s32 119, %v2777_v13  ;;  %1063 = vmatpush.msra.mxu0 %v156_v44  ;;  %v272_v51 = vadd.s32 119, %v2780_v14 }
  0x1f   : > { %v2810_v27 = vld [vmem:[%s2726_s25 + $0xc8] sm:$0xff]  ;;  %v2816_v30 = vld [vmem:[%s2726_s25 + $0xe0] sm:$0xff]  ;;  %v274_v32 = vadd.s32 119, %v2790_v17  ;;  %v2822_v33 = vld [vmem:[%s2726_s25 + $0xf8] sm:$0xff]  ;;  %2089 = vmatpush.msra.mxu2 %v156_v44  ;;  %v453_v38 = vadd.s32 12, %v2732_v2 }
  0x20   : > { %1064 = vmatpush.msra.mxu0 %v155_v46  ;;  %v2884_v56 = vld [vmem:[%s2726_s25 + $0x90] sm:$0xff]  ;;  %v2938_v43 = vld [vmem:[%s2726_s25 + $0xe8] sm:$0xff] }
  0x21   : > { %2090 = vmatpush.msra.mxu2 %v155_v46  ;;  %v1287_v60 = vadd.s32 119, %v2884_v56  ;;  %v1298_v44 = vadd.s32 119, %v2938_v43  ;;  %v455_v46 = vadd.s32 12, %v2729_v1 }
  0x22   : > { %211 = vperm.xlu2 %2472, %v2741_v4   ;;  %205 = vperm.xlu1 %2471, %v2744_v5  }
  0x23   : > { %199 = vperm.xlu0 %2470, %v2747_v6   ;;  %1065 = vmatpush.msra.mxu0 %v154_v48 }
  0x24   : > { %2091 = vmatpush.msra.mxu2 %v154_v48 }
  0x25   : > { %1066 = vmatpush.msra.mxu0 %v153_v49 }
  0x26   : > { %2092 = vmatpush.msra.mxu2 %v153_v49 }
  0x27   : > { %1067 = vmatpush.msra.mxu0 %v152_v50 }
  0x28   : > { %2093 = vmatpush.msra.mxu2 %v152_v50 }
  0x29   : > { %1068 = vmatpush.msra.mxu0 %v151_v52 }
  0x2a   : > { %220 = vperm.xlu2 %2472, %v2753_v7   ;;  %217 = vperm.xlu1 %2471, %v2756_v8  }
  0x2b   : > { %214 = vperm.xlu0 %2470, %v2759_v9   ;;  %1069 = vmatpush.msra.mxu0 %v150_v57 }
  0x2c   : > { %2094 = vmatpush.msra.mxu2 %v151_v52  ;;  %v459_v52 = vadd.s32 12, %v2753_v7 }
  0x2d   : > { %1070 = vmatpush.msra.mxu0 %v149_v58 }
  0x2e   : > { %2095 = vmatpush.msra.mxu2 %v150_v57  ;;  %v458_v57 = vadd.s32 12, %v2756_v8 }
  0x2f   : > { %1071 = vmatpush.msra.mxu0 %v148_v59 }
  0x30   : > { %2096 = vmatpush.msra.mxu2 %v149_v58 }
  0x31   : > { %1072 = vmatpush.msra.mxu0 %v147_v61 }
  0x32   : > { %229 = vperm.xlu2 %2472, %v2765_v10   ;;  %226 = vperm.xlu1 %2471, %v2768_v11  }
  0x33   : > { %223 = vperm.xlu0 %2470, %v2771_v12   ;;  %2097 = vmatpush.msra.mxu2 %v148_v59 }
  0x35   : > { %2098 = vmatpush.msra.mxu2 %v147_v61 }
  0x3a   : > { %238 = vperm.xlu2 %2472, %v2777_v13   ;;  %235 = vperm.xlu1 %2471, %v2780_v14  }
  0x3b   : > { %232 = vperm.xlu0 %2470, %v2783_v15  }
  0x42   : > { %2474 = vset.pattern.permute.xlu2 %v4634_v19  ;;  %2473 = vset.pattern.permute.xlu1 %v4634_v19 }
  0x43   : > { %241 = vperm.xlu0 %2470, %v2790_v17   ;;  %279 = vperm.xlu2 %2474, %v260_v16  }
  0x44   : > { %276 = vperm.xlu1 %2473, %v259_v18   ;;  %v2908_v18 = vld [vmem:[%s2726_s25 + $0xb8] sm:$0xff] }
  0x4b   : > { %1225 = vperm.xlu0 %2470, %v2798_v21   ;;  %288 = vperm.xlu2 %2474, %v263_v20   ;;  %v146_v20 = vld [vmem:[%s4630_s1 + $0x8] sm:$0xff] }
  0x4c   : > { %285 = vperm.xlu1 %2473, %v262_v22   ;;  %1073 = vmatpush.msra.mxu0 %v146_v20  ;;  %v145_v22 = vld [vmem:[%s4630_s1] sm:$0xff] }
  0x4d   : > { %2099 = vmatpush.msra.mxu2 %v146_v20  ;;  %v4642_v20 = vmov 1.0  }
  0x4e   : > { %1074 = vmatpush.msra.mxu0 %v145_v22 }
  0x4f   : > { %2100 = vmatpush.msra.mxu2 %v145_v22  ;;  %v462_v22 = vadd.s32 12, %v2765_v10 }
  0x53   : > { %1240 = vperm.xlu0 %2470, %v2804_v24   ;;  %294 = vperm.xlu2 %2474, %v265_v23   ;;  %v1292_v23 = vadd.s32 119, %v2908_v18 }
  0x54   : > { %291 = vperm.xlu1 %2473, %v264_v25   ;;  %v451_v25 = vadd.s32 12, %v2735_v3 }
  0x5b   : > { %1249 = vperm.xlu0 %2470, %v2810_v27   ;;  %303 = vperm.xlu2 %2474, %v268_v26  }
  0x5c   : > { %300 = vperm.xlu1 %2473, %v267_v28   ;;  %v4640_v28 = vmov 3  }
  0x63   : > { %1258 = vperm.xlu0 %2470, %v2816_v30   ;;  %312 = vperm.xlu2 %2474, %v271_v29  }
  0x64   : > { %309 = vperm.xlu1 %2473, %v270_v31  }
  0x6b   : > { %1267 = vperm.xlu0 %2470, %v2822_v33   ;;  %321 = vperm.xlu2 %2474, %v274_v32   ;;  %v2925_v32 = vld [vmem:[%s2726_s25 + $0xd0] sm:$0xff] }
  0x6c   : > { %318 = vperm.xlu1 %2473, %v273_v34   ;;  %v1295_v34 = vadd.s32 119, %v2925_v32 }
  0x73   : > { %2491 = vset.pattern.permute.xlu0 %v4634_v19  ;;  %2476 = vset.pattern.permute.xlu2 %v4632_v36  ;;  %v3006_v19 = vld [vmem:[%s2726_s25 + $0x80] sm:$0xff] }
  0x74   : > { %282 = vperm.xlu0 %2491, %v261_v35   ;;  %2475 = vset.pattern.permute.xlu1 %v4632_v36  ;;  %v2830_v37 = vpop.permute.xlu2 %208  ;;  %v454_v35 = vadd.s32 12, %v2744_v5 }
  0x75   : > { %394 = vperm.xlu2 %2476, %v2732_v2   ;;  %391 = vperm.xlu1 %2475, %v2747_v6  }
  0x7c   : > { %297 = vperm.xlu0 %2491, %v266_v40   ;;  %v2841_v41 = vpop.permute.xlu2 %211 }
  0x7d   : > { %400 = vperm.xlu2 %2476, %v2729_v1   ;;  %397 = vperm.xlu1 %2475, %v2744_v5  }
  0x84   : > { %306 = vperm.xlu0 %2491, %v269_v45   ;;  %v2858_v47 = vpop.permute.xlu2 %220  ;;  %v456_v45 = vadd.s32 12, %v2741_v4 }
  0x85   : > { %409 = vperm.xlu2 %2476, %v2756_v8   ;;  %406 = vperm.xlu1 %2475, %v2759_v9  }
  0x8c   : > { %315 = vperm.xlu0 %2491, %v272_v51   ;;  %v2875_v53 = vpop.permute.xlu2 %229  ;;  %v2877_v54 = vpop.permute.xlu1 %202  ;;  %v193_v51 = vlaneseq }
  0x8d   : > { %418 = vperm.xlu2 %2476, %v2768_v11   ;;  %415 = vperm.xlu1 %2475, %v2771_v12   ;;  %v2881_v55 = vpop.permute.xlu0 %196 }
  0x8e   : > { %v2951_v58 = vand.u32 127, %v193_v51 }
  0x90   : > { %vm243_vm0 = vcmp.eq.s32.totalorder %v2951_v58, %v2881_v55  ;;  %vm245_vm6 = vcmp.eq.s32.totalorder %v2951_v58, %v2877_v54  ;;  %vm247_vm13 = vcmp.eq.s32.totalorder %v2951_v58, %v2830_v37 }
  0x94   : > { %1308 = vperm.xlu0 %2491, %v1287_v60   ;;  %v2899_v62 = vpop.permute.xlu2 %238  ;;  %v2901_v63 = vpop.permute.xlu1 %205 }
  0x95   : > { %427 = vperm.xlu2 %2476, %v2780_v14   ;;  %424 = vperm.xlu1 %2475, %v2783_v15   ;;  %v2905_v16 = vpop.permute.xlu0 %199  ;;  %vm246_vm10 = vcmp.eq.s32.totalorder %v2951_v58, %v2901_v63 }
  0x96   : > { %vm244_vm3 = vcmp.eq.s32.totalorder %v2951_v58, %v2905_v16 }
  0x9c   : > { %1323 = vperm.xlu0 %2491, %v1292_v23   ;;  %v2918_v26 = vpop.permute.xlu1 %217  ;;  %v461_v23 = vadd.s32 12, %v2768_v11 }
  0x9d   : > { %2477 = vset.pattern.permute.xlu2 %v4640_v28  ;;  %433 = vperm.xlu1 %2475, %v2790_v17   ;;  %v280_v29 = vpop.permute.xlu2 %279  ;;  %v2922_v31 = vpop.permute.xlu0 %214 }
  0x9e   : > { %468 = vperm.xlu2 %2477, %v451_v25   ;;  %vm324_vm4 = vcmp.eq.s32.totalorder %v2951_v58, %v280_v29 }
  0x9f   : > { %vm340_vm5 = vmor %vm244_vm3, %vm324_vm4 }
  0xa4   : > { %1332 = vperm.xlu0 %2491, %v1295_v34   ;;  %v2930_v39 = vpop.permute.xlu1 %226 }
  0xa5   : > { %2478 = vset.pattern.permute.xlu1 %v4640_v28  ;;  %v2933_v40 = vpop.permute.xlu2 %288  ;;  %v2935_v42 = vpop.permute.xlu0 %223 }
  0xa6   : > { %477 = vperm.xlu2 %2477, %v454_v35   ;;  %474 = vperm.xlu1 %2478, %v453_v38   ;;  %v465_v35 = vadd.s32 12, %v2777_v13  ;;  %v464_v38 = vadd.s32 12, %v2780_v14  ;;  %vm327_vm12 = vcmp.eq.s32.totalorder %v2951_v58, %v2933_v40  ;;  %v645_v40 = vadd.s32 34, %v2732_v2 }
  0xa7   : > { %vm343_vm14 = vmor %vm247_vm13, %vm327_vm12 }
  0xac   : > { %1341 = vperm.xlu0 %2491, %v1298_v44   ;;  %v2943_v48 = vpop.permute.xlu1 %235 }
  0xad   : > { %v2945_v49 = vpop.permute.xlu2 %294  ;;  %v2947_v50 = vpop.permute.xlu0 %232 }
  0xae   : > { %483 = vperm.xlu2 %2477, %v456_v45   ;;  %480 = vperm.xlu1 %2478, %v455_v46   ;;  %v548_v45 = vadd.s32 24, %v2747_v6  ;;  %v547_v46 = vadd.s32 24, %v2735_v3  ;;  %vm329_vm3 = vcmp.eq.s32.totalorder %v2951_v58, %v2945_v49  ;;  %v649_v49 = vadd.s32 34, %v2759_v9 }
  0xb4   : > { %2494 = vset.pattern.permute.xlu0 %v4632_v36 }
  0xb5   : > { %388 = vperm.xlu0 %2494, %v2735_v3   ;;  %v2957_v59 = vpop.permute.xlu2 %303  ;;  %v2959_v60 = vpop.permute.xlu0 %241 }
  0xb6   : > { %492 = vperm.xlu2 %2477, %v459_v52   ;;  %489 = vperm.xlu1 %2478, %v458_v57   ;;  %v277_v61 = vpop.permute.xlu1 %276  ;;  %v4638_v52 = vmov 4   ;;  %vm332_vm12 = vcmp.eq.s32.totalorder %v2951_v58, %v2957_v59 }
  0xb7   : > { %vm323_vm1 = vcmp.eq.s32.totalorder %v2951_v58, %v277_v61 }
  0xb8   : > { %vm339_vm2 = vmor %vm243_vm0, %vm323_vm1  ;;  %vm248_vm0 = vcmp.eq.s32.totalorder %v2951_v58, %v2841_v41  ;;  %v646_v41 = vadd.s32 34, %v2744_v5 }
  0xb9   : > { %2348 = vmatmul.msk.f32.vlgmr.msra.gmra.mxu0 %vm339_vm2, %v4642_v20  ;;  %vm249_vm2 = vcmp.eq.s32.totalorder %v2951_v58, %v2922_v31  ;;  %v650_v31 = vadd.s32 34, %v2756_v8 }
  0xba   : > { %vm345_vm4 = vmor %vm249_vm2, %vm329_vm3  ;;  %vm254_vm2 = vcmp.eq.s32.totalorder %v2951_v58, %v2875_v53 }
  0xbd   : > { %403 = vperm.xlu0 %2494, %v2741_v4   ;;  %v2969_v55 = vpop.permute.xlu2 %312  ;;  %v2971_v25 = vpop.permute.xlu0 %1225 }
  0xbe   : > { %501 = vperm.xlu2 %2477, %v462_v22   ;;  %498 = vperm.xlu1 %2478, %v461_v23   ;;  %v2973_v34 = vpop.permute.xlu1 %285  ;;  %v551_v22 = vadd.s32 24, %v2729_v1  ;;  %v550_v23 = vadd.s32 24, %v2744_v5 }
  0xbf   : > { %vm326_vm9 = vcmp.eq.s32.totalorder %v2951_v58, %v2973_v34  ;;  %v562_v34 = vadd.s32 24, %v2790_v17 }
  0xc0   : > { %vm342_vm11 = vmor %vm246_vm10, %vm326_vm9  ;;  %vm251_vm9 = vcmp.eq.s32.totalorder %v2951_v58, %v2858_v47 }
  0xc1   : > { %2349 = vmatmul.msk.f32.gmra.mxu0 %vm340_vm5, %v4642_v20  ;;  %v3018_v20 = vld [vmem:[%s2726_s25 + $0xa8] sm:$0xff] }
  0xc5   : > { %412 = vperm.xlu0 %2494, %v2753_v7   ;;  %v2979_v16 = vpop.permute.xlu2 %321  ;;  %v2981_v29 = vpop.permute.xlu0 %1240 }
  0xc6   : > { %4662 = vst [vmem:[#allocation5_spill] sm:$0xff] %v2981_v29  ;;  %510 = vperm.xlu2 %2477, %v465_v35   ;;  %507 = vperm.xlu1 %2478, %v464_v38   ;;  %v2983_v44 = vpop.permute.xlu1 %291  ;;  %v3569_v29 = vld [vmem:[%s2726_s25 + $0xe8] sm:$0xff] }
  0xc7   : > { %vm328_vm15 = vcmp.eq.s32.totalorder %v2951_v58, %v2983_v44  ;;  %v452_v44 = vadd.s32 12, %v2747_v6 }
  0xc8   : > { %vm344_vm1 = vmor %vm248_vm0, %vm328_vm15  ;;  %vm253_vm15 = vcmp.eq.s32.totalorder %v2951_v58, %v2930_v39  ;;  %v741_v39 = vadd.s32 40, %v2732_v2 }
  0xcd   : > { %421 = vperm.xlu0 %2494, %v2765_v10   ;;  %v2988_v51 = vpop.permute.xlu0 %1249 }
  0xce   : > { %4663 = vst [vmem:[#allocation6_spill] sm:$0xff] %v2988_v51  ;;  %2480 = vset.pattern.permute.xlu2 %v4638_v52  ;;  %2479 = vset.pattern.permute.xlu1 %v4638_v52  ;;  %v2992_v57 = vpop.permute.xlu1 %300  ;;  %v558_v51 = vadd.s32 24, %v2765_v10 }
  0xcf   : > { %v2994_v61 = vpop.permute.xlu2 %394  ;;  %567 = vperm.xlu2 %2480, %v548_v45   ;;  %564 = vperm.xlu1 %2479, %v547_v46   ;;  %v553_v45 = vadd.s32 24, %v2759_v9  ;;  %v552_v46 = vadd.s32 24, %v2741_v4 }
  0xd0   : > { %4664 = vst [vmem:[#allocation7_spill] sm:$0xff] %v2994_v61  ;;  %v559_v61 = vadd.s32 24, %v2783_v15 }
  0xd5   : > { %430 = vperm.xlu0 %2494, %v2777_v13   ;;  %v2999_v35 = vpop.permute.xlu0 %1258 }
  0xd6   : > { %4665 = vst [vmem:[#allocation8_spill] sm:$0xff] %v2999_v35  ;;  %v3001_v38 = vpop.permute.xlu1 %309  ;;  %v3032_v35 = vld [vmem:[%s2726_s25 + $0xc0] sm:$0xff] }
  0xd7   : > { %v3003_v36 = vpop.permute.xlu2 %400  ;;  %576 = vperm.xlu2 %2480, %v551_v22   ;;  %573 = vperm.xlu1 %2479, %v550_v23   ;;  %v556_v22 = vadd.s32 24, %v2771_v12  ;;  %v555_v23 = vadd.s32 24, %v2753_v7 }
  0xd8   : > { %4666 = vst [vmem:[#allocation9_spill] sm:$0xff] %v3003_v36 }
  0xdd   : > { %1414 = vperm.xlu0 %2494, %v3006_v19   ;;  %v3011_v0 = vpop.permute.xlu0 %1267 }
  0xde   : > { %4667 = vst [vmem:[#allocation10_spill] sm:$0xff] %v3011_v0  ;;  %v3013_v52 = vpop.permute.xlu1 %318 }
  0xdf   : > { %v3015_v28 = vpop.permute.xlu2 %409  ;;  %582 = vperm.xlu2 %2480, %v553_v45   ;;  %579 = vperm.xlu1 %2479, %v552_v46   ;;  %v4671_v46 = vmov 1.0  }
  0xe0   : > { %4668 = vst [vmem:[#allocation11_spill] sm:$0xff] %v3015_v28  ;;  %v653_v28 = vadd.s32 34, %v2768_v11 }
  0xe5   : > { %1429 = vperm.xlu0 %2494, %v3018_v20  }
  0xe6   : > { %v283_v36 = vpop.permute.xlu0 %282 }
  0xe7   : > { %vm325_vm7 = vcmp.eq.s32.totalorder %v2951_v58, %v283_v36  ;;  %v3026_v0 = vpop.permute.xlu2 %418  ;;  %591 = vperm.xlu2 %2480, %v556_v22   ;;  %588 = vperm.xlu1 %2479, %v555_v23   ;;  %v3028_v45 = vpop.permute.xlu1 %391  ;;  %v3047_v23 = vld [vmem:[%s2726_s25 + $0xd8] sm:$0xff] }
  0xe8   : > { %4669 = vst [vmem:[#allocation12_spill] sm:$0xff] %v3026_v0  ;;  %vm341_vm8 = vmor %vm245_vm6, %vm325_vm7  ;;  %v647_v0 = vadd.s32 34, %v2729_v1  ;;  %vm250_vm6 = vcmp.eq.s32.totalorder %v2951_v58, %v2918_v26 }
  0xe9   : > { %4670 = vst [vmem:[#allocation13_spill] sm:$0xff] %v3028_v45  ;;  %2350 = vmatmul.msk.f32.gmra.mxu0 %vm341_vm8, %v4671_v46  ;;  %v561_v45 = vadd.s32 24, %v2777_v13  ;;  %vm331_vm8 = vcmp.eq.s32.totalorder %v2951_v58, %v2992_v57  ;;  %v655_v57 = vadd.s32 34, %v2783_v15 }
  0xea   : > { %vm347_vm10 = vmor %vm251_vm9, %vm331_vm8  ;;  %vm256_vm8 = vcmp.eq.s32.totalorder %v2951_v58, %v2943_v48 }
  0xed   : > { %1438 = vperm.xlu0 %2494, %v3032_v35  }
  0xee   : > { %v298_v36 = vpop.permute.xlu0 %297 }
  0xef   : > { %v3041_v54 = vpop.permute.xlu2 %427  ;;  %600 = vperm.xlu2 %2480, %v559_v61   ;;  %597 = vperm.xlu1 %2479, %v558_v51   ;;  %v3043_v22 = vpop.permute.xlu1 %397  ;;  %vm330_vm5 = vcmp.eq.s32.totalorder %v2951_v58, %v298_v36  ;;  %v652_v36 = vadd.s32 34, %v2771_v12 }
  0xf0   : > { %4672 = vst [vmem:[#allocation14_spill] sm:$0xff] %v3041_v54  ;;  %v644_v54 = vadd.s32 34, %v2747_v6  ;;  %vm346_vm7 = vmor %vm250_vm6, %vm330_vm5  ;;  %vm335_vm5 = vcmp.eq.s32.totalorder %v2951_v58, %v2969_v55 }
  0xf1   : > { %4673 = vst [vmem:[#allocation15_spill] sm:$0xff] %v3043_v22  ;;  %2351 = vmatmul.msk.f32.gmra.mxu0 %vm342_vm11, %v4671_v46  ;;  %v3064_v22 = vld [vmem:[%s2726_s25 + $0xf0] sm:$0xff]  ;;  %vm252_vm11 = vcmp.eq.s32.totalorder %v2951_v58, %v2935_v42  ;;  %v739_v42 = vadd.s32 40, %v2735_v3 }
  0xf2   : > { %vm348_vm13 = vmor %vm252_vm11, %vm332_vm12  ;;  %vm257_vm11 = vcmp.eq.s32.totalorder %v2951_v58, %v2899_v62 }
  0xf5   : > { %1447 = vperm.xlu0 %2494, %v3047_v23  }
  0xf6   : > { %v3054_v63 = vpop.permute.xlu0 %306 }
  0xf7   : > { %609 = vperm.xlu2 %2480, %v562_v34   ;;  %606 = vperm.xlu1 %2479, %v561_v45   ;;  %v3058_v51 = vpop.permute.xlu1 %406  ;;  %v4644_v45 = vmov 5  }
  0xf8   : > { %4674 = vst [vmem:[#allocation16_spill] sm:$0xff] %v3058_v51  ;;  %v3060_v61 = vpop.permute.xlu2 %468 }
  0xf9   : > { %2352 = vmatmul.msk.f32.gmra.mxu0 %vm343_vm14, %v4671_v46  ;;  %vm333_vm14 = vcmp.eq.s32.totalorder %v2951_v58, %v3054_v63  ;;  %v1478_v63 = vadd.s32 12, %v2798_v21  ;;  %v1483_v21 = vadd.s32 12, %v2804_v24  ;;  %v1486_v24 = vadd.s32 12, %v2810_v27 }
  0xfa   : > { %vm349_vm0 = vmor %vm253_vm15, %vm333_vm14  ;;  %v1489_v27 = vadd.s32 12, %v2816_v30  ;;  %v1492_v30 = vadd.s32 12, %v2822_v33  ;;  %vm338_vm14 = vcmp.eq.s32.totalorder %v2951_v58, %v2979_v16  ;;  %v549_v33 = vadd.s32 24, %v2732_v2 }
  0xfb   : > { %v835_v16 = vadd.s32 46, %v2735_v3  ;;  %v838_v3 = vadd.s32 46, %v2744_v5 }
  0xfd   : > { %1456 = vperm.xlu0 %2494, %v3064_v22  }
  0xfe   : > { %v3071_v37 = vpop.permute.xlu0 %315 }
  0xff   : > { %2482 = vset.pattern.permute.xlu2 %v4644_v45  ;;  %2481 = vset.pattern.permute.xlu1 %v4644_v45  ;;  %v3077_v34 = vpop.permute.xlu1 %415  ;;  %v4677_v45 = vmov 3  }
 0x100   : > { %4675 = vst [vmem:[#allocation17_spill] sm:$0xff] %v3077_v34  ;;  %666 = vperm.xlu2 %2482, %v645_v40   ;;  %v3079_v51 = vpop.permute.xlu2 %477  ;;  %663 = vperm.xlu1 %2481, %v644_v54  }
 0x101   : > { %4676 = vst [vmem:[#allocation18_spill] sm:$0xff] %v3079_v51  ;;  %2353 = vmatmul.msk.f32.gmra.mxu0 %vm344_vm1, %v4671_v46  ;;  %v457_v51 = vadd.s32 12, %v2759_v9  ;;  %vm334_vm1 = vcmp.eq.s32.totalorder %v2951_v58, %v3001_v38  ;;  %v744_v38 = vadd.s32 40, %v2741_v4 }
 0x102   : > { %vm350_vm3 = vmor %vm254_vm2, %vm334_vm1  ;;  %vm515_vm2 = vcmp.eq.s32.totalorder %v2951_v58, %v3060_v61 }
 0x105   : > { %2497 = vset.pattern.permute.xlu0 %v4677_v45 }
 0x106   : > { %471 = vperm.xlu0 %2497, %v452_v44   ;;  %v3090_v40 = vpop.permute.xlu0 %1308 }
 0x107   : > { %v3092_v54 = vpop.permute.xlu1 %424 }
 0x108   : > { %4678 = vst [vmem:[#allocation19_spill] sm:$0xff] %v3092_v54  ;;  %672 = vperm.xlu2 %2482, %v647_v0   ;;  %v3094_v34 = vpop.permute.xlu2 %483  ;;  %669 = vperm.xlu1 %2481, %v646_v41   ;;  %v460_v54 = vadd.s32 12, %v2771_v12 }
 0x109   : > { %2354 = vmatmul.msk.f32.gmra.mxu0 %vm345_vm4, %v4671_v46  ;;  %vm255_vm4 = vcmp.eq.s32.totalorder %v2951_v58, %v2947_v50  ;;  %v746_v50 = vadd.s32 40, %v2756_v8 }
 0x10a   : > { %vm351_vm6 = vmor %vm255_vm4, %vm335_vm5 }
 0x10e   : > { %486 = vperm.xlu0 %2497, %v457_v51   ;;  %v3101_v44 = vpop.permute.xlu0 %1323 }
 0x10f   : > { %4679 = vst [vmem:[#allocation20_spill] sm:$0xff] %v3101_v44  ;;  %v3105_v0 = vpop.permute.xlu1 %433  ;;  %v174_v44 = vld [vmem:[%s4630_s1 + $0xe8] sm:$0xff] }
 0x110   : > { %4680 = vst [vmem:[#allocation21_spill] sm:$0xff] %v3105_v0  ;;  %681 = vperm.xlu2 %2482, %v650_v31   ;;  %v3107_v41 = vpop.permute.xlu2 %492  ;;  %678 = vperm.xlu1 %2481, %v649_v49   ;;  %v463_v49 = vadd.s32 12, %v2783_v15  ;;  %v656_v0 = vadd.s32 34, %v2780_v14 }
 0x111   : > { %2355 = vmatmul.msk.f32.gmra.mxu0 %vm346_vm7, %v4671_v46  ;;  %vm336_vm7 = vcmp.eq.s32.totalorder %v2951_v58, %v3071_v37  ;;  %v749_v37 = vadd.s32 40, %v2768_v11 }
 0x112   : > { %vm352_vm9 = vmor %vm256_vm8, %vm336_vm7  ;;  %vm520_vm8 = vcmp.eq.s32.totalorder %v2951_v58, %v3094_v34  ;;  %v3652_v34 = vld [vmem:[%s2726_s25 + $0xd8] sm:$0xff] }
 0x116   : > { %495 = vperm.xlu0 %2497, %v460_v54   ;;  %v3115_v26 = vpop.permute.xlu0 %1332 }
 0x117   : > { %4681 = vst [vmem:[#allocation22_spill] sm:$0xff] %v3115_v26  ;;  %v1674_v26 = vadd.s32 34, %v3018_v20 }
 0x118   : > { %690 = vperm.xlu2 %2482, %v653_v28   ;;  %v3119_v51 = vpop.permute.xlu2 %501  ;;  %687 = vperm.xlu1 %2481, %v652_v36   ;;  %v3121_v31 = vpop.permute.xlu1 %474  ;;  %v466_v36 = vadd.s32 12, %v2790_v17 }
 0x119   : > { %4682 = vst [vmem:[#allocation23_spill] sm:$0xff] %v3121_v31  ;;  %2356 = vmatmul.msk.f32.gmra.mxu0 %vm347_vm10, %v4671_v46  ;;  %v658_v31 = vadd.s32 34, %v2790_v17  ;;  %vm337_vm10 = vcmp.eq.s32.totalorder %v2951_v58, %v3013_v52  ;;  %v752_v52 = vadd.s32 40, %v2780_v14 }
 0x11a   : > { %vm353_vm12 = vmor %vm257_vm11, %vm337_vm10 }
 0x11e   : > { %504 = vperm.xlu0 %2497, %v463_v49   ;;  %v3131_v47 = vpop.permute.xlu0 %1341 }
 0x11f   : > { %4683 = vst [vmem:[#allocation24_spill] sm:$0xff] %v3131_v47 }
 0x120   : > { %699 = vperm.xlu2 %2482, %v656_v0   ;;  %v3133_v28 = vpop.permute.xlu2 %510  ;;  %696 = vperm.xlu1 %2481, %v655_v57   ;;  %v3135_v54 = vpop.permute.xlu1 %480  ;;  %v4646_v0 = vmov 6  }
 0x121   : > { %4684 = vst [vmem:[#allocation25_spill] sm:$0xff] %v3135_v54  ;;  %2357 = vmatmul.msk.f32.gmra.mxu0 %vm348_vm13, %v4671_v46  ;;  %vm258_vm13 = vcmp.eq.s32.totalorder %v2951_v58, %v2959_v60  ;;  %v836_v60 = vadd.s32 46, %v2747_v6 }
 0x122   : > { %vm354_vm15 = vmor %vm258_vm13, %vm338_vm14 }
 0x126   : > { %513 = vperm.xlu0 %2497, %v466_v36   ;;  %v742_v36 = vadd.s32 40, %v2744_v5 }
 0x127   : > { %v3145_v59 = vpop.permute.xlu0 %388 }
 0x128   : > { %2483 = vset.pattern.permute.xlu2 %v4646_v0  ;;  %705 = vperm.xlu1 %2481, %v658_v31   ;;  %v3148_v49 = vpop.permute.xlu1 %489  ;;  %v4687_v31 = vmov 6  }
 0x129   : > { %4685 = vst [vmem:[#allocation26_spill] sm:$0xff] %v3148_v49  ;;  %756 = vperm.xlu2 %2483, %v739_v42   ;;  %v3150_v57 = vpop.permute.xlu2 %567  ;;  %2358 = vmatmul.msk.f32.gmra.mxu0 %vm349_vm0, %v4671_v46  ;;  %v2555_v49 = vld [vmem:[%s2726_s25 + $0x68] sm:$0xff]  ;;  %vm435_vm0 = vcmp.eq.s32.totalorder %v2951_v58, %v3145_v59 }
 0x12a   : > { %4686 = vst [vmem:[#allocation27_spill] sm:$0xff] %v3150_v57  ;;  %vm531_vm4 = vmor %vm435_vm0, %vm515_vm2 }
 0x12e   : > { %1497 = vperm.xlu0 %2497, %v1478_v63   ;;  %v743_v63 = vadd.s32 40, %v2729_v1 }
 0x12f   : > { %v3158_v0 = vpop.permute.xlu0 %403 }
 0x130   : > { %2484 = vset.pattern.permute.xlu1 %v4687_v31  ;;  %v3163_v42 = vpop.permute.xlu1 %498  ;;  %vm440_vm5 = vcmp.eq.s32.totalorder %v2951_v58, %v3158_v0  ;;  %v1488_v0 = vadd.s32 12, %v3652_v34 }
 0x131   : > { %4688 = vst [vmem:[#allocation28_spill] sm:$0xff] %v3163_v42  ;;  %765 = vperm.xlu2 %2483, %v742_v36   ;;  %v3165_v47 = vpop.permute.xlu2 %576  ;;  %762 = vperm.xlu1 %2484, %v741_v39   ;;  %v3523_v42 = vld [vmem:[%s2726_s25 + $0xb8] sm:$0xff] }
 0x132   : > { %4689 = vst [vmem:[#allocation29_spill] sm:$0xff] %v3165_v47  ;;  %2359 = vmatmul.msk.f32.gmra.mxu0 %vm350_vm3, %v4671_v46  ;;  %v747_v47 = vadd.s32 40, %v2753_v7 }
 0x136   : > { %1512 = vperm.xlu0 %2497, %v1483_v21  }
 0x137   : > { %v3175_v53 = vpop.permute.xlu0 %412 }
 0x138   : > { %v3177_v36 = vpop.permute.xlu1 %507 }
 0x139   : > { %4690 = vst [vmem:[#allocation30_spill] sm:$0xff] %v3177_v36  ;;  %771 = vperm.xlu2 %2483, %v744_v38   ;;  %v3179_v39 = vpop.permute.xlu2 %582  ;;  %768 = vperm.xlu1 %2484, %v743_v63   ;;  %v750_v63 = vadd.s32 40, %v2765_v10 }
 0x13a   : > { %4691 = vst [vmem:[#allocation31_spill] sm:$0xff] %v3179_v39  ;;  %2360 = vmatmul.msk.f32.gmra.mxu0 %vm351_vm6, %v4671_v46 }
 0x13e   : > { %1521 = vperm.xlu0 %2497, %v1486_v24  }
 0x13f   : > { %v3187_v55 = vpop.permute.xlu0 %421 }
 0x141   : > { %780 = vperm.xlu2 %2483, %v747_v47   ;;  %v3191_v21 = vpop.permute.xlu2 %591  ;;  %777 = vperm.xlu1 %2484, %v746_v50   ;;  %v3193_v38 = vpop.permute.xlu1 %564  ;;  %v753_v50 = vadd.s32 40, %v2777_v13 }
 0x142   : > { %4692 = vst [vmem:[#allocation32_spill] sm:$0xff] %v3191_v21  ;;  %2361 = vmatmul.msk.f32.gmra.mxu0 %vm352_vm9, %v4671_v46  ;;  %v839_v21 = vadd.s32 46, %v2729_v1  ;;  %vm611_vm1 = vcmp.eq.s32.totalorder %v2951_v58, %v3193_v38  ;;  %v2560_v38 = vld [vmem:[%s2726_s25 + $0x60] sm:$0xff]  ;;  %vm536_vm9 = vmor %vm440_vm5, %vm520_vm8  ;;  %vm443_vm5 = vcmp.eq.s32.totalorder %v2951_v58, %v3175_v53  ;;  %vm523_vm8 = vcmp.eq.s32.totalorder %v2951_v58, %v3107_v41 }
 0x143   : > { %vm627_vm6 = vmor %vm531_vm4, %vm611_vm1 }
 0x146   : > { %1530 = vperm.xlu0 %2497, %v1489_v27  }
 0x147   : > { %v3201_v48 = vpop.permute.xlu0 %430 }
 0x149   : > { %789 = vperm.xlu2 %2483, %v750_v63   ;;  %v3205_v47 = vpop.permute.xlu2 %600  ;;  %786 = vperm.xlu1 %2484, %v749_v37   ;;  %v3207_v24 = vpop.permute.xlu1 %573  ;;  %v4697_v37 = vmov 4  }
 0x14a   : > { %4693 = vst [vmem:[#allocation33_spill] sm:$0xff] %v3205_v47  ;;  %2362 = vmatmul.msk.f32.gmra.mxu0 %vm353_vm12, %v4671_v46  ;;  %v554_v47 = vadd.s32 24, %v2756_v8 }
 0x14b   : > { %4694 = vst [vmem:[#allocation34_spill] sm:$0xff] %v3207_v24 }
 0x14e   : > { %1539 = vperm.xlu0 %2497, %v1492_v30  }
 0x14f   : > { %v3217_v62 = vpop.permute.xlu0 %1414 }
 0x150   : > { %4695 = vst [vmem:[#allocation35_spill] sm:$0xff] %v3217_v62 }
 0x151   : > { %798 = vperm.xlu2 %2483, %v753_v50   ;;  %v3219_v27 = vpop.permute.xlu2 %609  ;;  %795 = vperm.xlu1 %2484, %v752_v52   ;;  %v3221_v63 = vpop.permute.xlu1 %579  ;;  %v4648_v50 = vmov 7  }
 0x152   : > { %4696 = vst [vmem:[#allocation36_spill] sm:$0xff] %v3219_v27  ;;  %2363 = vmatmul.msk.f32.gmra.mxu0 %vm354_vm15, %v4671_v46  ;;  %vm616_vm10 = vcmp.eq.s32.totalorder %v2951_v58, %v3221_v63 }
 0x153   : > { %vm632_vm1 = vmor %vm536_vm9, %vm616_vm10 }
 0x154   : > { %vm539_vm10 = vmor %vm443_vm5, %vm523_vm8  ;;  %vm446_vm5 = vcmp.eq.s32.totalorder %v2951_v58, %v3187_v55  ;;  %vm526_vm8 = vcmp.eq.s32.totalorder %v2951_v58, %v3119_v51 }
 0x156   : > { %2500 = vset.pattern.permute.xlu0 %v4697_v37 }
 0x157   : > { %570 = vperm.xlu0 %2500, %v549_v33   ;;  %v3228_v30 = vpop.permute.xlu0 %1429 }
 0x158   : > { %4698 = vst [vmem:[#allocation37_spill] sm:$0xff] %v3228_v30 }
 0x159   : > { %2486 = vset.pattern.permute.xlu2 %v4648_v50  ;;  %2485 = vset.pattern.permute.xlu1 %v4648_v50  ;;  %v3232_v52 = vpop.permute.xlu1 %588  ;;  %v841_v50 = vadd.s32 46, %v2759_v9 }
 0x15a   : > { %855 = vperm.xlu2 %2486, %v836_v60   ;;  %v3234_v27 = vpop.permute.xlu2 %666  ;;  %852 = vperm.xlu1 %2485, %v835_v16   ;;  %v557_v60 = vadd.s32 24, %v2768_v11  ;;  %v840_v16 = vadd.s32 46, %v2741_v4 }
 0x15b   : > { %4699 = vst [vmem:[#allocation38_spill] sm:$0xff] %v3234_v27 }
 0x15f   : > { %585 = vperm.xlu0 %2500, %v554_v47   ;;  %v3239_v33 = vpop.permute.xlu0 %1438 }
 0x160   : > { %4700 = vst [vmem:[#allocation39_spill] sm:$0xff] %v3239_v33  ;;  %v844_v33 = vadd.s32 46, %v2771_v12 }
 0x161   : > { %v3241_v30 = vpop.permute.xlu1 %597 }
 0x162   : > { %864 = vperm.xlu2 %2486, %v839_v21   ;;  %v3243_v62 = vpop.permute.xlu2 %672  ;;  %861 = vperm.xlu1 %2485, %v838_v3   ;;  %v560_v21 = vadd.s32 24, %v2780_v14  ;;  %v843_v3 = vadd.s32 46, %v2753_v7 }
 0x163   : > { %4701 = vst [vmem:[#allocation40_spill] sm:$0xff] %v3243_v62 }
 0x167   : > { %594 = vperm.xlu0 %2500, %v557_v60   ;;  %v3248_v39 = vpop.permute.xlu0 %1447 }
 0x168   : > { %4702 = vst [vmem:[#allocation41_spill] sm:$0xff] %v3248_v39  ;;  %v847_v39 = vadd.s32 46, %v2783_v15 }
 0x169   : > { %v3250_v24 = vpop.permute.xlu1 %606 }
 0x16a   : > { %870 = vperm.xlu2 %2486, %v841_v50   ;;  %v3252_v47 = vpop.permute.xlu2 %681  ;;  %867 = vperm.xlu1 %2485, %v840_v16   ;;  %v1575_v50 = vadd.s32 24, %v2884_v56  ;;  %v846_v16 = vadd.s32 46, %v2765_v10 }
 0x16b   : > { %4703 = vst [vmem:[#allocation42_spill] sm:$0xff] %v3252_v47 }
 0x16f   : > { %603 = vperm.xlu0 %2500, %v560_v21   ;;  %v3257_v62 = vpop.permute.xlu0 %1456 }
 0x170   : > { %4704 = vst [vmem:[#allocation43_spill] sm:$0xff] %v3257_v62  ;;  %v849_v62 = vadd.s32 46, %v2777_v13 }
 0x172   : > { %879 = vperm.xlu2 %2486, %v844_v33   ;;  %v3259_v4 = vpop.permute.xlu2 %690  ;;  %876 = vperm.xlu1 %2485, %v843_v3   ;;  %v3261_v60 = vpop.permute.xlu1 %663  ;;  %v1580_v33 = vadd.s32 24, %v2908_v18  ;;  %v850_v3 = vadd.s32 46, %v2790_v17  ;;  %v4650_v17 = vmov 8  }
 0x173   : > { %4705 = vst [vmem:[#allocation44_spill] sm:$0xff] %v3259_v4 }
 0x174   : > { %4706 = vst [vmem:[#allocation45_spill] sm:$0xff] %v3261_v60 }
 0x177   : > { %1596 = vperm.xlu0 %2500, %v1575_v50  }
 0x178   : > { %v3266_v54 = vpop.permute.xlu0 %471 }
 0x179   : > { %4707 = vst [vmem:[#allocation46_spill] sm:$0xff] %v3266_v54 }
 0x17a   : > { %888 = vperm.xlu2 %2486, %v847_v39   ;;  %v3268_v7 = vpop.permute.xlu2 %699  ;;  %885 = vperm.xlu1 %2485, %v846_v16   ;;  %v3270_v21 = vpop.permute.xlu1 %669  ;;  %v1583_v39 = vadd.s32 24, %v2925_v32  ;;  %v933_v16 = vadd.s32 48, %v2732_v2  ;;  %v935_v2 = vadd.s32 48, %v2729_v1  ;;  %v937_v1 = vadd.s32 48, %v2759_v9 }
 0x17b   : > { %4708 = vst [vmem:[#allocation47_spill] sm:$0xff] %v3268_v7  ;;  %v4744_v7 = vmov 8  }
 0x17c   : > { %4709 = vst [vmem:[#allocation48_spill] sm:$0xff] %v3270_v21  ;;  %v932_v21 = vadd.s32 48, %v2747_v6  ;;  %v934_v6 = vadd.s32 48, %v2744_v5 }
 0x17f   : > { %1611 = vperm.xlu0 %2500, %v1580_v33   ;;  %v1586_v33 = vadd.s32 24, %v2938_v43 }
 0x180   : > { %v3275_v60 = vpop.permute.xlu0 %486 }
 0x181   : > { %4710 = vst [vmem:[#allocation49_spill] sm:$0xff] %v3275_v60  ;;  %v3343_v60 = vld [vmem:[%s2726_s25 + $0x78] sm:$0xff] }
 0x182   : > { %897 = vperm.xlu2 %2486, %v850_v3   ;;  %894 = vperm.xlu1 %2485, %v849_v62   ;;  %v3277_v10 = vpop.permute.xlu1 %678 }
 0x183   : > { %4711 = vst [vmem:[#allocation50_spill] sm:$0xff] %v3277_v10  ;;  %v3279_v50 = vpop.permute.xlu2 %756 }
 0x184   : > { %vm803_vm11 = vcmp.eq.s32.totalorder %v2951_v58, %v3279_v50  ;;  %v4790_v50 = vmov 6  }
 0x187   : > { %1620 = vperm.xlu0 %2500, %v1583_v39  }
 0x188   : > { %v3284_v27 = vpop.permute.xlu0 %495 }
 0x189   : > { %4712 = vst [vmem:[#allocation51_spill] sm:$0xff] %v3284_v27  ;;  %v941_v27 = vadd.s32 48, %v2768_v11  ;;  %v943_v11 = vadd.s32 48, %v2783_v15 }
 0x18a   : > { %2488 = vset.pattern.permute.xlu2 %v4650_v17  ;;  %2487 = vset.pattern.permute.xlu1 %v4650_v17  ;;  %v3288_v13 = vpop.permute.xlu1 %687 }
 0x18b   : > { %4713 = vst [vmem:[#allocation52_spill] sm:$0xff] %v3288_v13  ;;  %954 = vperm.xlu2 %2488, %v933_v16   ;;  %v3290_v62 = vpop.permute.xlu2 %765  ;;  %951 = vperm.xlu1 %2487, %v932_v21   ;;  %v3302_v16 = vld [vmem:[%s2726_s25] sm:$0xff]  ;;  %v4717_v13 = vmov 5  }
 0x18c   : > { %4714 = vst [vmem:[#allocation53_spill] sm:$0xff] %v3290_v62  ;;  %v643_v21 = vadd.s32 34, %v3302_v16 }
 0x18f   : > { %1629 = vperm.xlu0 %2500, %v1586_v33   ;;  %v938_v33 = vadd.s32 48, %v2756_v8  ;;  %v940_v8 = vadd.s32 48, %v2771_v12 }
 0x190   : > { %v3295_v3 = vpop.permute.xlu0 %504 }
 0x191   : > { %4715 = vst [vmem:[#allocation54_spill] sm:$0xff] %v3295_v3 }
 0x192   : > { %v3297_v39 = vpop.permute.xlu1 %696 }
 0x193   : > { %4716 = vst [vmem:[#allocation55_spill] sm:$0xff] %v3297_v39  ;;  %960 = vperm.xlu2 %2488, %v935_v2   ;;  %v3299_v17 = vpop.permute.xlu2 %771  ;;  %957 = vperm.xlu1 %2487, %v934_v6   ;;  %v3315_v6 = vld [vmem:[%s2726_s25 + $0x28] sm:$0xff] }
 0x194   : > { %v648_v39 = vadd.s32 34, %v3315_v6 }
 0x197   : > { %2503 = vset.pattern.permute.xlu0 %v4717_v13  ;;  %v4742_v13 = vmov 1  }
 0x198   : > { %v3308_v5 = vpop.permute.xlu0 %513  ;;  %660 = vperm.xlu0 %2503, %v643_v21  }
 0x199   : > { %4718 = vst [vmem:[#allocation56_spill] sm:$0xff] %v3308_v5  ;;  %v944_v5 = vadd.s32 48, %v2780_v14  ;;  %v946_v14 = vadd.s32 48, %v3343_v60 }
 0x19a   : > { %v3310_v3 = vpop.permute.xlu1 %705 }
 0x19b   : > { %4719 = vst [vmem:[#allocation57_spill] sm:$0xff] %v3310_v3  ;;  %969 = vperm.xlu2 %2488, %v938_v33   ;;  %v3312_v2 = vpop.permute.xlu2 %780  ;;  %966 = vperm.xlu1 %2487, %v937_v1   ;;  %v3327_v1 = vld [vmem:[%s2726_s25 + $0x40] sm:$0xff] }
 0x19c   : > { %v651_v3 = vadd.s32 34, %v3327_v1 }
 0x1a0   : > { %675 = vperm.xlu0 %2503, %v648_v39   ;;  %v3320_v9 = vpop.permute.xlu0 %1497 }
 0x1a1   : > { %4720 = vst [vmem:[#allocation58_spill] sm:$0xff] %v3320_v9  ;;  %v848_v9 = vadd.s32 46, %v2555_v49  ;;  %v166_v49 = vld [vmem:[%s4630_s1 + $0xa8] sm:$0xff] }
 0x1a3   : > { %978 = vperm.xlu2 %2488, %v941_v27   ;;  %v3322_v21 = vpop.permute.xlu2 %789  ;;  %975 = vperm.xlu1 %2487, %v940_v8   ;;  %v3324_v33 = vpop.permute.xlu1 %762  ;;  %v3339_v8 = vld [vmem:[%s2726_s25 + $0x58] sm:$0xff] }
 0x1a4   : > { %4721 = vst [vmem:[#allocation59_spill] sm:$0xff] %v3324_v33  ;;  %v654_v10 = vadd.s32 34, %v3339_v8 }
 0x1a8   : > { %684 = vperm.xlu0 %2503, %v651_v3   ;;  %v3332_v12 = vpop.permute.xlu0 %1512  ;;  %v4725_v3 = vmov 0  }
 0x1a9   : > { %4722 = vst [vmem:[#allocation60_spill] sm:$0xff] %v3332_v12 }
 0x1ab   : > { %987 = vperm.xlu2 %2488, %v944_v5   ;;  %v3334_v27 = vpop.permute.xlu2 %798  ;;  %984 = vperm.xlu1 %2487, %v943_v11   ;;  %v3336_v39 = vpop.permute.xlu1 %768 }
 0x1ac   : > { %4723 = vst [vmem:[#allocation61_spill] sm:$0xff] %v3336_v39  ;;  %v3355_v39 = vld [vmem:[%s2726_s25 + $0x70] sm:$0xff] }
 0x1ad   : > { %v657_v62 = vadd.s32 34, %v3355_v39 }
 0x1b0   : > { %693 = vperm.xlu0 %2503, %v654_v10   ;;  %v3346_v15 = vpop.permute.xlu0 %1521  ;;  %v3361_v10 = vld [vmem:[%s2726_s25 + $0x98] sm:$0xff] }
 0x1b1   : > { %4724 = vst [vmem:[#allocation62_spill] sm:$0xff] %v3346_v15  ;;  %v1683_v15 = vadd.s32 34, %v3064_v22  ;;  %v1288_v12 = vadd.s32 119, %v3361_v10 }
 0x1b3   : > { %2489 = vset.pattern.permute.xlu2 %v4725_v3  ;;  %993 = vperm.xlu1 %2487, %v946_v14   ;;  %v3349_v5 = vpop.permute.xlu1 %777 }
 0x1b4   : > { %4726 = vst [vmem:[#allocation63_spill] sm:$0xff] %v3349_v5  ;;  %1222 = vperm.xlu2 %2489, %v3006_v19   ;;  %v3352_v11 = vpop.permute.xlu2 %855 }
 0x1b5   : > { %4727 = vst [vmem:[#allocation64_spill] sm:$0xff] %v3352_v11  ;;  %v1669_v11 = vadd.s32 34, %v3006_v19 }
 0x1b8   : > { %702 = vperm.xlu0 %2503, %v657_v62   ;;  %v3358_v33 = vpop.permute.xlu0 %1530  ;;  %v3374_v62 = vld [vmem:[%s2726_s25 + $0xa0] sm:$0xff] }
 0x1b9   : > { %4728 = vst [vmem:[#allocation65_spill] sm:$0xff] %v3358_v33  ;;  %v1769_v55 = vadd.s32 40, %v3374_v62 }
 0x1bb   : > { %2490 = vset.pattern.permute.xlu1 %v4725_v3  ;;  %v3364_v57 = vpop.permute.xlu1 %786 }
 0x1bc   : > { %4729 = vst [vmem:[#allocation66_spill] sm:$0xff] %v3364_v57  ;;  %1231 = vperm.xlu2 %2489, %v3361_v10   ;;  %v3367_v14 = vpop.permute.xlu2 %864  ;;  %1228 = vperm.xlu1 %2490, %v2884_v56  }
 0x1bd   : > { %4730 = vst [vmem:[#allocation67_spill] sm:$0xff] %v3367_v14 }
 0x1c0   : > { %1686 = vperm.xlu0 %2503, %v1669_v11   ;;  %v3371_v54 = vpop.permute.xlu0 %1539 }
 0x1c1   : > { %4731 = vst [vmem:[#allocation68_spill] sm:$0xff] %v3371_v54  ;;  %v1677_v54 = vadd.s32 34, %v3032_v35 }
 0x1c3   : > { %v3376_v33 = vpop.permute.xlu1 %795 }
 0x1c4   : > { %4732 = vst [vmem:[#allocation69_spill] sm:$0xff] %v3376_v33  ;;  %1237 = vperm.xlu2 %2489, %v3018_v20   ;;  %v3379_v3 = vpop.permute.xlu2 %870  ;;  %1234 = vperm.xlu1 %2490, %v3374_v62  }
 0x1c5   : > { %4733 = vst [vmem:[#allocation70_spill] sm:$0xff] %v3379_v3 }
 0x1c8   : > { %1701 = vperm.xlu0 %2503, %v1674_v26  }
 0x1c9   : > { %v3383_v14 = vpop.permute.xlu0 %570 }
 0x1ca   : > { %4734 = vst [vmem:[#allocation71_spill] sm:$0xff] %v3383_v14 }
 0x1cc   : > { %1246 = vperm.xlu2 %2489, %v3032_v35   ;;  %v3386_v56 = vpop.permute.xlu2 %879  ;;  %1243 = vperm.xlu1 %2490, %v2908_v18   ;;  %v3389_v11 = vpop.permute.xlu1 %852 }
 0x1cd   : > { %4735 = vst [vmem:[#allocation72_spill] sm:$0xff] %v3386_v56  ;;  %v1680_v56 = vadd.s32 34, %v3047_v23  ;;  %vm899_vm0 = vcmp.eq.s32.totalorder %v2951_v58, %v3389_v11  ;;  %v2653_v11 = vmov 0.0  }
 0x1d0   : > { %1710 = vperm.xlu0 %2503, %v1677_v54  }
 0x1d1   : > { %v3392_v3 = vpop.permute.xlu0 %585 }
 0x1d2   : > { %4736 = vst [vmem:[#allocation73_spill] sm:$0xff] %v3392_v3 }
 0x1d4   : > { %1255 = vperm.xlu2 %2489, %v3047_v23   ;;  %v3395_v33 = vpop.permute.xlu2 %888  ;;  %1252 = vperm.xlu1 %2490, %v2925_v32   ;;  %v3398_v26 = vpop.permute.xlu1 %861  ;;  %v3413_v32 = vld [vmem:[%s2726_s25 + $0x88] sm:$0xff] }
 0x1d5   : > { %4737 = vst [vmem:[#allocation74_spill] sm:$0xff] %v3395_v33 }
 0x1d6   : > { %4738 = vst [vmem:[#allocation75_spill] sm:$0xff] %v3398_v26  ;;  %v1286_v26 = vadd.s32 119, %v3413_v32 }
 0x1d8   : > { %1719 = vperm.xlu0 %2503, %v1680_v56   ;;  %v1285_v56 = vadd.s32 119, %v3006_v19 }
 0x1d9   : > { %v3401_v18 = vpop.permute.xlu0 %594 }
 0x1da   : > { %4739 = vst [vmem:[#allocation76_spill] sm:$0xff] %v3401_v18 }
 0x1dc   : > { %1264 = vperm.xlu2 %2489, %v3064_v22   ;;  %v3404_v14 = vpop.permute.xlu2 %897  ;;  %1261 = vperm.xlu1 %2490, %v2938_v43   ;;  %v3407_v54 = vpop.permute.xlu1 %867 }
 0x1dd   : > { %4740 = vst [vmem:[#allocation77_spill] sm:$0xff] %v3404_v14 }
 0x1e0   : > { %1728 = vperm.xlu0 %2503, %v1683_v15   ;;  %v931_v15 = vadd.s32 48, %v3302_v16 }
 0x1e1   : > { %v3410_v33 = vpop.permute.xlu0 %603 }
 0x1e2   : > { %4741 = vst [vmem:[#allocation78_spill] sm:$0xff] %v3410_v33  ;;  %v1289_v33 = vadd.s32 119, %v3374_v62 }
 0x1e4   : > { %2493 = vset.pattern.permute.xlu2 %v4742_v13  ;;  %2492 = vset.pattern.permute.xlu1 %v4742_v13  ;;  %v3419_v14 = vpop.permute.xlu1 %876 }
 0x1e5   : > { %1305 = vperm.xlu2 %2493, %v1286_v26   ;;  %v3421_v43 = vpop.permute.xlu2 %954  ;;  %1302 = vperm.xlu1 %2492, %v1285_v56   ;;  %v936_v26 = vadd.s32 48, %v3315_v6  ;;  %v3437_v56 = vld [vmem:[%s2726_s25 + $0xb0] sm:$0xff] }
 0x1e6   : > { %4743 = vst [vmem:[#allocation79_spill] sm:$0xff] %v3421_v43  ;;  %v1290_v43 = vadd.s32 119, %v3018_v20 }
 0x1e8   : > { %2506 = vset.pattern.permute.xlu0 %v4744_v7 }
 0x1e9   : > { %948 = vperm.xlu0 %2506, %v931_v15   ;;  %v3425_v57 = vpop.permute.xlu0 %1596  ;;  %v1291_v15 = vadd.s32 119, %v3437_v56 }
 0x1ea   : > { %4745 = vst [vmem:[#allocation80_spill] sm:$0xff] %v3425_v57 }
 0x1ec   : > { %v3429_v36 = vpop.permute.xlu1 %885 }
 0x1ed   : > { %1314 = vperm.xlu2 %2493, %v1289_v33   ;;  %v3431_v13 = vpop.permute.xlu2 %960  ;;  %1311 = vperm.xlu1 %2492, %v1288_v12   ;;  %v939_v12 = vadd.s32 48, %v3327_v1 }
 0x1ee   : > { %4746 = vst [vmem:[#allocation81_spill] sm:$0xff] %v3431_v13 }
 0x1f1   : > { %963 = vperm.xlu0 %2506, %v936_v26   ;;  %v3434_v16 = vpop.permute.xlu0 %1611  ;;  %v3449_v26 = vld [vmem:[%s2726_s25 + $0xc8] sm:$0xff] }
 0x1f2   : > { %4747 = vst [vmem:[#allocation82_spill] sm:$0xff] %v3434_v16  ;;  %v1294_v13 = vadd.s32 119, %v3449_v26  ;;  %v1293_v16 = vadd.s32 119, %v3032_v35 }
 0x1f3   : > { %4750 = vst [vmem:[#allocation85_spill] sm:$0xff] %v3449_v26 }
 0x1f4   : > { %v3441_v57 = vpop.permute.xlu1 %894 }
 0x1f5   : > { %1320 = vperm.xlu2 %2493, %v1291_v15   ;;  %v3443_v33 = vpop.permute.xlu2 %969  ;;  %1317 = vperm.xlu1 %2492, %v1290_v43   ;;  %v942_v43 = vadd.s32 48, %v3339_v8  ;;  %v3471_v8 = vld [vmem:[%s2726_s25 + $0xf8] sm:$0xff] }
 0x1f6   : > { %4748 = vst [vmem:[#allocation83_spill] sm:$0xff] %v3443_v33 }
 0x1f7   : > { %4757 = vst [vmem:[#allocation92_spill] sm:$0xff] %v3471_v8 }
 0x1f9   : > { %972 = vperm.xlu0 %2506, %v939_v12   ;;  %v3446_v6 = vpop.permute.xlu0 %1620  ;;  %v3461_v12 = vld [vmem:[%s2726_s25 + $0xe0] sm:$0xff] }
 0x1fa   : > { %4749 = vst [vmem:[#allocation84_spill] sm:$0xff] %v3446_v6  ;;  %v1297_v33 = vadd.s32 119, %v3461_v12  ;;  %v1296_v6 = vadd.s32 119, %v3047_v23 }
 0x1fb   : > { %4754 = vst [vmem:[#allocation89_spill] sm:$0xff] %v3461_v12 }
 0x1fd   : > { %1329 = vperm.xlu2 %2493, %v1294_v13   ;;  %v3453_v4 = vpop.permute.xlu2 %978  ;;  %1326 = vperm.xlu1 %2492, %v1293_v16   ;;  %v3455_v15 = vpop.permute.xlu1 %951  ;;  %v945_v16 = vadd.s32 48, %v3355_v39 }
 0x1fe   : > { %4751 = vst [vmem:[#allocation86_spill] sm:$0xff] %v3453_v4  ;;  %v1299_v4 = vadd.s32 119, %v3064_v22 }
 0x1ff   : > { %4752 = vst [vmem:[#allocation87_spill] sm:$0xff] %v3455_v15 }
 0x201   : > { %981 = vperm.xlu0 %2506, %v942_v43   ;;  %v3458_v1 = vpop.permute.xlu0 %1629  ;;  %v1300_v43 = vadd.s32 119, %v3471_v8 }
 0x202   : > { %4753 = vst [vmem:[#allocation88_spill] sm:$0xff] %v3458_v1 }
 0x205   : > { %1338 = vperm.xlu2 %2493, %v1297_v33   ;;  %v3465_v5 = vpop.permute.xlu2 %987  ;;  %1335 = vperm.xlu1 %2492, %v1296_v6   ;;  %v3467_v13 = vpop.permute.xlu1 %957  ;;  %v1957_v33 = vadd.s32 48, %v3006_v19 }
 0x206   : > { %4755 = vst [vmem:[#allocation90_spill] sm:$0xff] %v3465_v5  ;;  %v3489_v5 = vld [vmem:[%s2726_s25 + $0x90] sm:$0xff] }
 0x207   : > { %4756 = vst [vmem:[#allocation91_spill] sm:$0xff] %v3467_v13 }
 0x208   : > { %4761 = vst [vmem:[#allocation95_spill] sm:$0xff] %v3489_v5 }
 0x209   : > { %990 = vperm.xlu0 %2506, %v945_v16   ;;  %v4759_v16 = vmov 2  }
 0x20a   : > { %v3475_v1 = vpop.permute.xlu0 %660 }
 0x20b   : > { %vm707_vm3 = vcmp.eq.s32.totalorder %v2951_v58, %v3475_v1  ;;  %v751_v1 = vadd.s32 40, %v2560_v38 }
 0x20c   : > { %vm723_vm7 = vmor %vm627_vm6, %vm707_vm3 }
 0x20d   : > { %1347 = vperm.xlu2 %2493, %v1300_v43   ;;  %1344 = vperm.xlu1 %2492, %v1299_v4   ;;  %v3477_v23 = vpop.permute.xlu1 %966  ;;  %v2550_v43 = vld [vmem:[%s2726_s25 + $0x10] sm:$0xff]  ;;  %vm819_vm13 = vmor %vm723_vm7, %vm803_vm11  ;;  %vm619_vm11 = vcmp.eq.s32.totalorder %v2951_v58, %v3232_v52 }
 0x20e   : > { %4758 = vst [vmem:[#allocation93_spill] sm:$0xff] %v3477_v23  ;;  %v3480_v6 = vpop.permute.xlu2 %1222  ;;  %v837_v23 = vadd.s32 46, %v2550_v43  ;;  %v176_v43 = vld [vmem:[%s4630_s1 + $0xf8] sm:$0xff]  ;;  %vm915_vm4 = vmor %vm819_vm13, %vm899_vm0  ;;  %vm1270_vm13 = vcmp.eq.s32.totalorder %v2951_v58, %v2971_v25  ;;  %vm904_vm0 = vcmp.eq.s32.totalorder %v2951_v58, %v3407_v54  ;;  %v3687_v52 = vld [vmem:[%s2726_s25 + $0xf0] sm:$0xff]  ;;  %v1490_v25 = vadd.s32 12, %v3569_v29 }
 0x20f   : > { %1124 = vmatpush.msra.mxu1 %v176_v43  ;;  %2150 = vmatpush.msra.mxu3 %v176_v43  ;;  %v2553_v43 = vld [vmem:[%s2726_s25 + $0x50] sm:$0xff]  ;;  %vm1269_vm14 = vcmp.eq.s32.totalorder %v2951_v58, %v3480_v6 }
 0x210   : > { %v845_v3 = vadd.s32 46, %v2553_v43  ;;  %v170_v43 = vld [vmem:[%s4630_s1 + $0xc8] sm:$0xff] }
 0x211   : > { %1974 = vperm.xlu0 %2506, %v1957_v33   ;;  %v4762_v33 = vmov 7  }
 0x212   : > { %v3482_v39 = vpop.permute.xlu0 %675 }
 0x213   : > { %vm712_vm2 = vcmp.eq.s32.totalorder %v2951_v58, %v3482_v39 }
 0x214   : > { %vm3659_vm7 = vmor %vm632_vm1, %vm712_vm2 }
 0x215   : > { %2496 = vset.pattern.permute.xlu2 %v4759_v16  ;;  %2495 = vset.pattern.permute.xlu1 %v4759_v16  ;;  %v3486_v22 = vpop.permute.xlu1 %975  ;;  %vm635_vm1 = vmor %vm539_vm10, %vm619_vm11  ;;  %vm622_vm11 = vcmp.eq.s32.totalorder %v2951_v58, %v3241_v30  ;;  %v1574_v30 = vadd.s32 24, %v3413_v32 }
 0x216   : > { %4760 = vst [vmem:[#allocation94_spill] sm:$0xff] %v3486_v22  ;;  %1420 = vperm.xlu2 %2496, %v3489_v5   ;;  %v3492_v4 = vpop.permute.xlu2 %1231  ;;  %1417 = vperm.xlu1 %2495, %v3413_v32   ;;  %v2551_v22 = vld [vmem:[%s2726_s25 + $0x38] sm:$0xff]  ;;  %vm542_vm10 = vmor %vm446_vm5, %vm526_vm8  ;;  %vm449_vm5 = vcmp.eq.s32.totalorder %v2951_v58, %v3201_v48 }
 0x217   : > { %v842_v18 = vadd.s32 46, %v2551_v22  ;;  %v173_v22 = vld [vmem:[%s4630_s1 + $0xe0] sm:$0xff] }
 0x219   : > { %2509 = vset.pattern.permute.xlu0 %v4762_v33 }
 0x21a   : > { %858 = vperm.xlu0 %2509, %v837_v23   ;;  %v3497_v13 = vpop.permute.xlu0 %684  ;;  %v175_v23 = vld [vmem:[%s4630_s1 + $0xf0] sm:$0xff] }
 0x21b   : > { %1125 = vmatpush.msra.mxu1 %v175_v23  ;;  %2151 = vmatpush.msra.mxu3 %v175_v23  ;;  %v172_v23 = vld [vmem:[%s4630_s1 + $0xd8] sm:$0xff]  ;;  %vm715_vm2 = vcmp.eq.s32.totalorder %v2951_v58, %v3497_v13 }
 0x21d   : > { %v3499_v15 = vpop.permute.xlu1 %984  ;;  %1126 = vmatpush.msra.mxu1 %v174_v44  ;;  %2152 = vmatpush.msra.mxu3 %v174_v44  ;;  %v171_v44 = vld [vmem:[%s4630_s1 + $0xd0] sm:$0xff] }
 0x21e   : > { %4763 = vst [vmem:[#allocation96_spill] sm:$0xff] %v3499_v15  ;;  %1426 = vperm.xlu2 %2496, %v3374_v62   ;;  %v3502_v16 = vpop.permute.xlu2 %1237  ;;  %1423 = vperm.xlu1 %2495, %v3361_v10  }
 0x21f   : > { %4764 = vst [vmem:[#allocation97_spill] sm:$0xff] %v3502_v16  ;;  %1127 = vmatpush.msra.mxu1 %v173_v22  ;;  %2153 = vmatpush.msra.mxu3 %v173_v22  ;;  %v169_v22 = vld [vmem:[%s4630_s1 + $0xc0] sm:$0xff] }
 0x221   : > { %1128 = vmatpush.msra.mxu1 %v172_v23  ;;  %2154 = vmatpush.msra.mxu3 %v172_v23 }
 0x222   : > { %873 = vperm.xlu0 %2509, %v842_v18   ;;  %v3512_v15 = vpop.permute.xlu0 %693 }
 0x223   : > { %1129 = vmatpush.msra.mxu1 %v171_v44  ;;  %2155 = vmatpush.msra.mxu3 %v171_v44  ;;  %v168_v44 = vld [vmem:[%s4630_s1 + $0xb8] sm:$0xff] }
 0x225   : > { %v3520_v47 = vpop.permute.xlu1 %993  ;;  %1130 = vmatpush.msra.mxu1 %v170_v43  ;;  %2156 = vmatpush.msra.mxu3 %v170_v43  ;;  %v167_v43 = vld [vmem:[%s4630_s1 + $0xb0] sm:$0xff] }
 0x226   : > { %4765 = vst [vmem:[#allocation98_spill] sm:$0xff] %v3520_v47  ;;  %1435 = vperm.xlu2 %2496, %v3523_v42   ;;  %v3526_v18 = vpop.permute.xlu2 %1246  ;;  %1432 = vperm.xlu1 %2495, %v3437_v56  }
 0x227   : > { %4766 = vst [vmem:[#allocation99_spill] sm:$0xff] %v3526_v18  ;;  %v3545_v18 = vld [vmem:[%s2726_s25 + $0xd0] sm:$0xff]  ;;  %1131 = vmatpush.msra.mxu1 %v169_v22  ;;  %2157 = vmatpush.msra.mxu3 %v169_v22  ;;  %v165_v22 = vld [vmem:[%s4630_s1 + $0xa0] sm:$0xff] }
 0x228   : > { %v1487_v63 = vadd.s32 12, %v3545_v18 }
 0x229   : > { %1132 = vmatpush.msra.mxu1 %v168_v44  ;;  %2158 = vmatpush.msra.mxu3 %v168_v44 }
 0x22a   : > { %882 = vperm.xlu0 %2509, %v845_v3   ;;  %v3536_v47 = vpop.permute.xlu0 %702 }
 0x22b   : > { %1133 = vmatpush.msra.mxu1 %v167_v43  ;;  %2159 = vmatpush.msra.mxu3 %v167_v43  ;;  %v164_v43 = vld [vmem:[%s4630_s1 + $0x98] sm:$0xff] }
 0x22d   : > { %1134 = vmatpush.msra.mxu1 %v166_v49  ;;  %2160 = vmatpush.msra.mxu3 %v166_v49 }
 0x22e   : > { %1444 = vperm.xlu2 %2496, %v3545_v18   ;;  %v3548_v23 = vpop.permute.xlu2 %1255  ;;  %1441 = vperm.xlu1 %2495, %v3449_v26   ;;  %v3551_v3 = vpop.permute.xlu1 %1228  ;;  %v1477_v26 = vadd.s32 12, %v3006_v19 }
 0x22f   : > { %4767 = vst [vmem:[#allocation100_spill] sm:$0xff] %v3548_v23  ;;  %1135 = vmatpush.msra.mxu1 %v165_v22  ;;  %2161 = vmatpush.msra.mxu3 %v165_v22  ;;  %v162_v22 = vld [vmem:[%s4630_s1 + $0x88] sm:$0xff] }
 0x231   : > { %1136 = vmatpush.msra.mxu1 %v164_v43  ;;  %2162 = vmatpush.msra.mxu3 %v164_v43  ;;  %v161_v43 = vld [vmem:[%s4630_s1 + $0x80] sm:$0xff] }
 0x232   : > { %891 = vperm.xlu0 %2509, %v848_v9   ;;  %v3560_v23 = vpop.permute.xlu0 %1686 }
 0x233   : > { %4768 = vst [vmem:[#allocation101_spill] sm:$0xff] %v3560_v23  ;;  %v1863_v23 = vadd.s32 46, %v3489_v5 }
 0x236   : > { %1453 = vperm.xlu2 %2496, %v3569_v29   ;;  %v3572_v44 = vpop.permute.xlu2 %1264  ;;  %1450 = vperm.xlu1 %2495, %v3461_v12   ;;  %v3575_v9 = vpop.permute.xlu1 %1234  ;;  %v163_v12 = vld [vmem:[%s4630_s1 + $0x90] sm:$0xff] }
 0x237   : > { %4769 = vst [vmem:[#allocation102_spill] sm:$0xff] %v3572_v44  ;;  %1137 = vmatpush.msra.mxu1 %v163_v12  ;;  %2163 = vmatpush.msra.mxu3 %v163_v12  ;;  %v2557_v12 = vld [vmem:[%s2726_s25 + $0x8] sm:$0xff]  ;;  %v1479_v44 = vadd.s32 12, %v3489_v5 }
 0x239   : > { %1138 = vmatpush.msra.mxu1 %v162_v22  ;;  %2164 = vmatpush.msra.mxu3 %v162_v22  ;;  %v1480_v22 = vadd.s32 12, %v3361_v10 }
 0x23a   : > { %1884 = vperm.xlu0 %2509, %v1863_v23   ;;  %v3581_v49 = vpop.permute.xlu0 %1701 }
 0x23b   : > { %4770 = vst [vmem:[#allocation103_spill] sm:$0xff] %v3581_v49  ;;  %v740_v49 = vadd.s32 40, %v2557_v12  ;;  %1139 = vmatpush.msra.mxu1 %v161_v43  ;;  %2165 = vmatpush.msra.mxu3 %v161_v43  ;;  %v2558_v12 = vld [vmem:[%s2726_s25 + $0x30] sm:$0xff] }
 0x23c   : > { %v745_v43 = vadd.s32 40, %v2558_v12  ;;  %v754_v12 = vadd.s32 40, %v3343_v60  ;;  %v1491_v60 = vadd.s32 12, %v3687_v52 }
 0x23e   : > { %2498 = vset.pattern.permute.xlu2 %v4677_v45  ;;  %1459 = vperm.xlu1 %2495, %v3471_v8   ;;  %v3595_v23 = vpop.permute.xlu1 %1243 }
 0x23f   : > { %4771 = vst [vmem:[#allocation104_spill] sm:$0xff] %v3595_v23  ;;  %1494 = vperm.xlu2 %2498, %v1477_v26   ;;  %v3597_v19 = vpop.permute.xlu2 %1305 }
 0x240   : > { %vm1350_vm9 = vcmp.eq.s32.totalorder %v2951_v58, %v3597_v19 }
 0x242   : > { %2512 = vset.pattern.permute.xlu0 %v4687_v31  ;;  %v3601_v16 = vpop.permute.xlu0 %1710 }
 0x243   : > { %4772 = vst [vmem:[#allocation105_spill] sm:$0xff] %v3601_v16  ;;  %759 = vperm.xlu0 %2512, %v740_v49   ;;  %v1482_v49 = vadd.s32 12, %v3018_v20  ;;  %v1481_v16 = vadd.s32 12, %v3374_v62  ;;  %v1485_v20 = vadd.s32 12, %v3032_v35 }
 0x246   : > { %2499 = vset.pattern.permute.xlu1 %v4677_v45  ;;  %v3606_v26 = vpop.permute.xlu1 %1252  ;;  %v2559_v45 = vld [vmem:[%s2726_s25 + $0x48] sm:$0xff] }
 0x247   : > { %1503 = vperm.xlu2 %2498, %v1480_v22   ;;  %v3608_v8 = vpop.permute.xlu2 %1314  ;;  %1500 = vperm.xlu1 %2499, %v1479_v44   ;;  %v748_v22 = vadd.s32 40, %v2559_v45  ;;  %v4785_v45 = vld [vmem:[#allocation102_spill] sm:$0xff] }
 0x24a   : > { %v3611_v23 = vpop.permute.xlu0 %1719 }
 0x24b   : > { %774 = vperm.xlu0 %2512, %v745_v43   ;;  %v1868_v43 = vadd.s32 46, %v3523_v42 }
 0x24e   : > { %v3615_v31 = vpop.permute.xlu1 %1261 }
 0x24f   : > { %1509 = vperm.xlu2 %2498, %v1482_v49   ;;  %v3617_v5 = vpop.permute.xlu2 %1320  ;;  %1506 = vperm.xlu1 %2499, %v1481_v16   ;;  %v1484_v16 = vadd.s32 12, %v3523_v42 }
 0x252   : > { %v3624_v44 = vpop.permute.xlu0 %1728 }
 0x253   : > { %783 = vperm.xlu0 %2512, %v748_v22  }
 0x257   : > { %1518 = vperm.xlu2 %2498, %v1485_v20   ;;  %v3636_v59 = vpop.permute.xlu2 %1329  ;;  %1515 = vperm.xlu1 %2499, %v1484_v16   ;;  %v1303_v61 = vpop.permute.xlu1 %1302  ;;  %v4786_v20 = vld [vmem:[#allocation97_spill] sm:$0xff] }
 0x258   : > { %vm1349_vm12 = vcmp.eq.s32.totalorder %v2951_v58, %v1303_v61  ;;  %v4789_v61 = vld [vmem:[#allocation85_spill] sm:$0xff] }
 0x259   : > { %vm1365_vm15 = vmor %vm1269_vm14, %vm1349_vm12  ;;  %vm808_vm12 = vcmp.eq.s32.totalorder %v2951_v58, %v3299_v17  ;;  %v4775_v17 = vmov 0  ;;  %v1774_v38 = vadd.s32 40, %v4789_v61 }
 0x25a   : > { %2396 = vmatmul.msk.f32.vlgmr.msra.gmra.mxu2 %vm1365_vm15, %v4671_v46  ;;  %vm824_vm14 = vmor %vm3659_vm7, %vm808_vm12  ;;  %vm811_vm12 = vcmp.eq.s32.totalorder %v2951_v58, %v3312_v2  ;;  %v3721_v2 = vld [vmem:[%s2726_s25 + $0x80] sm:$0xff] }
 0x25b   : > { %792 = vperm.xlu0 %2512, %v751_v1   ;;  %v949_v35 = vpop.permute.xlu0 %948  ;;  %vm1366_vm15 = vmor %vm1270_vm13, %vm1350_vm9  ;;  %vm1271_vm9 = vcmp.eq.s32.totalorder %v2951_v58, %v3551_v3  ;;  %vm1351_vm13 = vcmp.eq.s32.totalorder %v2951_v58, %v3090_v40  ;;  %v1573_v40 = vadd.s32 24, %v3721_v2 }
 0x25c   : > { %vm995_vm3 = vcmp.eq.s32.totalorder %v2951_v58, %v949_v35  ;;  %vm731_vm7 = vmor %vm635_vm1, %vm715_vm2  ;;  %vm718_vm2 = vcmp.eq.s32.totalorder %v2951_v58, %v3512_v15  ;;  %v1582_v35 = vadd.s32 24, %v4789_v61  ;;  %v1584_v15 = vadd.s32 24, %v3652_v34  ;;  %v4802_v34 = vld [vmem:[#allocation20_spill] sm:$0xff] }
 0x25d   : > { %vm1011_vm6 = vmor %vm915_vm4, %vm995_vm3 }
 0x25e   : > { %v2332_v6 = vsel %vm1011_vm6, 1.0, %v2653_v11  ;;  %vm920_vm4 = vmor %vm824_vm14, %vm904_vm0  ;;  %vm907_vm0 = vcmp.eq.s32.totalorder %v2951_v58, %v3419_v14  ;;  %v4777_v14 = vmov 0 }
 0x25f   : > { %1527 = vperm.xlu2 %2498, %v1488_v0   ;;  %v3668_v39 = vpop.permute.xlu2 %1338  ;;  %1524 = vperm.xlu1 %2499, %v1487_v63   ;;  %v3670_v53 = vpop.permute.xlu1 %1311  ;;  %vm827_vm14 = vmor %vm731_vm7, %vm811_vm12  ;;  %vm625_vm12 = vcmp.eq.s32.totalorder %v2951_v58, %v3250_v24  ;;  %v3810_v0 = vld [vmem:[%s2726_s25 + $0xc0] sm:$0xff] }
 0x260   : > { %1140 = vmatmul.f32.vlgmr.msra.gmra.mxu1 %v2332_v6  ;;  %vm638_vm1 = vmor %vm542_vm10, %vm622_vm11  ;;  %vm1352_vm10 = vcmp.eq.s32.totalorder %v2951_v58, %v3670_v53  ;;  %v1581_v63 = vadd.s32 24, %v3810_v0  ;;  %v4791_v6 = vld [vmem:[#allocation5_spill] sm:$0xff] }
 0x261   : > { %vm3730_vm8 = vmor %vm638_vm1, %vm718_vm2  ;;  %vm910_vm1 = vcmp.eq.s32.totalorder %v2951_v58, %v3429_v36 }
 0x262   : > { %2397 = vmatmul.msk.f32.gmra.mxu2 %vm1366_vm15, %v4671_v46  ;;  %vm1367_vm15 = vmor %vm1271_vm9, %vm1351_vm13  ;;  %vm529_vm9 = vcmp.eq.s32.totalorder %v2951_v58, %v3133_v28  ;;  %vm814_vm13 = vcmp.eq.s32.totalorder %v2951_v58, %v3322_v21  ;;  %v3749_v28 = vld [vmem:[%s2726_s25 + $0xa8] sm:$0xff]  ;;  %v1576_v21 = vadd.s32 24, %v3361_v10 }
 0x263   : > { %801 = vperm.xlu0 %2512, %v754_v12   ;;  %v964_v41 = vpop.permute.xlu0 %963  ;;  %vm545_vm11 = vmor %vm449_vm5, %vm529_vm9  ;;  %v1962_v19 = vadd.s32 48, %v3749_v28  ;;  %v1578_v49 = vadd.s32 24, %v3749_v28 }
 0x264   : > { %vm1000_vm3 = vcmp.eq.s32.totalorder %v2951_v58, %v964_v41  ;;  %vm641_vm2 = vmor %vm545_vm11, %vm625_vm12  ;;  %vm817_vm11 = vcmp.eq.s32.totalorder %v2951_v58, %v3334_v27  ;;  %v1579_v27 = vadd.s32 24, %v3437_v56  ;;  %v4792_v41 = vld [vmem:[#allocation58_spill] sm:$0xff] }
 0x265   : > { %vm3694_vm6 = vmor %vm920_vm4, %vm1000_vm3 }
 0x266   : > { %v4776_v17 = vsel %vm3694_vm6, 4294967295, %v4775_v17  ;;  %vm923_vm4 = vmor %vm827_vm14, %vm907_vm0  ;;  %vm1272_vm14 = vcmp.eq.s32.totalorder %v2951_v58, %v3492_v4  ;;  %v4781_v4 = vmov 0 }
 0x267   : > { %1536 = vperm.xlu2 %2498, %v1491_v60   ;;  %v3702_v54 = vpop.permute.xlu2 %1347  ;;  %1533 = vperm.xlu1 %2499, %v1490_v25   ;;  %v3704_v13 = vpop.permute.xlu1 %1317  ;;  %vm1368_vm0 = vmor %vm1272_vm14, %vm1352_vm10  ;;  %vm1353_vm10 = vcmp.eq.s32.totalorder %v2951_v58, %v3608_v8  ;;  %v4793_v60 = vld [vmem:[#allocation26_spill] sm:$0xff]  ;;  %v4796_v25 = vld [vmem:[#allocation73_spill] sm:$0xff] }
 0x26a   : > { %2398 = vmatmul.msk.f32.gmra.mxu2 %vm1367_vm15, %v4671_v46  ;;  %vm830_vm15 = vmor %vm3730_vm8, %vm814_vm13  ;;  %vm1273_vm13 = vcmp.eq.s32.totalorder %v2951_v58, %v3575_v9  ;;  %v4783_v9 = vmov 0 }
 0x26b   : > { %1794 = vperm.xlu0 %2512, %v1769_v55   ;;  %v973_v51 = vpop.permute.xlu0 %972  ;;  %vm926_vm5 = vmor %vm830_vm15, %vm910_vm1  ;;  %vm913_vm15 = vcmp.eq.s32.totalorder %v2951_v58, %v3441_v57  ;;  %v4797_v55 = vld [vmem:[#allocation11_spill] sm:$0xff] }
 0x26c   : > { %vm1003_vm3 = vcmp.eq.s32.totalorder %v2951_v58, %v973_v51  ;;  %vm1369_vm14 = vmor %vm1273_vm13, %vm1353_vm10  ;;  %vm1275_vm13 = vcmp.eq.s32.totalorder %v2951_v58, %v4791_v6  ;;  %v4809_v6 = vld [vmem:[#allocation44_spill] sm:$0xff] }
 0x26d   : > { %vm3726_vm7 = vmor %vm923_vm4, %vm1003_vm3  ;;  %vm721_vm3 = vcmp.eq.s32.totalorder %v2951_v58, %v3536_v47 }
 0x26e   : > { %v4778_v14 = vsel %vm3726_vm7, 4294967295, %v4777_v14  ;;  %vm737_vm9 = vmor %vm641_vm2, %vm721_vm3  ;;  %vm1354_vm3 = vcmp.eq.s32.totalorder %v2951_v58, %v3704_v13  ;;  %v1967_v13 = vadd.s32 48, %v3545_v18 }
 0x26f   : > { %2502 = vset.pattern.permute.xlu2 %v4697_v37  ;;  %2501 = vset.pattern.permute.xlu1 %v4697_v37  ;;  %v3740_v3 = vpop.permute.xlu1 %1326  ;;  %v1577_v37 = vadd.s32 24, %v3374_v62  ;;  %vm833_vm12 = vmor %vm737_vm9, %vm817_vm11  ;;  %vm1274_vm9 = vcmp.eq.s32.totalorder %v2951_v58, %v4786_v20  ;;  %v4806_v20 = vld [vmem:[#allocation92_spill] sm:$0xff] }
 0x270   : > { %1593 = vperm.xlu2 %2502, %v1574_v30   ;;  %v3746_v48 = vpop.permute.xlu2 %1420  ;;  %1590 = vperm.xlu1 %2501, %v1573_v40   ;;  %vm929_vm1 = vmor %vm833_vm12, %vm913_vm15  ;;  %vm1355_vm12 = vcmp.eq.s32.totalorder %v2951_v58, %v3617_v5  ;;  %v4798_v30 = vld [vmem:[#allocation89_spill] sm:$0xff]  ;;  %v2566_v5 = vld [vmem:[%s2726_s25 + $0x88] sm:$0xff] }
 0x271   : > { %vm1370_vm11 = vmor %vm1274_vm9, %vm1354_vm3  ;;  %v1585_v40 = vadd.s32 24, %v4798_v30  ;;  %v1862_v16 = vadd.s32 46, %v2566_v5 }
 0x272   : > { %2399 = vmatmul.msk.f32.gmra.mxu2 %vm1368_vm0, %v4671_v46  ;;  %vm1371_vm15 = vmor %vm1275_vm13, %vm1355_vm12 }
 0x273   : > { %2517 = vset.pattern.permute.xlu0 %v4744_v7  ;;  %v982_v24 = vpop.permute.xlu0 %981 }
 0x274   : > { %vm1006_vm4 = vcmp.eq.s32.totalorder %v2951_v58, %v982_v24  ;;  %1989 = vperm.xlu0 %2517, %v1962_v19   ;;  %v4799_v19 = vld [vmem:[#allocation104_spill] sm:$0xff] }
 0x275   : > { %vm3765_vm8 = vmor %vm926_vm5, %vm1006_vm4  ;;  %vm1283_vm4 = vcmp.eq.s32.totalorder %v2951_v58, %v4785_v45  ;;  %vm1276_vm12 = vcmp.eq.s32.totalorder %v2951_v58, %v4799_v19  ;;  %v4800_v24 = vld [vmem:[#allocation28_spill] sm:$0xff]  ;;  %v1873_v45 = vadd.s32 46, %v4798_v30  ;;  %v4819_v19 = vld [vmem:[#allocation66_spill] sm:$0xff] }
 0x276   : > { %v4782_v4 = vsel %vm3765_vm8, 4294967295, %v4781_v4  ;;  %vm525_vm13 = vcmp.eq.s32.totalorder %v2951_v58, %v4800_v24 }
 0x277   : > { %v3771_v36 = vpop.permute.xlu1 %1335 }
 0x278   : > { %1602 = vperm.xlu2 %2502, %v1577_v37   ;;  %v3775_v47 = vpop.permute.xlu2 %1426  ;;  %1599 = vperm.xlu1 %2501, %v1576_v21   ;;  %v4801_v37 = vld [vmem:[#allocation42_spill] sm:$0xff] }
 0x27a   : > { %2400 = vmatmul.msk.f32.gmra.mxu2 %vm1369_vm14, %v4671_v46  ;;  %vm1542_vm14 = vcmp.eq.s32.totalorder %v2951_v58, %v4792_v41 }
 0x27b   : > { %v991_v8 = vpop.permute.xlu0 %990 }
 0x27c   : > { %vm1009_vm0 = vcmp.eq.s32.totalorder %v2951_v58, %v991_v8  ;;  %2520 = vset.pattern.permute.xlu0 %v4762_v33  ;;  %v4803_v8 = vld [vmem:[#allocation12_spill] sm:$0xff] }
 0x27d   : > { %1899 = vperm.xlu0 %2520, %v1868_v43   ;;  %vm3787_vm2 = vmor %vm929_vm1, %vm1009_vm0  ;;  %vm522_vm1 = vcmp.eq.s32.totalorder %v2951_v58, %v4793_v60  ;;  %v4813_v60 = vld [vmem:[#allocation99_spill] sm:$0xff] }
 0x27e   : > { %v4784_v9 = vsel %vm3787_vm2, 4294967295, %v4783_v9 }
 0x27f   : > { %v1345_v57 = vpop.permute.xlu1 %1344 }
 0x280   : > { %vm1363_vm5 = vcmp.eq.s32.totalorder %v2951_v58, %v1345_v57  ;;  %1608 = vperm.xlu2 %2502, %v1579_v27   ;;  %v3796_v22 = vpop.permute.xlu2 %1435  ;;  %1605 = vperm.xlu1 %2501, %v1578_v49   ;;  %v4804_v27 = vld [vmem:[#allocation76_spill] sm:$0xff]  ;;  %v4805_v49 = vld [vmem:[#allocation63_spill] sm:$0xff] }
 0x281   : > { %vm3800_vm10 = vmor %vm1283_vm4, %vm1363_vm5  ;;  %vm618_vm4 = vcmp.eq.s32.totalorder %v2951_v58, %v4796_v25  ;;  %vm442_vm5 = vcmp.eq.s32.totalorder %v2951_v58, %v4797_v55  ;;  %v4814_v25 = vld [vmem:[#allocation60_spill] sm:$0xff]  ;;  %v4815_v55 = vld [vmem:[#allocation14_spill] sm:$0xff] }
 0x282   : > { %2401 = vmatmul.msk.f32.gmra.mxu2 %vm1370_vm11, %v4671_v46  ;;  %vm538_vm9 = vmor %vm442_vm5, %vm522_vm1  ;;  %vm445_vm1 = vcmp.eq.s32.totalorder %v2951_v58, %v4803_v8  ;;  %v4822_v8 = vld [vmem:[#allocation95_spill] sm:$0xff] }
 0x283   : > { %v3806_v1 = vpop.permute.xlu0 %1974  ;;  %vm634_vm11 = vmor %vm538_vm9, %vm618_vm4  ;;  %vm621_vm4 = vcmp.eq.s32.totalorder %v2951_v58, %v4804_v27  ;;  %vm810_vm9 = vcmp.eq.s32.totalorder %v2951_v58, %v4805_v49  ;;  %v1671_v27 = vadd.s32 34, %v4822_v8  ;;  %v1670_v49 = vadd.s32 34, %v3413_v32  ;;  %v4843_v8 = vld [vmem:[#allocation7_spill] sm:$0xff] }
 0x284   : > { %vm541_vm2 = vmor %vm445_vm1, %vm525_vm13  ;;  %vm717_vm13 = vcmp.eq.s32.totalorder %v2951_v58, %v4809_v6  ;;  %vm1277_vm1 = vcmp.eq.s32.totalorder %v2951_v58, %v4813_v60  ;;  %v4831_v6 = vmov 0  ;;  %v1673_v60 = vadd.s32 34, %v3374_v62 }
 0x285   : > { %2523 = vset.pattern.permute.xlu0 %v4790_v50  ;;  %v4839_v62 = vmov 0 }
 0x286   : > { %1809 = vperm.xlu0 %2523, %v1774_v38   ;;  %v1588_v38 = vadd.s32 24, %v4806_v20  ;;  %v4867_v20 = vld [vmem:[#allocation9_spill] sm:$0xff] }
 0x288   : > { %1617 = vperm.xlu2 %2502, %v1582_v35   ;;  %v3818_v53 = vpop.permute.xlu2 %1444  ;;  %1614 = vperm.xlu1 %2501, %v1581_v63   ;;  %v1418_v12 = vpop.permute.xlu1 %1417  ;;  %v1587_v35 = vadd.s32 24, %v3687_v52  ;;  %v4807_v63 = vmov 0 }
 0x289   : > { %vm1462_vm0 = vcmp.eq.s32.totalorder %v2951_v58, %v1418_v12  ;;  %v4810_v12 = vld [vmem:[#allocation30_spill] sm:$0xff] }
 0x28a   : > { %vm3825_vm3 = vmor %vm1462_vm0, %vm1542_vm14  ;;  %2402 = vmatmul.msk.f32.gmra.mxu2 %vm1371_vm15, %v4671_v46  ;;  %vm714_vm14 = vcmp.eq.s32.totalorder %v2951_v58, %v4801_v37  ;;  %vm1356_vm15 = vcmp.eq.s32.totalorder %v2951_v58, %v4802_v34  ;;  %v1779_v37 = vadd.s32 40, %v3687_v52  ;;  %v4820_v34 = vmov 0 }
 0x28b   : > { %vm730_vm0 = vmor %vm634_vm11, %vm714_vm14 }
 0x28c   : > { %v3835_v51 = vpop.permute.xlu0 %858  ;;  %vm1372_vm5 = vmor %vm1276_vm12, %vm1356_vm15  ;;  %vm1357_vm12 = vcmp.eq.s32.totalorder %v2951_v58, %v3740_v3 }
 0x28d   : > { %vm826_vm8 = vmor %vm730_vm0, %vm810_vm9  ;;  %vm528_vm0 = vcmp.eq.s32.totalorder %v2951_v58, %v4810_v12  ;;  %vm448_vm9 = vcmp.eq.s32.totalorder %v2951_v58, %v4815_v55  ;;  %v4833_v12 = vld [vmem:[#allocation69_spill] sm:$0xff] }
 0x28e   : > { %2526 = vset.pattern.permute.xlu0 %v4744_v7  ;;  %vm637_vm11 = vmor %vm541_vm2, %vm621_vm4 }
 0x28f   : > { %2004 = vperm.xlu0 %2526, %v1967_v13   ;;  %vm3874_vm2 = vmor %vm637_vm11, %vm717_vm13  ;;  %vm813_vm13 = vcmp.eq.s32.totalorder %v2951_v58, %v4819_v19  ;;  %v4838_v19 = vld [vmem:[#allocation65_spill] sm:$0xff] }
 0x290   : > { %1626 = vperm.xlu2 %2502, %v1585_v40   ;;  %v3846_v21 = vpop.permute.xlu2 %1453  ;;  %1623 = vperm.xlu1 %2501, %v1584_v15   ;;  %v3848_v43 = vpop.permute.xlu1 %1423  ;;  %vm1373_vm4 = vmor %vm1277_vm1, %vm1357_vm12  ;;  %v4816_v40 = vld [vmem:[#allocation78_spill] sm:$0xff]  ;;  %v4817_v15 = vmov 0 }
 0x291   : > { %vm624_vm11 = vcmp.eq.s32.totalorder %v2951_v58, %v4816_v40  ;;  %vm544_vm12 = vmor %vm448_vm9, %vm528_vm0  ;;  %v4837_v40 = vld [vmem:[#allocation46_spill] sm:$0xff] }
 0x292   : > { %2403 = vmatmul.msk.f32.gmra.mxu2 %vm1372_vm5, %v4671_v46  ;;  %vm829_vm1 = vmor %vm3874_vm2, %vm813_vm13 }
 0x293   : > { %vm640_vm7 = vmor %vm544_vm12, %vm624_vm11 }
 0x294   : > { %v874_v57 = vpop.permute.xlu0 %873 }
 0x295   : > { %vm906_vm14 = vcmp.eq.s32.totalorder %v2951_v58, %v874_v57  ;;  %v4823_v57 = vld [vmem:[#allocation47_spill] sm:$0xff] }
 0x296   : > { %vm3865_vm15 = vmor %vm826_vm8, %vm906_vm14  ;;  %vm1547_vm8 = vcmp.eq.s32.totalorder %v2951_v58, %v4814_v25  ;;  %vm720_vm0 = vcmp.eq.s32.totalorder %v2951_v58, %v4823_v57  ;;  %v4836_v25 = vld [vmem:[#allocation22_spill] sm:$0xff]  ;;  %v1676_v57 = vadd.s32 34, %v3523_v42 }
 0x297   : > { %v4808_v63 = vsel %vm3865_vm15, 4294967295, %v4807_v63  ;;  %2529 = vset.pattern.permute.xlu0 %v4762_v33  ;;  %v4850_v42 = vld [vmem:[#allocation38_spill] sm:$0xff] }
 0x298   : > { %1914 = vperm.xlu0 %2529, %v1873_v45   ;;  %1635 = vperm.xlu2 %2502, %v1588_v38   ;;  %v1433_v3 = vpop.permute.xlu1 %1432  ;;  %v4824_v45 = vld [vmem:[#allocation6_spill] sm:$0xff] }
 0x299   : > { %1632 = vperm.xlu1 %2501, %v1587_v35   ;;  %vm1467_vm5 = vcmp.eq.s32.totalorder %v2951_v58, %v1433_v3  ;;  %v3883_v13 = vpop.permute.xlu2 %1494  ;;  %vm1278_vm2 = vcmp.eq.s32.totalorder %v2951_v58, %v4824_v45  ;;  %v4828_v38 = vld [vmem:[#allocation62_spill] sm:$0xff]  ;;  %v4829_v35 = vmov 0  ;;  %v1672_v3 = vadd.s32 34, %v3361_v10  ;;  %v4841_v10 = vld [vmem:[#allocation13_spill] sm:$0xff] }
 0x29a   : > { %vm3889_vm14 = vmor %vm1467_vm5, %vm1547_vm8  ;;  %2404 = vmatmul.msk.f32.gmra.mxu2 %vm1373_vm4, %v4671_v46  ;;  %vm1358_vm8 = vcmp.eq.s32.totalorder %v2951_v58, %v3636_v59  ;;  %v4827_v59 = vmov 5   ;;  %v1675_v45 = vadd.s32 34, %v3437_v56  ;;  %v4851_v56 = vmov 0 }
 0x29b   : > { %v4818_v15 = vsel %vm3889_vm14, 4294967295, %v4817_v15  ;;  %vm3915_vm4 = vmor %vm640_vm7, %vm720_vm0  ;;  %vm1464_vm7 = vcmp.eq.s32.totalorder %v2951_v58, %v3848_v43  ;;  %v4834_v43 = vmov 0 }
 0x29c   : > { %v883_v24 = vpop.permute.xlu0 %882  ;;  %vm1374_vm9 = vmor %vm1278_vm2, %vm1358_vm8  ;;  %vm816_vm8 = vcmp.eq.s32.totalorder %v2951_v58, %v4833_v12  ;;  %v4853_v12 = vld [vmem:[#allocation45_spill] sm:$0xff] }
 0x29d   : > { %vm909_vm15 = vcmp.eq.s32.totalorder %v2951_v58, %v883_v24  ;;  %vm832_vm0 = vmor %vm3915_vm4, %vm816_vm8  ;;  %vm516_vm4 = vcmp.eq.s32.totalorder %v2951_v58, %v4837_v40  ;;  %v4842_v24 = vld [vmem:[#allocation23_spill] sm:$0xff]  ;;  %v4857_v40 = vld [vmem:[#allocation64_spill] sm:$0xff] }
 0x29e   : > { %vm3905_vm5 = vmor %vm829_vm1, %vm909_vm15  ;;  %vm1550_vm15 = vcmp.eq.s32.totalorder %v2951_v58, %v4828_v38 }
 0x29f   : > { %v4821_v34 = vsel %vm3905_vm5, 4294967295, %v4820_v34 }
 0x2a0   : > { %2532 = vset.pattern.permute.xlu0 %v4790_v50  ;;  %2505 = vset.pattern.permute.xlu2 %v4827_v59  ;;  %v1442_v52 = vpop.permute.xlu1 %1441 }
 0x2a1   : > { %2504 = vset.pattern.permute.xlu1 %v4827_v59  ;;  %vm1470_vm11 = vcmp.eq.s32.totalorder %v2951_v58, %v1442_v52  ;;  %1824 = vperm.xlu0 %2532, %v1779_v37   ;;  %v1504_v32 = vpop.permute.xlu2 %1503  ;;  %v4848_v52 = vld [vmem:[#allocation100_spill] sm:$0xff] }
 0x2a2   : > { %vm3927_vm13 = vmor %vm1470_vm11, %vm1550_vm15  ;;  %1692 = vperm.xlu2 %2505, %v1671_v27   ;;  %vm1544_vm12 = vcmp.eq.s32.totalorder %v2951_v58, %v1504_v32  ;;  %1689 = vperm.xlu1 %2504, %v1670_v49   ;;  %vm1279_vm15 = vcmp.eq.s32.totalorder %v2951_v58, %v3606_v26  ;;  %v4844_v27 = vld [vmem:[#allocation71_spill] sm:$0xff]  ;;  %v4849_v32 = vld [vmem:[#allocation68_spill] sm:$0xff] }
 0x2a3   : > { %v4830_v35 = vsel %vm3927_vm13, 4294967295, %v4829_v35  ;;  %vm3932_vm1 = vmor %vm1464_vm7, %vm1544_vm12  ;;  %2405 = vmatmul.msk.f32.gmra.mxu2 %vm1374_vm9, %v4671_v46  ;;  %vm1359_vm9 = vcmp.eq.s32.totalorder %v2951_v58, %v4836_v25  ;;  %vm1553_vm7 = vcmp.eq.s32.totalorder %v2951_v58, %v4838_v19  ;;  %v4845_v49 = vld [vmem:[#allocation27_spill] sm:$0xff]  ;;  %vm709_vm13 = vcmp.eq.s32.totalorder %v2951_v58, %v4850_v42  ;;  %v4872_v42 = vld [vmem:[#allocation48_spill] sm:$0xff] }
 0x2a4   : > { %v4832_v6 = vsel %vm3932_vm1, 4294967295, %v4831_v6  ;;  %v892_v41 = vpop.permute.xlu0 %891  ;;  %vm1375_vm8 = vmor %vm1279_vm15, %vm1359_vm9  ;;  %vm437_vm15 = vcmp.eq.s32.totalorder %v2951_v58, %v4843_v8  ;;  %vm613_vm9 = vcmp.eq.s32.totalorder %v2951_v58, %v4844_v27  ;;  %vm1360_vm1 = vcmp.eq.s32.totalorder %v2951_v58, %v3771_v36  ;;  %v4858_v19 = vld [vmem:[#allocation87_spill] sm:$0xff]  ;;  %v4864_v27 = vld [vmem:[#allocation25_spill] sm:$0xff] }
 0x2a5   : > { %vm912_vm2 = vcmp.eq.s32.totalorder %v2951_v58, %v892_v41  ;;  %v4854_v41 = vld [vmem:[#allocation59_spill] sm:$0xff]  ;;  %v1679_v25 = vadd.s32 34, %v3545_v18  ;;  %v4862_v8 = vmov 0 }
 0x2a6   : > { %vm3944_vm11 = vmor %vm832_vm0, %vm912_vm2  ;;  %vm436_vm2 = vcmp.eq.s32.totalorder %v2951_v58, %v4841_v10  ;;  %v4859_v10 = vld [vmem:[#allocation8_spill] sm:$0xff] }
 0x2a7   : > { %v4835_v43 = vsel %vm3944_vm11, 4294967295, %v4834_v43  ;;  %vm517_vm11 = vcmp.eq.s32.totalorder %v2951_v58, %v4842_v24  ;;  %vm532_vm5 = vmor %vm436_vm2, %vm516_vm4  ;;  %vm1280_vm2 = vcmp.eq.s32.totalorder %v2951_v58, %v4848_v52  ;;  %v4861_v24 = vld [vmem:[#allocation18_spill] sm:$0xff] }
 0x2a8   : > { %v1451_v55 = vpop.permute.xlu1 %1450  ;;  %v4868_v52 = vld [vmem:[#allocation34_spill] sm:$0xff] }
 0x2a9   : > { %vm1473_vm12 = vcmp.eq.s32.totalorder %v2951_v58, %v1451_v55  ;;  %v3957_v26 = vpop.permute.xlu2 %1509  ;;  %2535 = vset.pattern.permute.xlu0 %v4762_v33  ;;  %v1678_v55 = vadd.s32 34, %v4789_v61 }
 0x2aa   : > { %vm3960_vm0 = vmor %vm1473_vm12, %vm1553_vm7  ;;  %1698 = vperm.xlu2 %2505, %v1673_v60   ;;  %1695 = vperm.xlu1 %2504, %v1672_v3   ;;  %vm612_vm7 = vcmp.eq.s32.totalorder %v2951_v58, %v4845_v49  ;;  %v1682_v49 = vadd.s32 34, %v3569_v29  ;;  %v4877_v3 = vld [vmem:[#allocation91_spill] sm:$0xff] }
 0x2ab   : > { %v4840_v62 = vsel %vm3960_vm0, 4294967295, %v4839_v62  ;;  %2406 = vmatmul.msk.f32.gmra.mxu2 %vm1375_vm8, %v4671_v46  ;;  %vm533_vm12 = vmor %vm437_vm15, %vm517_vm11  ;;  %vm1556_vm0 = vcmp.eq.s32.totalorder %v2951_v58, %v4849_v32 }
 0x2ac   : > { %v3969_v37 = vpop.permute.xlu0 %1884  ;;  %vm3981_vm4 = vmor %vm532_vm5, %vm612_vm7  ;;  %vm708_vm7 = vcmp.eq.s32.totalorder %v2951_v58, %v4853_v12  ;;  %v4873_v12 = vld [vmem:[#allocation53_spill] sm:$0xff] }
 0x2ad   : > { %vm629_vm8 = vmor %vm533_vm12, %vm613_vm9 }
 0x2ae   : > { %vm1376_vm11 = vmor %vm1280_vm2, %vm1360_vm1  ;;  %vm805_vm1 = vcmp.eq.s32.totalorder %v2951_v58, %v4854_v41  ;;  %v4874_v41 = vld [vmem:[#allocation75_spill] sm:$0xff] }
 0x2af   : > { %vm725_vm9 = vmor %vm629_vm8, %vm709_vm13  ;;  %vm900_vm13 = vcmp.eq.s32.totalorder %v2951_v58, %v4857_v40  ;;  %vm1361_vm8 = vcmp.eq.s32.totalorder %v2951_v58, %v3668_v39  ;;  %v1765_v40 = vadd.s32 40, %v3721_v2 }
 0x2b0   : > { %v1460_v38 = vpop.permute.xlu1 %1459  ;;  %vm724_vm12 = vmor %vm3981_vm4, %vm708_vm7  ;;  %vm996_vm4 = vcmp.eq.s32.totalorder %v2951_v58, %v4858_v19  ;;  %vm1281_vm7 = vcmp.eq.s32.totalorder %v2951_v58, %v4859_v10  ;;  %v1076_v10 = vpop.f32.mrf.mxu0 }
 0x2b1   : > { %vm1476_vm15 = vcmp.eq.s32.totalorder %v2951_v58, %v1460_v38  ;;  %v3990_v36 = vpop.permute.xlu2 %1518  ;;  %vm4005_vm2 = vmor %vm725_vm9, %vm805_vm1  ;;  %v4869_v38 = vld [vmem:[#allocation24_spill] sm:$0xff] }
 0x2b2   : > { %vm3994_vm5 = vmor %vm1476_vm15, %vm1556_vm0  ;;  %1707 = vperm.xlu2 %2505, %v1676_v57   ;;  %1704 = vperm.xlu1 %2504, %v1675_v45   ;;  %vm901_vm15 = vcmp.eq.s32.totalorder %v2951_v58, %v3835_v51  ;;  %v4860_v51 = vld [vmem:[#allocation80_spill] sm:$0xff]  ;;  %v1681_v57 = vadd.s32 34, %v4798_v30  ;;  %v4866_v45 = vld [vmem:[#allocation15_spill] sm:$0xff] }
 0x2b3   : > { %v4852_v56 = vsel %vm3994_vm5, 4294967295, %v4851_v56  ;;  %2407 = vmatmul.msk.f32.gmra.mxu2 %vm1376_vm11, %v4671_v46  ;;  %vm1377_vm5 = vmor %vm1281_vm7, %vm1361_vm8  ;;  %vm518_vm8 = vcmp.eq.s32.totalorder %v2951_v58, %v4861_v24  ;;  %vm439_vm7 = vcmp.eq.s32.totalorder %v2951_v58, %v4867_v20  ;;  %v4885_v24 = vmov 0  ;;  %v4892_v20 = vld [vmem:[#allocation10_spill] sm:$0xff] }
 0x2b5   : > { %v760_v60 = vpop.permute.xlu0 %759 }
 0x2b6   : > { %vm804_vm0 = vcmp.eq.s32.totalorder %v2951_v58, %v760_v60  ;;  %v2567_v60 = vld [vmem:[%s2726_s25 + $0x90] sm:$0xff] }
 0x2b7   : > { %vm820_vm11 = vmor %vm724_vm12, %vm804_vm0  ;;  %vm1463_vm12 = vcmp.eq.s32.totalorder %v2951_v58, %v3746_v48  ;;  %v4865_v48 = vld [vmem:[#allocation79_spill] sm:$0xff] }
 0x2b8   : > { %vm916_vm9 = vmor %vm820_vm11, %vm900_vm13  ;;  %vm1639_vm13 = vcmp.eq.s32.totalorder %v2951_v58, %v4860_v51  ;;  %v4883_v51 = vld [vmem:[#allocation67_spill] sm:$0xff] }
 0x2b9   : > { %v4022_v18 = vpop.permute.xlu2 %1527  ;;  %v1501_v61 = vpop.permute.xlu1 %1500  ;;  %vm1012_vm1 = vmor %vm916_vm9, %vm996_vm4  ;;  %vm519_vm9 = vcmp.eq.s32.totalorder %v2951_v58, %v4864_v27  ;;  %v4887_v27 = vld [vmem:[#allocation81_spill] sm:$0xff] }
 0x2ba   : > { %1716 = vperm.xlu2 %2505, %v1679_v25   ;;  %1713 = vperm.xlu1 %2504, %v1678_v55   ;;  %vm1543_vm6 = vcmp.eq.s32.totalorder %v2951_v58, %v1501_v61  ;;  %v2333_v39 = vsel %vm1012_vm1, 1.0, %v2653_v11  ;;  %vm917_vm0 = vmor %vm4005_vm2, %vm901_vm15  ;;  %vm997_vm2 = vcmp.eq.s32.totalorder %v2951_v58, %v4865_v48  ;;  %v4878_v25 = vld [vmem:[#allocation29_spill] sm:$0xff]  ;;  %v4879_v55 = vld [vmem:[#allocation40_spill] sm:$0xff] }
 0x2bb   : > { %2408 = vmatmul.msk.f32.gmra.mxu2 %vm1377_vm5, %v4671_v46  ;;  %1143 = vmatmul.f32.gmra.mxu1 %v2333_v39  ;;  %vm1559_vm11 = vmor %vm1463_vm12, %vm1543_vm6  ;;  %vm438_vm6 = vcmp.eq.s32.totalorder %v2951_v58, %v4866_v45  ;;  %vm1282_vm5 = vcmp.eq.s32.totalorder %v2951_v58, %v3615_v31  ;;  %vm614_vm12 = vcmp.eq.s32.totalorder %v2951_v58, %v4868_v52  ;;  %v4882_v61 = vld [vmem:[#allocation61_spill] sm:$0xff]  ;;  %v4891_v45 = vld [vmem:[#allocation16_spill] sm:$0xff]  ;;  %v4919_v52 = vmov 0 }
 0x2bc   : > { %vm4035_vm4 = vmor %vm1559_vm11, %vm1639_vm13  ;;  %vm1362_vm13 = vcmp.eq.s32.totalorder %v2951_v58, %v4869_v38  ;;  %vm711_vm14 = vcmp.eq.s32.totalorder %v2951_v58, %v4879_v55 }
 0x2bd   : > { %v4863_v8 = vsel %vm4035_vm4, 4294967295, %v4862_v8  ;;  %vm1013_vm15 = vmor %vm917_vm0, %vm997_vm2  ;;  %vm710_vm0 = vcmp.eq.s32.totalorder %v2951_v58, %v4872_v42  ;;  %vm902_vm4 = vcmp.eq.s32.totalorder %v2951_v58, %v4874_v41  ;;  %v775_v42 = vpop.permute.xlu0 %774  ;;  %v4901_v41 = vld [vmem:[#allocation50_spill] sm:$0xff] }
 0x2be   : > { %vm534_vm1 = vmor %vm438_vm6, %vm518_vm8  ;;  %v2334_v31 = vsel %vm1013_vm15, 1.0, %v2653_v11  ;;  %vm998_vm15 = vcmp.eq.s32.totalorder %v2951_v58, %v4877_v3  ;;  %v1958_v3 = vadd.s32 48, %v2566_v5 }
 0x2bf   : > { %vm4055_vm11 = vmor %vm439_vm7, %vm519_vm9  ;;  %vm806_vm9 = vcmp.eq.s32.totalorder %v2951_v58, %v4873_v12  ;;  %vm1465_vm7 = vcmp.eq.s32.totalorder %v2951_v58, %v3775_v47  ;;  %v1861_v47 = vadd.s32 46, %v3721_v2 }
 0x2c0   : > { %vm1378_vm2 = vmor %vm1282_vm5, %vm1362_vm13 }
 0x2c1   : > { %v4059_v30 = vpop.permute.xlu2 %1536  ;;  %v1507_v32 = vpop.permute.xlu1 %1506  ;;  %vm630_vm6 = vmor %vm534_vm1, %vm614_vm12  ;;  %vm615_vm1 = vcmp.eq.s32.totalorder %v2951_v58, %v4878_v25 }
 0x2c2   : > { %1725 = vperm.xlu2 %2505, %v1682_v49   ;;  %1722 = vperm.xlu1 %2504, %v1681_v57   ;;  %vm1545_vm8 = vcmp.eq.s32.totalorder %v2951_v58, %v1507_v32  ;;  %vm726_vm13 = vmor %vm630_vm6, %vm710_vm0  ;;  %vm1468_vm6 = vcmp.eq.s32.totalorder %v2951_v58, %v3796_v22  ;;  %v4884_v22 = vld [vmem:[#allocation82_spill] sm:$0xff]  ;;  %v4890_v49 = vld [vmem:[#allocation49_spill] sm:$0xff]  ;;  %v1766_v57 = vadd.s32 40, %v2566_v5 }
 0x2c3   : > { %2409 = vmatmul.msk.f32.gmra.mxu2 %vm1378_vm2, %v4671_v46  ;;  %1146 = vmatmul.f32.gmra.mxu1 %v2334_v31  ;;  %vm4072_vm5 = vmor %vm1465_vm7, %vm1545_vm8  ;;  %v4895_v32 = vld [vmem:[#allocation84_spill] sm:$0xff]  ;;  %v4898_v31 = vld [vmem:[#allocation31_spill] sm:$0xff] }
 0x2c4   : > { %vm822_vm12 = vmor %vm726_vm13, %vm806_vm9  ;;  %vm903_vm13 = vcmp.eq.s32.totalorder %v2951_v58, %v4883_v51  ;;  %v4912_v51 = vld [vmem:[#allocation93_spill] sm:$0xff] }
 0x2c5   : > { %vm918_vm2 = vmor %vm822_vm12, %vm902_vm4  ;;  %vm807_vm4 = vcmp.eq.s32.totalorder %v2951_v58, %v4882_v61  ;;  %vm999_vm12 = vcmp.eq.s32.totalorder %v2951_v58, %v4887_v27  ;;  %v1959_v27 = vadd.s32 48, %v2567_v60 }
 0x2c6   : > { %vm1014_vm8 = vmor %vm918_vm2, %vm998_vm15  ;;  %vm1644_vm15 = vcmp.eq.s32.totalorder %v2951_v58, %v4884_v22 }
 0x2c7   : > { %vm631_vm7 = vmor %vm4055_vm11, %vm615_vm1  ;;  %v2335_v39 = vsel %vm1014_vm8, 1.0, %v2653_v11  ;;  %vm521_vm8 = vcmp.eq.s32.totalorder %v2951_v58, %v4890_v49  ;;  %v4913_v49 = vld [vmem:[#allocation35_spill] sm:$0xff] }
 0x2c8   : > { %vm4086_vm0 = vmor %vm631_vm7, %vm711_vm14  ;;  %vm1364_vm7 = vcmp.eq.s32.totalorder %v2951_v58, %v3702_v54 }
 0x2c9   : > { %v1516_v19 = vpop.permute.xlu1 %1515 }
 0x2ca   : > { %2508 = vset.pattern.permute.xlu2 %v4762_v33  ;;  %2507 = vset.pattern.permute.xlu1 %v4790_v50  ;;  %vm1548_vm9 = vcmp.eq.s32.totalorder %v2951_v58, %v1516_v19  ;;  %v1594_v2 = vpop.permute.xlu2 %1593 }
 0x2cb   : > { %vm1564_vm11 = vmor %vm1468_vm6, %vm1548_vm9  ;;  %1878 = vperm.xlu2 %2508, %v1861_v47   ;;  %vm1638_vm14 = vcmp.eq.s32.totalorder %v2951_v58, %v1594_v2  ;;  %1782 = vperm.xlu1 %2507, %v1765_v40   ;;  %vm441_vm6 = vcmp.eq.s32.totalorder %v2951_v58, %v4891_v45  ;;  %v4904_v40 = vld [vmem:[#allocation88_spill] sm:$0xff]  ;;  %v4909_v2 = vld [vmem:[#allocation70_spill] sm:$0xff] }
 0x2cc   : > { %vm4105_vm1 = vmor %vm3825_vm3, %vm1638_vm14  ;;  %2410 = vmatmul.msk.f32.gmra.mxu2 %vm3800_vm10, %v4671_v46  ;;  %1149 = vmatmul.f32.gmra.mxu1 %v2335_v39  ;;  %v4917_v45 = vld [vmem:[#allocation51_spill] sm:$0xff] }
 0x2cd   : > { %v4886_v24 = vsel %vm4105_vm1, 4294967295, %v4885_v24  ;;  %vm4114_vm2 = vmor %vm1564_vm11, %vm1644_vm15  ;;  %vm1284_vm11 = vcmp.eq.s32.totalorder %v2951_v58, %v4892_v20  ;;  %v4918_v20 = vld [vmem:[#allocation101_spill] sm:$0xff] }
 0x2ce   : > { %vm823_vm3 = vmor %vm4086_vm0, %vm807_vm4  ;;  %vm1471_vm4 = vcmp.eq.s32.totalorder %v2951_v58, %v3818_v53 }
 0x2cf   : > { %vm919_vm10 = vmor %vm823_vm3, %vm903_vm13 }
 0x2d0   : > { %vm1015_vm9 = vmor %vm919_vm10, %vm999_vm12 }
 0x2d1   : > { %vm4129_vm14 = vmor %vm441_vm6, %vm521_vm8  ;;  %v1525_v38 = vpop.permute.xlu1 %1524  ;;  %v2336_v29 = vsel %vm1015_vm9, 1.0, %v2653_v11  ;;  %vm1647_vm8 = vcmp.eq.s32.totalorder %v2951_v58, %v4895_v32  ;;  %vm713_vm6 = vcmp.eq.s32.totalorder %v2951_v58, %v4901_v41  ;;  %vm809_vm9 = vcmp.eq.s32.totalorder %v2951_v58, %v775_v42  ;;  %v4924_v32 = vld [vmem:[#allocation32_spill] sm:$0xff] }
 0x2d2   : > { %vm1380_vm0 = vmor %vm1284_vm11, %vm1364_vm7  ;;  %vm1551_vm15 = vcmp.eq.s32.totalorder %v2951_v58, %v1525_v38  ;;  %v1603_v54 = vpop.permute.xlu2 %1602  ;;  %vm617_vm7 = vcmp.eq.s32.totalorder %v2951_v58, %v4898_v31  ;;  %v4922_v38 = vld [vmem:[#allocation83_spill] sm:$0xff] }
 0x2d3   : > { %vm1567_vm13 = vmor %vm1471_vm4, %vm1551_vm15  ;;  %1881 = vperm.xlu2 %2508, %v1862_v16   ;;  %vm1641_vm12 = vcmp.eq.s32.totalorder %v2951_v58, %v1603_v54  ;;  %1785 = vperm.xlu1 %2507, %v1766_v57   ;;  %vm1002_vm1 = vcmp.eq.s32.totalorder %v2951_v58, %v4922_v38  ;;  %v784_v54 = vpop.permute.xlu0 %783  ;;  %v2570_v38 = vld [vmem:[%s2726_s25 + $0xb0] sm:$0xff] }
 0x2d4   : > { %vm4142_vm3 = vmor %vm4072_vm5, %vm1641_vm12  ;;  %2411 = vmatmul.msk.f32.gmra.mxu2 %vm1380_vm0, %v4671_v46  ;;  %1152 = vmatmul.f32.gmra.mxu1 %v2336_v29  ;;  %v1767_v46 = vadd.s32 40, %v2567_v60  ;;  %vm1474_vm0 = vcmp.eq.s32.totalorder %v2951_v58, %v3846_v21  ;;  %vm1650_vm12 = vcmp.eq.s32.totalorder %v2951_v58, %v4904_v40  ;;  %v4906_v21 = vmov 0  ;;  %v4925_v60 = vld [vmem:[#allocation52_spill] sm:$0xff] }
 0x2d5   : > { %vm4149_vm10 = vmor %vm1567_vm13, %vm1647_vm8  ;;  %vm4905_vm8 = vnez %v4818_v15 }
 0x2d6   : > { %vm633_vm5 = vmor %vm4129_vm14, %vm617_vm7 }
 0x2d7   : > { %vm729_vm11 = vmor %vm633_vm5, %vm713_vm6  ;;  %vm4908_vm6 = vnez %v4776_v17  ;;  %vm905_vm5 = vcmp.eq.s32.totalorder %v2951_v58, %v4909_v2  ;;  %v2568_v17 = vld [vmem:[%s2726_s25 + $0x98] sm:$0xff]  ;;  %v4938_v2 = vld [vmem:[#allocation103_spill] sm:$0xff] }
 0x2d8   : > { %vm4162_vm4 = vmor %vm729_vm11, %vm809_vm9  ;;  %v2337_v19 = vsel %vm4908_vm6, 1.0, %v2653_v11  ;;  %v1768_v22 = vadd.s32 40, %v2568_v17  ;;  %vm4914_vm6 = vnez %v4830_v35  ;;  %v4921_v35 = vld [vmem:[#allocation17_spill] sm:$0xff]  ;;  %v1960_v29 = vadd.s32 48, %v2568_v17 }
 0x2d9   : > { %v1534_v25 = vpop.permute.xlu1 %1533  ;;  %vm921_vm11 = vmor %vm4162_vm4, %vm905_vm5  ;;  %v1864_v41 = vadd.s32 46, %v2568_v17  ;;  %v1770_v17 = vadd.s32 40, %v3749_v28 }
 0x2da   : > { %vm1554_vm15 = vcmp.eq.s32.totalorder %v2951_v58, %v1534_v25  ;;  %v1609_v47 = vpop.permute.xlu2 %1608  ;;  %v2569_v25 = vld [vmem:[%s2726_s25 + $0xa0] sm:$0xff] }
 0x2db   : > { %vm1570_vm14 = vmor %vm1474_vm0, %vm1554_vm15  ;;  %2511 = vset.pattern.permute.xlu2 %v4790_v50  ;;  %vm1643_vm13 = vcmp.eq.s32.totalorder %v2951_v58, %v1609_v47  ;;  %2510 = vset.pattern.permute.xlu1 %v4744_v7  ;;  %vm1001_vm0 = vcmp.eq.s32.totalorder %v2951_v58, %v4912_v51  ;;  %vm1541_vm15 = vcmp.eq.s32.totalorder %v2951_v58, %v3883_v13  ;;  %v4915_v13 = vmov 0  ;;  %v4933_v47 = vld [vmem:[#allocation72_spill] sm:$0xff] }
 0x2dc   : > { %vm4176_vm7 = vmor %vm4905_vm8, %vm1643_vm13  ;;  %1788 = vperm.xlu2 %2511, %v1767_v46   ;;  %1977 = vperm.xlu1 %2510, %v1958_v3   ;;  %vm1461_vm13 = vcmp.eq.s32.totalorder %v2951_v58, %v4913_v49  ;;  %v4930_v3 = vmov 0  ;;  %v1961_v55 = vadd.s32 48, %v2569_v25  ;;  %v1866_v51 = vadd.s32 46, %v3749_v28  ;;  %v4947_v28 = vld [vmem:[#allocation19_spill] sm:$0xff] }
 0x2dd   : > { %v4907_v21 = vsel %vm4176_vm7, 4294967295, %v4906_v21  ;;  %1155 = vmatmul.f32.gmra.mxu1 %v2337_v19  ;;  %v1141_v61 = vpop.f32.mrf.mxu1  ;;  %vm4185_vm9 = vmor %vm1570_vm14, %vm1650_vm12  ;;  %v1865_v19 = vadd.s32 46, %v2569_v25 }
 0x2de   : > { %v1142_v15 = vadd.f32 %v1141_v61, %v1076_v10  ;;  %vm1017_vm14 = vmor %vm921_vm11, %vm1001_vm0  ;;  %vm524_vm11 = vcmp.eq.s32.totalorder %v2951_v58, %v4917_v45  ;;  %vm1733_vm0 = vcmp.eq.s32.totalorder %v2951_v58, %v4918_v20  ;;  %v4939_v61 = vmov 0  ;;  %v4951_v45 = vld [vmem:[#allocation41_spill] sm:$0xff]  ;;  %v2572_v20 = vld [vmem:[%s2726_s25 + $0xc8] sm:$0xff] }
 0x2df   : > { %vm1557_vm4 = vmor %vm1461_vm13, %vm1541_vm15  ;;  %v2338_v57 = vsel %vm1017_vm14, 1.0, %v2653_v11  ;;  %vm4923_vm14 = vnez %v4808_v63  ;;  %v4927_v63 = vmov 0 }
 0x2e0   : > { %1189 = vst [vmem:[%s4195_s16] sm:$0xff] %v1142_v15 }
 0x2e2   : > { %v1618_v5 = vpop.permute.xlu2 %1617  ;;  %v1591_v16 = vpop.permute.xlu1 %1590 }
 0x2e3   : > { %vm1646_vm12 = vcmp.eq.s32.totalorder %v2951_v58, %v1618_v5  ;;  %vm1637_vm8 = vcmp.eq.s32.totalorder %v2951_v58, %v1591_v16  ;;  %v4945_v5 = vmov 0  ;;  %v4948_v16 = vld [vmem:[#allocation86_spill] sm:$0xff] }
 0x2e4   : > { %vm4205_vm5 = vmor %vm4914_vm6, %vm1646_vm12  ;;  %1791 = vperm.xlu2 %2511, %v1768_v22   ;;  %1980 = vperm.xlu1 %2510, %v1959_v27   ;;  %vm444_vm12 = vcmp.eq.s32.totalorder %v2951_v58, %v4921_v35  ;;  %v4943_v22 = vld [vmem:[#allocation54_spill] sm:$0xff]  ;;  %v4944_v27 = vld [vmem:[#allocation105_spill] sm:$0xff] }
 0x2e5   : > { %v4916_v13 = vsel %vm4205_vm5, 4294967295, %v4915_v13  ;;  %vm1653_vm15 = vmor %vm1557_vm4, %vm1637_vm8  ;;  %1158 = vmatmul.f32.gmra.mxu1 %v2338_v57  ;;  %vm620_vm4 = vcmp.eq.s32.totalorder %v2951_v58, %v4924_v32  ;;  %v4949_v57 = vld [vmem:[#allocation33_spill] sm:$0xff] }
 0x2e6   : > { %vm4214_vm13 = vmor %vm1653_vm15, %vm1733_vm0  ;;  %vm716_vm15 = vcmp.eq.s32.totalorder %v2951_v58, %v4925_v60  ;;  %v4960_v60 = vld [vmem:[#allocation74_spill] sm:$0xff] }
 0x2e7   : > { %v4920_v52 = vsel %vm4214_vm13, 4294967295, %v4919_v52  ;;  %vm540_vm6 = vmor %vm444_vm12, %vm524_vm11  ;;  %vm4926_vm12 = vnez %v4840_v62  ;;  %v4932_v62 = vld [vmem:[#allocation37_spill] sm:$0xff] }
 0x2e8   : > { %vm1018_vm5 = vmor %vm4923_vm14, %vm1002_vm1  ;;  %vm812_vm1 = vcmp.eq.s32.totalorder %v2951_v58, %v784_v54  ;;  %v1867_v54 = vadd.s32 46, %v2570_v38 }
 0x2e9   : > { %vm636_vm8 = vmor %vm540_vm6, %vm620_vm4  ;;  %v2339_v46 = vsel %vm1018_vm5, 1.0, %v2653_v11  ;;  %vm4929_vm6 = vnez %v4832_v6  ;;  %vm1546_vm4 = vcmp.eq.s32.totalorder %v2951_v58, %v3957_v26  ;;  %vm908_vm5 = vcmp.eq.s32.totalorder %v2951_v58, %v4933_v47 }
 0x2ea   : > { %v1627_v42 = vpop.permute.xlu2 %1626  ;;  %v1600_v31 = vpop.permute.xlu1 %1599  ;;  %v4935_v26 = vmov 0 }
 0x2eb   : > { %vm1649_vm0 = vcmp.eq.s32.totalorder %v2951_v58, %v1627_v42  ;;  %vm1640_vm11 = vcmp.eq.s32.totalorder %v2951_v58, %v1600_v31  ;;  %v4954_v42 = vld [vmem:[#allocation55_spill] sm:$0xff]  ;;  %v4955_v31 = vmov 0 }
 0x2ec   : > { %vm4232_vm13 = vmor %vm4926_vm12, %vm1649_vm0  ;;  %2514 = vset.pattern.permute.xlu2 %v4744_v7  ;;  %2513 = vset.pattern.permute.xlu1 %v4762_v33 }
 0x2ed   : > { %v4928_v63 = vsel %vm4232_vm13, 4294967295, %v4927_v63  ;;  %vm4242_vm14 = vmor %vm4929_vm6, %vm1640_vm11  ;;  %1161 = vmatmul.f32.gmra.mxu1 %v2339_v46  ;;  %1983 = vperm.xlu2 %2514, %v1960_v29   ;;  %vm1466_vm13 = vcmp.eq.s32.totalorder %v2951_v58, %v4932_v62  ;;  %v793_v29 = vpop.permute.xlu0 %792  ;;  %v2571_v46 = vld [vmem:[%s2726_s25 + $0xb8] sm:$0xff] }
 0x2ee   : > { %v4931_v3 = vsel %vm4242_vm14, 4294967295, %v4930_v3  ;;  %1887 = vperm.xlu1 %2513, %v1864_v41   ;;  %vm732_vm0 = vmor %vm636_vm8, %vm716_vm15  ;;  %vm4934_vm8 = vnez %v4852_v56  ;;  %v4941_v56 = vld [vmem:[#allocation94_spill] sm:$0xff]  ;;  %v4959_v41 = vld [vmem:[#allocation43_spill] sm:$0xff]  ;;  %v1772_v62 = vadd.s32 40, %v2571_v46 }
 0x2ef   : > { %vm828_vm12 = vmor %vm732_vm0, %vm812_vm1  ;;  %vm4937_vm1 = vnez %v4778_v14  ;;  %v4942_v14 = vld [vmem:[#allocation39_spill] sm:$0xff] }
 0x2f0   : > { %vm1562_vm11 = vmor %vm1466_vm13, %vm1546_vm4  ;;  %v2340_v10 = vsel %vm4937_vm1, 1.0, %v2653_v11  ;;  %vm1738_vm13 = vcmp.eq.s32.totalorder %v2951_v58, %v4938_v2  ;;  %vm527_vm1 = vcmp.eq.s32.totalorder %v2951_v58, %v4943_v22 }
 0x2f1   : > { %vm924_vm14 = vmor %vm828_vm12, %vm908_vm5  ;;  %vm1004_vm12 = vcmp.eq.s32.totalorder %v2951_v58, %v4941_v56  ;;  %vm1549_vm5 = vcmp.eq.s32.totalorder %v2951_v58, %v3990_v36  ;;  %v4969_v56 = vld [vmem:[#allocation56_spill] sm:$0xff] }
 0x2f2   : > { %v1636_v6 = vpop.permute.xlu2 %1635  ;;  %v1606_v40 = vpop.permute.xlu1 %1605 }
 0x2f3   : > { %vm1652_vm6 = vcmp.eq.s32.totalorder %v2951_v58, %v1636_v6  ;;  %vm1642_vm7 = vcmp.eq.s32.totalorder %v2951_v58, %v1606_v40  ;;  %v4966_v6 = vld [vmem:[#allocation96_spill] sm:$0xff] }
 0x2f4   : > { %vm4257_vm15 = vmor %vm4934_vm8, %vm1652_vm6  ;;  %vm1469_vm8 = vcmp.eq.s32.totalorder %v2951_v58, %v4942_v14  ;;  %v4970_v14 = vld [vmem:[#allocation90_spill] sm:$0xff] }
 0x2f5   : > { %v4936_v26 = vsel %vm4257_vm15, 4294967295, %v4935_v26  ;;  %vm1658_vm4 = vmor %vm1562_vm11, %vm1642_vm7  ;;  %1164 = vmatmul.f32.gmra.mxu1 %v2340_v10  ;;  %1986 = vperm.xlu2 %2514, %v1961_v55   ;;  %v1963_v55 = vadd.s32 48, %v2570_v38  ;;  %v1964_v10 = vadd.s32 48, %v2571_v46  ;;  %v802_v12 = vpop.permute.xlu0 %801 }
 0x2f6   : > { %1890 = vperm.xlu1 %2513, %v1865_v19   ;;  %vm4266_vm0 = vmor %vm1658_vm4, %vm1738_vm13  ;;  %vm1741_vm13 = vcmp.eq.s32.totalorder %v2951_v58, %v4944_v27 }
 0x2f7   : > { %v4940_v61 = vsel %vm4266_vm0, 4294967295, %v4939_v61  ;;  %vm1020_vm6 = vmor %vm924_vm14, %vm1004_vm12  ;;  %vm447_vm12 = vcmp.eq.s32.totalorder %v2951_v58, %v4947_v28  ;;  %v4974_v28 = vld [vmem:[#allocation57_spill] sm:$0xff] }
 0x2f8   : > { %vm1565_vm7 = vmor %vm1469_vm8, %vm1549_vm5  ;;  %v2341_v49 = vsel %vm1020_vm6, 1.0, %v2653_v11  ;;  %vm1005_vm8 = vcmp.eq.s32.totalorder %v2951_v58, %v4948_v16  ;;  %vm1552_vm6 = vcmp.eq.s32.totalorder %v2951_v58, %v4022_v18  ;;  %v1771_v18 = vadd.s32 40, %v2570_v38 }
 0x2f9   : > { %vm543_vm5 = vmor %vm447_vm12, %vm527_vm1  ;;  %v4975_v16 = vmov 0 }
 0x2fa   : > { %v1615_v15 = vpop.permute.xlu1 %1614 }
 0x2fb   : > { %vm1645_vm11 = vcmp.eq.s32.totalorder %v2951_v58, %v1615_v15  ;;  %v4971_v15 = vld [vmem:[#allocation21_spill] sm:$0xff] }
 0x2fc   : > { %vm1661_vm4 = vmor %vm1565_vm7, %vm1645_vm11  ;;  %v4283_v36 = vpop.permute.xlu2 %1692  ;;  %vm623_vm7 = vcmp.eq.s32.totalorder %v2951_v58, %v4949_v57  ;;  %vm4950_vm11 = vnez %v4821_v34  ;;  %v1079_v57 = vpop.f32.mrf.mxu0 }
 0x2fd   : > { %1167 = vmatmul.f32.gmra.mxu1 %v2341_v49  ;;  %2516 = vset.pattern.permute.xlu2 %v4762_v33  ;;  %vm4287_vm14 = vmor %vm1661_vm4, %vm1741_vm13  ;;  %vm1472_vm4 = vcmp.eq.s32.totalorder %v2951_v58, %v4951_v45  ;;  %v1965_v49 = vadd.s32 48, %v3810_v0 }
 0x2fe   : > { %v4946_v5 = vsel %vm4287_vm14, 4294967295, %v4945_v5  ;;  %2515 = vset.pattern.permute.xlu1 %v4790_v50  ;;  %1893 = vperm.xlu2 %2516, %v1866_v51   ;;  %vm1021_vm13 = vmor %vm4950_vm11, %vm1005_vm8  ;;  %vm1744_vm14 = vcmp.eq.s32.totalorder %v2951_v58, %v3611_v23  ;;  %v4973_v51 = vld [vmem:[#allocation36_spill] sm:$0xff] }
 0x2ff   : > { %1797 = vperm.xlu1 %2515, %v1770_v17   ;;  %vm4304_vm15 = vmor %vm543_vm5, %vm623_vm7  ;;  %v2342_v32 = vsel %vm1021_vm13, 1.0, %v2653_v11  ;;  %vm719_vm5 = vcmp.eq.s32.totalorder %v2951_v58, %v4954_v42  ;;  %vm1555_vm13 = vcmp.eq.s32.totalorder %v2951_v58, %v4059_v30 }
 0x300   : > { %vm1568_vm1 = vmor %vm1472_vm4, %vm1552_vm6  ;;  %vm815_vm6 = vcmp.eq.s32.totalorder %v2951_v58, %v793_v29 }
 0x301   : > { %vm735_vm4 = vmor %vm4304_vm15, %vm719_vm5 }
 0x302   : > { %v1624_v35 = vpop.permute.xlu1 %1623 }
 0x303   : > { %vm1648_vm12 = vcmp.eq.s32.totalorder %v2951_v58, %v1624_v35  ;;  %v1966_v35 = vadd.s32 48, %v2572_v20 }
 0x304   : > { %vm1664_vm0 = vmor %vm1568_vm1, %vm1648_vm12  ;;  %v1699_v34 = vpop.permute.xlu2 %1698  ;;  %vm911_vm1 = vcmp.eq.s32.totalorder %v2951_v58, %v4960_v60 }
 0x305   : > { %vm1737_vm8 = vcmp.eq.s32.totalorder %v2951_v58, %v1699_v34  ;;  %1170 = vmatmul.f32.gmra.mxu1 %v2342_v32  ;;  %vm4316_vm7 = vmor %vm1664_vm0, %vm1744_vm14  ;;  %vm1475_vm14 = vcmp.eq.s32.totalorder %v2951_v58, %v4959_v41  ;;  %v4985_v34 = vld [vmem:[#allocation98_spill] sm:$0xff] }
 0x306   : > { %v4956_v31 = vsel %vm4316_vm7, 4294967295, %v4955_v31  ;;  %vm4323_vm11 = vmor %vm4142_vm3, %vm1737_vm8  ;;  %1896 = vperm.xlu2 %2516, %v1867_v54   ;;  %vm4961_vm8 = vnez %v4782_v4  ;;  %v4964_v4 = vmov 0  ;;  %v1870_v54 = vadd.s32 46, %v2572_v20 }
 0x307   : > { %1800 = vperm.xlu1 %2515, %v1771_v18   ;;  %vm831_vm0 = vmor %vm735_vm4, %vm815_vm6  ;;  %v2343_v30 = vsel %vm4961_vm8, 1.0, %v2653_v11  ;;  %vm1747_vm4 = vcmp.eq.s32.totalorder %v2951_v58, %v3624_v44  ;;  %v1773_v44 = vadd.s32 40, %v3810_v0  ;;  %vm1008_vm8 = vcmp.eq.s32.totalorder %v2951_v58, %v4970_v14  ;;  %v1082_v18 = vpop.f32.mrf.mxu0 }
 0x308   : > { %vm1571_vm12 = vmor %vm1475_vm14, %vm1555_vm13 }
 0x309   : > { %vm927_vm15 = vmor %vm831_vm0, %vm911_vm1  ;;  %vm1007_vm0 = vcmp.eq.s32.totalorder %v2951_v58, %v4966_v6 }
 0x30a   : > { %vm1023_vm1 = vmor %vm927_vm15, %vm1007_vm0  ;;  %vm450_vm15 = vcmp.eq.s32.totalorder %v2951_v58, %v4971_v15 }
 0x30b   : > { %v1633_v53 = vpop.permute.xlu1 %1632  ;;  %v2344_v40 = vsel %vm1023_vm1, 1.0, %v2653_v11 }
 0x30c   : > { %vm1651_vm3 = vcmp.eq.s32.totalorder %v2951_v58, %v1633_v53  ;;  %v1708_v25 = vpop.permute.xlu2 %1707 }
 0x30d   : > { %vm1667_vm5 = vmor %vm1571_vm12, %vm1651_vm3  ;;  %vm1740_vm6 = vcmp.eq.s32.totalorder %v2951_v58, %v1708_v25  ;;  %1173 = vmatmul.f32.gmra.mxu1 %v2343_v30  ;;  %vm530_vm3 = vcmp.eq.s32.totalorder %v2951_v58, %v4969_v56  ;;  %v4990_v30 = vmov 0 }
 0x30e   : > { %vm4345_vm13 = vmor %vm4114_vm2, %vm1740_vm6  ;;  %2519 = vset.pattern.permute.xlu2 %v4790_v50 }
 0x30f   : > { %2518 = vset.pattern.permute.xlu1 %v4744_v7  ;;  %1803 = vperm.xlu2 %2519, %v1772_v62   ;;  %vm4351_vm14 = vmor %vm1667_vm5, %vm1747_vm4  ;;  %vm4972_vm5 = vnez %v4835_v43  ;;  %v1869_v43 = vadd.s32 46, %v3810_v0  ;;  %v4980_v0 = vld [vmem:[#allocation77_spill] sm:$0xff]  ;;  %v1085_v46 = vpop.f32.mrf.mxu0 }
 0x310   : > { %v4965_v4 = vsel %vm4351_vm14, 4294967295, %v4964_v4  ;;  %1992 = vperm.xlu1 %2518, %v1963_v55   ;;  %vm1024_vm6 = vmor %vm4972_vm5, %vm1008_vm8  ;;  %vm4977_vm5 = vnez %v4931_v3  ;;  %vm1927_vm14 = vcmp.eq.s32.totalorder %v2951_v58, %v3969_v37 }
 0x311   : > { %vm546_vm4 = vmor %vm450_vm15, %vm530_vm3  ;;  %v2345_v22 = vsel %vm1024_vm6, 1.0, %v2653_v11  ;;  %vm722_vm3 = vcmp.eq.s32.totalorder %v2951_v58, %v4974_v28  ;;  %vm818_vm15 = vcmp.eq.s32.totalorder %v2951_v58, %v802_v12 }
 0x314   : > { %v1717_v48 = vpop.permute.xlu2 %1716  ;;  %v4359_v19 = vpop.permute.xlu1 %1689 }
 0x315   : > { %vm1743_vm2 = vcmp.eq.s32.totalorder %v2951_v58, %v1717_v48  ;;  %1176 = vmatmul.f32.gmra.mxu1 %v2344_v40 }
 0x316   : > { %vm4364_vm12 = vmor %vm4149_vm10, %vm1743_vm2  ;;  %vm626_vm10 = vcmp.eq.s32.totalorder %v2951_v58, %v4973_v51  ;;  %v4460_v51 = vld [vmem:[%s2726_s25 + $0xf8] sm:$0xff] }
 0x317   : > { %1806 = vperm.xlu2 %2519, %v1773_v44   ;;  %vm642_vm0 = vmor %vm546_vm4, %vm626_vm10  ;;  %vm914_vm10 = vcmp.eq.s32.totalorder %v2951_v58, %v4980_v0  ;;  %v1088_v48 = vpop.f32.mrf.mxu0 }
 0x318   : > { %1995 = vperm.xlu1 %2518, %v1964_v10   ;;  %vm738_vm4 = vmor %vm642_vm0, %vm722_vm3  ;;  %vm4982_vm0 = vnez %v4907_v21  ;;  %v2573_v21 = vld [vmem:[%s2726_s25 + $0xd0] sm:$0xff] }
 0x319   : > { %v1871_v41 = vadd.s32 46, %v2573_v21  ;;  %v1775_v53 = vadd.s32 40, %v2573_v21 }
 0x31c   : > { %v1726_v17 = vpop.permute.xlu2 %1725  ;;  %v1696_v27 = vpop.permute.xlu1 %1695 }
 0x31d   : > { %vm1746_vm1 = vcmp.eq.s32.totalorder %v2951_v58, %v1726_v17  ;;  %1179 = vmatmul.f32.gmra.mxu1 %v2345_v22  ;;  %vm1736_vm2 = vcmp.eq.s32.totalorder %v2951_v58, %v1696_v27  ;;  %v2577_v17 = vld [vmem:[%s2726_s25 + $0xe8] sm:$0xff] }
 0x31e   : > { %vm4387_vm8 = vmor %vm4185_vm9, %vm1746_vm1  ;;  %vm4981_vm1 = vnez %v4784_v9  ;;  %v1778_v22 = vadd.s32 40, %v2577_v17 }
 0x31f   : > { %v4976_v16 = vsel %vm4387_vm8, 4294967295, %v4975_v16  ;;  %vm4394_vm6 = vmor %vm4977_vm5, %vm1736_vm2  ;;  %2522 = vset.pattern.permute.xlu2 %v4744_v7  ;;  %v2346_v39 = vsel %vm4981_vm1, 1.0, %v2653_v11  ;;  %v1091_v15 = vpop.f32.mrf.mxu0 }
 0x320   : > { %2521 = vset.pattern.permute.xlu1 %v4762_v33  ;;  %1998 = vperm.xlu2 %2522, %v1965_v49   ;;  %vm834_vm9 = vmor %vm738_vm4, %vm818_vm15  ;;  %vm1010_vm15 = vcmp.eq.s32.totalorder %v2951_v58, %v4985_v34 }
 0x321   : > { %1902 = vperm.xlu1 %2521, %v1869_v43   ;;  %vm930_vm5 = vmor %vm834_vm9, %vm914_vm10  ;;  %vm4986_vm10 = vnez %v4916_v13  ;;  %v2574_v13 = vld [vmem:[%s2726_s25 + $0xd8] sm:$0xff] }
 0x322   : > { %vm1026_vm4 = vmor %vm930_vm5, %vm1010_vm15  ;;  %v1872_v25 = vadd.s32 46, %v2574_v13  ;;  %v1776_v6 = vadd.s32 40, %v2574_v13  ;;  %v1968_v37 = vadd.s32 48, %v2574_v13 }
 0x323   : > { %v2347_v9 = vsel %vm1026_vm4, 1.0, %v2653_v11  ;;  %vm4992_vm4 = vnez %v4863_v8  ;;  %v2575_v8 = vld [vmem:[%s2726_s25 + $0xe0] sm:$0xff] }
 0x324   : > { %v1705_v3 = vpop.permute.xlu1 %1704  ;;  %v1777_v10 = vadd.s32 40, %v2575_v8  ;;  %v1969_v49 = vadd.s32 48, %v2575_v8 }
 0x325   : > { %1182 = vmatmul.f32.gmra.mxu1 %v2346_v39  ;;  %vm1739_vm2 = vcmp.eq.s32.totalorder %v2951_v58, %v1705_v3  ;;  %v1879_v38 = vpop.permute.xlu2 %1878 }
 0x326   : > { %vm4409_vm3 = vmor %vm4982_vm0, %vm1739_vm2  ;;  %vm1735_vm2 = vcmp.eq.s32.totalorder %v2951_v58, %v4283_v36  ;;  %vm4989_vm0 = vnez %v4928_v63 }
 0x327   : > { %v1094_v0 = vpop.f32.mrf.mxu0 }
 0x328   : > { %2001 = vperm.xlu2 %2522, %v1966_v35  }
 0x329   : > { %1905 = vperm.xlu1 %2521, %v1870_v54   ;;  %v2578_v54 = vld [vmem:[%s2726_s25 + $0xf0] sm:$0xff]  ;;  %s2417_s25 = sshll.u32 %s2692_s13, 8 }
 0x32a   : > { %v1875_v34 = vadd.s32 46, %v2578_v54  ;;  %s2243_s22 = scalar_lea.hbm %s4631_s2, %s2417_s25 }
 0x32b   : > { %s2246_s24 = sshll.u32 %s2243_s22, 4  ;;  %s2247_s24 = int_to_ptr.hbm [resolvable:$true] %s2246_s24 }
 0x32c   : > { %v1714_v32 = vpop.permute.xlu1 %1713  ;;  %s2593_s27 = sshra.s32 %s2247_s24, 4  ;;  %s2594_s27 = int_to_ptr.hbm [resolvable:$true] %s2593_s27 }
 0x32d   : > { %1185 = vmatmul.f32.gmra.mxu1 %v2347_v9  ;;  %vm1742_vm9 = vcmp.eq.s32.totalorder %v2951_v58, %v1714_v32  ;;  %v4417_v42 = vpop.permute.xlu2 %1881  ;;  %s2595_s28 = scalar_lea.hbm %s2594_s27, 256  ;;  %p2600_p0 = scmp.lt.s32.totalorder %s2594_s27, %s4631_s2 }
 0x32e   : > { %vm4422_vm1 = vmor %vm4986_vm10, %vm1742_vm9  ;;  %p2596_p11 = scmp.ne.s32.totalorder %s2594_s27, %s2595_s28  ;;  %p2601_p1 = scmp.lt.s32.totalorder %s2599_s30, %s2595_s28 }
 0x32f   : > { %vm1751_vm9 = vmor %vm4992_vm4, %vm1735_vm2  ;;  %vm1925_vm2 = vcmp.eq.s32.totalorder %v2951_v58, %v1879_v38  ;;  %v1097_v9 = vpop.f32.mrf.mxu0 }
 0x330   : > { %2525 = vset.pattern.permute.xlu2 %v4762_v33  ;;  %p2597_p12 = pnand %p2596_p11, %p2709_p5  ;;  %p2602_p2 = por %p2601_p1, %p2600_p0 }
 0x331   : > { %2524 = vset.pattern.permute.xlu1 %v4790_v50  ;;  %1908 = vperm.xlu2 %2525, %v1871_v41  }
 0x332   : > { %1812 = vperm.xlu1 %2524, %v1775_v53   ;;  %v1780_v53 = vadd.s32 40, %v4460_v51  ;;  %p2598_p13 = pneg %p2597_p12 }
 0x334   : > { %v1723_v62 = vpop.permute.xlu1 %1722  ;;  %p2603_p3 = pnand %p2602_p2, %p2598_p13 }
 0x335   : > { %vm1745_vm5 = vcmp.eq.s32.totalorder %v2951_v58, %v1723_v62 }
 0x336   : > { %vm4434_vm15 = vmor %vm4989_vm0, %vm1745_vm5  ;;  %v1789_v55 = vpop.permute.xlu2 %1788  ;;  %vm4995_vm0 = vnez %v4920_v52 }
 0x337   : > { %v4991_v30 = vsel %vm4434_vm15, 4294967295, %v4990_v30  ;;  %vm1831_vm10 = vcmp.eq.s32.totalorder %v2951_v58, %v1789_v55  ;;  %v1100_v13 = vpop.f32.mrf.mxu0 }
 0x338   : > { %vm1847_vm8 = vmor %vm1751_vm9, %vm1831_vm10  ;;  %v1144_v36 = vpop.f32.mrf.mxu1  ;;  %vm1734_vm10 = vcmp.eq.s32.totalorder %v2951_v58, %v4359_v19  ;;  %v1970_v19 = vadd.s32 48, %v2577_v17 }
 0x339   : > { %1911 = vperm.xlu2 %2525, %v1872_v25   ;;  %v1145_v44 = vadd.f32 %v1144_v36, %v1079_v57  ;;  %vm4443_vm7 = vmor %vm1847_vm8, %vm1927_vm14  ;;  %vm2021_vm14 = vcmp.eq.s32.totalorder %v2951_v58, %v3806_v1  ;;  %v1876_v1 = vadd.s32 46, %v4460_v51  ;;  %v1795_v36 = vpop.permute.xlu0 %1794 }
 0x33a   : > { %1815 = vperm.xlu1 %2524, %v1776_v6  }
 0x33b   : > { %1190 = vst [vmem:[%s4195_s16 + $0x8] sm:$0xff] %v1145_v44  ;;  %1923 = vperm.xlu0 %2535, %v1876_v1  }
 0x33d   : > { %v1783_v40 = vpop.permute.xlu1 %1782 }
 0x33e   : > { %vm1829_vm5 = vcmp.eq.s32.totalorder %v2951_v58, %v1783_v40  ;;  %v1792_v27 = vpop.permute.xlu2 %1791 }
 0x33f   : > { %vm1845_vm4 = vmor %vm4995_vm0, %vm1829_vm5  ;;  %vm4996_vm5 = vnez %v4886_v24  ;;  %v1874_v24 = vadd.s32 46, %v2577_v17  ;;  %v1103_v63 = vpop.f32.mrf.mxu0 }
 0x340   : > { %v1147_v56 = vpop.f32.mrf.mxu1  ;;  %vm1941_vm8 = vmor %vm1845_vm4, %vm1925_vm2 }
 0x341   : > { %2528 = vset.pattern.permute.xlu2 %v4790_v50  ;;  %v1148_v14 = vadd.f32 %v1147_v56, %v1082_v18  ;;  %vm2037_vm9 = vmor %vm1941_vm8, %vm2021_vm14  ;;  %vm1926_vm14 = vcmp.eq.s32.totalorder %v2951_v58, %v4417_v42  ;;  %v1971_v18 = vadd.s32 48, %v2578_v54  ;;  %v1990_v8 = vpop.permute.xlu0 %1989 }
 0x342   : > { %2527 = vset.pattern.permute.xlu1 %v4744_v7  ;;  %1818 = vperm.xlu2 %2528, %v1777_v10   ;;  %v2380_v52 = vsel %vm2037_vm9, 1.0, %v2653_v11  ;;  %vm1750_vm0 = vmor %vm4996_vm5, %vm1734_vm10 }
 0x343   : > { %1191 = vst [vmem:[%s4195_s16 + $0x10] sm:$0xff] %v1148_v14  ;;  %2007 = vperm.xlu1 %2527, %v1968_v37   ;;  %2166 = vmatmul.f32.vlgmr.msra.gmra.mxu3 %v2380_v52 }
 0x344   : > { %2537 = vset.pattern.permute.xlu0 %v4744_v7 }
 0x345   : > { %v1786_v12 = vpop.permute.xlu1 %1785 }
 0x346   : > { %vm1830_vm2 = vcmp.eq.s32.totalorder %v2951_v58, %v1786_v12 }
 0x347   : > { %vm1846_vm4 = vmor %vm1750_vm0, %vm1830_vm2  ;;  %v1984_v39 = vpop.permute.xlu2 %1983 }
 0x348   : > { %vm1942_vm9 = vmor %vm1846_vm4, %vm1926_vm14  ;;  %vm2024_vm5 = vcmp.eq.s32.totalorder %v2951_v58, %v1984_v39 }
 0x349   : > { %v1150_v43 = vpop.f32.mrf.mxu1  ;;  %v1900_v29 = vpop.permute.xlu0 %1899 }
 0x34a   : > { %v1151_v28 = vadd.f32 %v1150_v43, %v1085_v46  ;;  %1821 = vperm.xlu2 %2528, %v1778_v22   ;;  %v1684_v46 = vadd.s32 34, %v4460_v51 }
 0x34b   : > { %2010 = vperm.xlu1 %2527, %v1969_v49  }
 0x34c   : > { %1192 = vst [vmem:[%s4195_s16 + $0x18] sm:$0xff] %v1151_v28 }
 0x34e   : > { %v1978_v57 = vpop.permute.xlu1 %1977 }
 0x34f   : > { %vm2022_vm8 = vcmp.eq.s32.totalorder %v2951_v58, %v1978_v57  ;;  %v1987_v32 = vpop.permute.xlu2 %1986 }
 0x350   : > { %vm2038_vm15 = vmor %vm1942_vm9, %vm2022_vm8 }
 0x351   : > { %v1153_v3 = vpop.f32.mrf.mxu1  ;;  %v2381_v20 = vsel %vm2038_vm15, 1.0, %v2653_v11  ;;  %vm1832_vm15 = vcmp.eq.s32.totalorder %v2951_v58, %v1792_v27 }
 0x352   : > { %v1154_v35 = vadd.f32 %v1153_v3, %v1088_v48  ;;  %2169 = vmatmul.f32.gmra.mxu3 %v2381_v20  ;;  %2531 = vset.pattern.permute.xlu2 %v4744_v7 }
 0x353   : > { %2530 = vset.pattern.permute.xlu1 %v4762_v33  ;;  %2013 = vperm.xlu2 %2531, %v1970_v19  }
 0x354   : > { %1193 = vst [vmem:[%s4195_s16 + $0x20] sm:$0xff] %v1154_v35  ;;  %1917 = vperm.xlu1 %2530, %v1874_v24  }
 0x356   : > { %v1981_v38 = vpop.permute.xlu1 %1980 }
 0x357   : > { %vm2023_vm10 = vcmp.eq.s32.totalorder %v2951_v58, %v1981_v38  ;;  %v1810_v38 = vpop.permute.xlu0 %1809 }
 0x358   : > { %vm2039_vm2 = vmor %vm4443_vm7, %vm2023_vm10  ;;  %v1894_v25 = vpop.permute.xlu2 %1893 }
 0x359   : > { %v2382_v42 = vsel %vm2039_vm2, 1.0, %v2653_v11  ;;  %vm1848_vm7 = vmor %vm4394_vm6, %vm1832_vm15  ;;  %vm1833_vm6 = vcmp.eq.s32.totalorder %v2951_v58, %v1795_v36  ;;  %vm2025_vm2 = vcmp.eq.s32.totalorder %v2951_v58, %v1987_v32 }
 0x35a   : > { %v1156_v21 = vpop.f32.mrf.mxu1  ;;  %2172 = vmatmul.f32.gmra.mxu3 %v2382_v42  ;;  %vm1849_vm8 = vmor %vm4323_vm11, %vm1833_vm6  ;;  %vm1930_vm11 = vcmp.eq.s32.totalorder %v2951_v58, %v1894_v25 }
 0x35b   : > { %v1157_v33 = vadd.f32 %v1156_v21, %v1091_v15  ;;  %2016 = vperm.xlu2 %2531, %v1971_v18  }
 0x35c   : > { %1920 = vperm.xlu1 %2530, %v1875_v34  }
 0x35d   : > { %1194 = vst [vmem:[%s4195_s16 + $0x28] sm:$0xff] %v1157_v33 }
 0x360   : > { %v1888_v41 = vpop.permute.xlu1 %1887  ;;  %v1897_v48 = vpop.permute.xlu2 %1896 }
 0x361   : > { %vm1928_vm0 = vcmp.eq.s32.totalorder %v2951_v58, %v1888_v41  ;;  %v2005_v41 = vpop.permute.xlu0 %2004 }
 0x362   : > { %vm1944_vm4 = vmor %vm1848_vm7, %vm1928_vm0  ;;  %v1159_v62 = vpop.f32.mrf.mxu1  ;;  %vm2026_vm7 = vcmp.eq.s32.totalorder %v2951_v58, %v1990_v8  ;;  %vm4997_vm0 = vnez %v4940_v61 }
 0x363   : > { %v1160_v55 = vadd.f32 %v1159_v62, %v1094_v0  ;;  %vm2040_vm14 = vmor %vm1944_vm4, %vm2024_vm5  ;;  %2534 = vset.pattern.permute.xlu2 %v4790_v50 }
 0x364   : > { %2533 = vset.pattern.permute.xlu1 %v4827_v59  ;;  %v2383_v6 = vsel %vm2040_vm14, 1.0, %v2653_v11  ;;  %1827 = vperm.xlu2 %2534, %v1780_v53   ;;  %v1972_v59 = vadd.s32 48, %v4460_v51 }
 0x365   : > { %1195 = vst [vmem:[%s4195_s16 + $0x30] sm:$0xff] %v1160_v55  ;;  %1731 = vperm.xlu1 %2533, %v1684_v46   ;;  %2175 = vmatmul.f32.gmra.mxu3 %v2383_v6 }
 0x368   : > { %v1891_v45 = vpop.permute.xlu1 %1890 }
 0x369   : > { %vm1929_vm9 = vcmp.eq.s32.totalorder %v2951_v58, %v1891_v45  ;;  %v1804_v56 = vpop.permute.xlu2 %1803  ;;  %v1915_v36 = vpop.permute.xlu0 %1914 }
 0x36a   : > { %vm1945_vm10 = vmor %vm1849_vm8, %vm1929_vm9  ;;  %v1162_v50 = vpop.f32.mrf.mxu1 }
 0x36b   : > { %v1163_v44 = vadd.f32 %v1162_v50, %v1097_v9  ;;  %vm2041_vm15 = vmor %vm1945_vm10, %vm2025_vm2  ;;  %vm1931_vm10 = vcmp.eq.s32.totalorder %v2951_v58, %v1897_v48 }
 0x36c   : > { %v2384_v40 = vsel %vm2041_vm15, 1.0, %v2653_v11 }
 0x36d   : > { %1196 = vst [vmem:[%s4195_s16 + $0x38] sm:$0xff] %v1163_v44  ;;  %2536 = vset.pattern.permute.xlu1 %v4744_v7  ;;  %2178 = vmatmul.f32.gmra.mxu3 %v2384_v40  ;;  %v1106_v7 = vpop.f32.mrf.mxu0 }
 0x36e   : > { %2019 = vperm.xlu1 %2536, %v1972_v59  }
 0x371   : > { %v1798_v23 = vpop.permute.xlu1 %1797  ;;  %v1807_v51 = vpop.permute.xlu2 %1806 }
 0x372   : > { %vm1834_vm5 = vcmp.eq.s32.totalorder %v2951_v58, %v1798_v23  ;;  %v1165_v10 = vpop.f32.mrf.mxu1  ;;  %v1825_v40 = vpop.permute.xlu0 %1824 }
 0x373   : > { %vm1850_vm4 = vmor %vm4997_vm0, %vm1834_vm5  ;;  %v1166_v37 = vadd.f32 %v1165_v10, %v1100_v13  ;;  %vm1836_vm5 = vcmp.eq.s32.totalorder %v2951_v58, %v1804_v56 }
 0x374   : > { %vm1946_vm14 = vmor %vm1850_vm4, %vm1930_vm11 }
 0x375   : > { %1197 = vst [vmem:[%s4195_s16 + $0x40] sm:$0xff] %v1166_v37  ;;  %vm2042_vm6 = vmor %vm1946_vm14, %vm2026_vm7  ;;  %v1109_v61 = vpop.f32.mrf.mxu0 }
 0x376   : > { %v2385_v14 = vsel %vm2042_vm6, 1.0, %v2653_v11  ;;  %vm1852_vm7 = vmor %vm4345_vm13, %vm1836_vm5  ;;  %vm1837_vm6 = vcmp.eq.s32.totalorder %v2951_v58, %v1807_v51  ;;  %vm4998_vm13 = vnez %v4946_v5 }
 0x377   : > { %2181 = vmatmul.f32.gmra.mxu3 %v2385_v14 }
 0x379   : > { %v1801_v52 = vpop.permute.xlu1 %1800 }
 0x37a   : > { %v1168_v15 = vpop.f32.mrf.mxu1  ;;  %vm1835_vm8 = vcmp.eq.s32.totalorder %v2951_v58, %v1801_v52  ;;  %v1999_v49 = vpop.permute.xlu2 %1998 }
 0x37b   : > { %v1169_v12 = vadd.f32 %v1168_v15, %v1103_v63  ;;  %vm1851_vm9 = vmor %vm4409_vm3, %vm1835_vm8  ;;  %vm1932_vm3 = vcmp.eq.s32.totalorder %v2951_v58, %v1900_v29  ;;  %vm2029_vm8 = vcmp.eq.s32.totalorder %v2951_v58, %v1999_v49  ;;  %v2102_v63 = vpop.f32.mrf.mxu2 }
 0x37c   : > { %vm1947_vm15 = vmor %vm1851_vm9, %vm1931_vm10 }
 0x37d   : > { %1198 = vst [vmem:[%s4195_s16 + $0x48] sm:$0xff] %v1169_v12  ;;  %vm1948_vm4 = vmor %vm1852_vm7, %vm1932_vm3  ;;  %v1112_v0 = vpop.f32.mrf.mxu0 }
 0x37e   : > { %vm1853_vm9 = vmor %vm4998_vm13, %vm1837_vm6  ;;  %vm2031_vm6 = vcmp.eq.s32.totalorder %v2951_v58, %v2005_v41 }
 0x382   : > { %v1171_v1 = vpop.f32.mrf.mxu1  ;;  %v1993_v17 = vpop.permute.xlu1 %1992 }
 0x383   : > { %v1172_v22 = vadd.f32 %v1171_v1, %v1106_v7  ;;  %vm2027_vm2 = vcmp.eq.s32.totalorder %v2951_v58, %v1993_v17  ;;  %v2002_v47 = vpop.permute.xlu2 %2001  ;;  %v2105_v37 = vpop.f32.mrf.mxu2 }
 0x384   : > { %vm2043_vm11 = vmor %vm1947_vm15, %vm2027_vm2 }
 0x385   : > { %1199 = vst [vmem:[%s4195_s16 + $0x50] sm:$0xff] %v1172_v22  ;;  %v2386_v27 = vsel %vm2043_vm11, 1.0, %v2653_v11  ;;  %v1115_v20 = vpop.f32.mrf.mxu0  ;;  %vm1838_vm11 = vcmp.eq.s32.totalorder %v2951_v58, %v1810_v38 }
 0x386   : > { %2184 = vmatmul.f32.gmra.mxu3 %v2386_v27  ;;  %vm1854_vm5 = vmor %vm4422_vm1, %vm1838_vm11 }
 0x38a   : > { %v1174_v43 = vpop.f32.mrf.mxu1  ;;  %v1996_v28 = vpop.permute.xlu1 %1995 }
 0x38b   : > { %v1175_v57 = vadd.f32 %v1174_v43, %v1109_v61  ;;  %vm2028_vm0 = vcmp.eq.s32.totalorder %v2951_v58, %v1996_v28  ;;  %v1909_v5 = vpop.permute.xlu2 %1908  ;;  %v2108_v15 = vpop.f32.mrf.mxu2 }
 0x38c   : > { %vm2044_vm14 = vmor %vm1948_vm4, %vm2028_vm0  ;;  %vm2030_vm0 = vcmp.eq.s32.totalorder %v2951_v58, %v2002_v47 }
 0x38d   : > { %1200 = vst [vmem:[%s4195_s16 + $0x58] sm:$0xff] %v1175_v57  ;;  %v2387_v39 = vsel %vm2044_vm14, 1.0, %v2653_v11  ;;  %v1118_v9 = vpop.f32.mrf.mxu0  ;;  %vm1935_vm14 = vcmp.eq.s32.totalorder %v2951_v58, %v1909_v5 }
 0x38e   : > { %2187 = vmatmul.f32.gmra.mxu3 %v2387_v39 }
 0x392   : > { %v1177_v19 = vpop.f32.mrf.mxu1 }
 0x393   : > { %v1178_v24 = vadd.f32 %v1177_v19, %v1112_v0  ;;  %v1903_v3 = vpop.permute.xlu1 %1902  ;;  %v1912_v60 = vpop.permute.xlu2 %1911 }
 0x394   : > { %vm1933_vm10 = vcmp.eq.s32.totalorder %v2951_v58, %v1903_v3  ;;  %vm1936_vm11 = vcmp.eq.s32.totalorder %v2951_v58, %v1912_v60  ;;  %v2111_v1 = vpop.f32.mrf.mxu2 }
 0x395   : > { %1201 = vst [vmem:[%s4195_s16 + $0x60] sm:$0xff] %v1178_v24  ;;  %vm1949_vm2 = vmor %vm1853_vm9, %vm1933_vm10  ;;  %v1121_v53 = vpop.f32.mrf.mxu0 }
 0x396   : > { %vm2045_vm15 = vmor %vm1949_vm2, %vm2029_vm8  ;;  %vm4999_vm2 = vnez %v4956_v31 }
 0x397   : > { %v2388_v35 = vsel %vm2045_vm15, 1.0, %v2653_v11 }
 0x398   : > { %2190 = vmatmul.f32.gmra.mxu3 %v2388_v35 }
 0x39a   : > { %v1180_v54 = vpop.f32.mrf.mxu1 }
 0x39b   : > { %v1181_v18 = vadd.f32 %v1180_v54, %v1115_v20  ;;  %v1906_v34 = vpop.permute.xlu1 %1905 }
 0x39c   : > { %vm1934_vm3 = vcmp.eq.s32.totalorder %v2951_v58, %v1906_v34  ;;  %v1819_v55 = vpop.permute.xlu2 %1818  ;;  %v2114_v27 = vpop.f32.mrf.mxu2 }
 0x39d   : > { %1202 = vst [vmem:[%s4195_s16 + $0x68] sm:$0xff] %v1181_v18  ;;  %vm1950_vm7 = vmor %vm1854_vm5, %vm1934_vm3 }
 0x39e   : > { %vm2046_vm4 = vmor %vm1950_vm7, %vm2030_vm0  ;;  %vm1841_vm7 = vcmp.eq.s32.totalorder %v2951_v58, %v1819_v55  ;;  %vm1937_vm0 = vcmp.eq.s32.totalorder %v2951_v58, %v1915_v36 }
 0x39f   : > { %v2389_v32 = vsel %vm2046_vm4, 1.0, %v2653_v11  ;;  %vm5000_vm4 = vnez %v4991_v30 }
 0x3a0   : > { %2193 = vmatmul.f32.gmra.mxu3 %v2389_v32 }
 0x3a2   : > { %v1183_v42 = vpop.f32.mrf.mxu1 }
 0x3a3   : > { %v1184_v21 = vadd.f32 %v1183_v42, %v1118_v9 }
 0x3a4   : > { %v1813_v33 = vpop.permute.xlu1 %1812  ;;  %v1822_v31 = vpop.permute.xlu2 %1821 }
 0x3a5   : > { %1203 = vst [vmem:[%s4195_s16 + $0x70] sm:$0xff] %v1184_v21  ;;  %vm1839_vm1 = vcmp.eq.s32.totalorder %v2951_v58, %v1813_v33  ;;  %v2117_v43 = vpop.f32.mrf.mxu2 }
 0x3a6   : > { %vm1855_vm8 = vmor %vm4364_vm12, %vm1839_vm1 }
 0x3a7   : > { %vm1951_vm13 = vmor %vm1855_vm8, %vm1935_vm14 }
 0x3a8   : > { %vm2047_vm9 = vmor %vm1951_vm13, %vm2031_vm6  ;;  %vm1842_vm13 = vcmp.eq.s32.totalorder %v2951_v58, %v1822_v31 }
 0x3a9   : > { %v2390_v62 = vsel %vm2047_vm9, 1.0, %v2653_v11  ;;  %vm1857_vm14 = vmor %vm5000_vm4, %vm1841_vm7 }
 0x3aa   : > { %v1186_v46 = vpop.f32.mrf.mxu1  ;;  %2196 = vmatmul.f32.gmra.mxu3 %v2390_v62  ;;  %vm1953_vm6 = vmor %vm1857_vm14, %vm1937_vm0 }
 0x3ab   : > { %v1187_v13 = vadd.f32 %v1186_v46, %v1121_v53 }
 0x3ac   : > { %v1816_v25 = vpop.permute.xlu1 %1815 }
 0x3ad   : > { %1204 = vst [vmem:[%s4195_s16 + $0x78] sm:$0xff] %v1187_v13  ;;  %vm1840_vm10 = vcmp.eq.s32.totalorder %v2951_v58, %v1816_v25  ;;  %v2014_v59 = vpop.permute.xlu2 %2013 }
 0x3ae   : > { %vm1856_vm15 = vmor %vm4999_vm2, %vm1840_vm10  ;;  %vm2034_vm9 = vcmp.eq.s32.totalorder %v2951_v58, %v2014_v59  ;;  %vm5001_vm10 = vnez %v4976_v16 }
 0x3af   : > { %vm1952_vm5 = vmor %vm1856_vm15, %vm1936_vm11 }
 0x3b0   : > { %vm1858_vm2 = vmor %vm5001_vm10, %vm1842_vm13 }
 0x3b5   : > { %v2008_v2 = vpop.permute.xlu1 %2007  ;;  %v2017_v8 = vpop.permute.xlu2 %2016 }
 0x3b6   : > { %vm2032_vm12 = vcmp.eq.s32.totalorder %v2951_v58, %v2008_v2  ;;  %vm2035_vm4 = vcmp.eq.s32.totalorder %v2951_v58, %v2017_v8 }
 0x3b7   : > { %vm2048_vm3 = vmor %vm1952_vm5, %vm2032_vm12  ;;  %vm1843_vm5 = vcmp.eq.s32.totalorder %v2951_v58, %v1825_v40 }
 0x3b8   : > { %v2391_v6 = vsel %vm2048_vm3, 1.0, %v2653_v11  ;;  %vm5002_vm3 = vnez %v4965_v4  ;;  %v1924_v4 = vpop.permute.xlu0 %1923 }
 0x3b9   : > { %2199 = vmatmul.f32.gmra.mxu3 %v2391_v6  ;;  %vm1859_vm7 = vmor %vm5002_vm3, %vm1843_vm5 }
 0x3bd   : > { %v2011_v45 = vpop.permute.xlu1 %2010 }
 0x3be   : > { %vm2033_vm1 = vcmp.eq.s32.totalorder %v2951_v58, %v2011_v45  ;;  %v1828_v52 = vpop.permute.xlu2 %1827 }
 0x3bf   : > { %vm2049_vm8 = vmor %vm1953_vm6, %vm2033_vm1 }
 0x3c0   : > { %v2392_v50 = vsel %vm2049_vm8, 1.0, %v2653_v11  ;;  %vm5003_vm8 = vnez %v4936_v26 }
 0x3c1   : > { %2202 = vmatmul.f32.gmra.mxu3 %v2392_v50 }
 0x3c6   : > { %v1918_v44 = vpop.permute.xlu1 %1917  ;;  %v2167_v30 = vpop.f32.mrf.mxu3 }
 0x3c7   : > { %vm1938_vm15 = vcmp.eq.s32.totalorder %v2951_v58, %v1918_v44  ;;  %v2168_v48 = vadd.f32 %v2167_v30, %v2102_v63 }
 0x3c8   : > { %vm1954_vm11 = vmor %vm1858_vm2, %vm1938_vm15  ;;  %vm1940_vm2 = vcmp.eq.s32.totalorder %v2951_v58, %v1924_v4 }
 0x3c9   : > { %vm2050_vm12 = vmor %vm1954_vm11, %vm2034_vm9  ;;  %2215 = vst [vmem:[%s4195_s16 + $0x80] sm:$0xff] %v2168_v48  ;;  %vm1844_vm9 = vcmp.eq.s32.totalorder %v2951_v58, %v1828_v52 }
 0x3ca   : > { %v2393_v23 = vsel %vm2050_vm12, 1.0, %v2653_v11 }
 0x3cb   : > { %2205 = vmatmul.f32.gmra.mxu3 %v2393_v23 }
 0x3ce   : > { %v1921_v10 = vpop.permute.xlu1 %1920 }
 0x3cf   : > { %vm1939_vm0 = vcmp.eq.s32.totalorder %v2951_v58, %v1921_v10 }
 0x3d0   : > { %vm1955_vm14 = vmor %vm1859_vm7, %vm1939_vm0 }
 0x3d1   : > { %vm2051_vm1 = vmor %vm1955_vm14, %vm2035_vm4 }
 0x3d2   : > { %v2394_v16 = vsel %vm2051_vm1, 1.0, %v2653_v11 }
 0x3d3   : > { %2208 = vmatmul.f32.gmra.mxu3 %v2394_v16 }
 0x3d5   : > { %v2170_v7 = vpop.f32.mrf.mxu3 }
 0x3d6   : > { %v2171_v56 = vadd.f32 %v2170_v7, %v2105_v37 }
 0x3d7   : > { %v1732_v14 = vpop.permute.xlu1 %1731 }
 0x3d8   : > { %2216 = vst [vmem:[%s4195_s16 + $0x88] sm:$0xff] %v2171_v56  ;;  %vm1748_vm6 = vcmp.eq.s32.totalorder %v2951_v58, %v1732_v14 }
 0x3d9   : > { %vm1764_vm13 = vmor %vm5003_vm8, %vm1748_vm6 }
 0x3da   : > { %vm1860_vm10 = vmor %vm1764_vm13, %vm1844_vm9 }
 0x3db   : > { %vm1956_vm15 = vmor %vm1860_vm10, %vm1940_vm2 }
 0x3dd   : > { %v2173_v12 = vpop.f32.mrf.mxu3 }
 0x3de   : > { %v2174_v61 = vadd.f32 %v2173_v12, %v2108_v15 }
 0x3e0   : > { %2217 = vst [vmem:[%s4195_s16 + $0x90] sm:$0xff] %v2174_v61  ;;  %v2020_v51 = vpop.permute.xlu1 %2019 }
 0x3e1   : > { %vm2036_vm11 = vcmp.eq.s32.totalorder %v2951_v58, %v2020_v51  ;;  %v2120_v58 = vpop.f32.mrf.mxu2 }
 0x3e2   : > { %vm2052_vm12 = vmor %vm1956_vm15, %vm2036_vm11 }
 0x3e3   : > { %v2395_v26 = vsel %vm2052_vm12, 1.0, %v2653_v11 }
 0x3e4   : > { %2211 = vmatmul.f32.gmra.mxu3 %v2395_v26 }
 0x3e8   : > { %v2176_v17 = vpop.f32.mrf.mxu3 }
 0x3e9   : > { %v2177_v22 = vadd.f32 %v2176_v17, %v2111_v1  ;;  %v2123_v39 = vpop.f32.mrf.mxu2 }
 0x3eb   : > { %2218 = vst [vmem:[%s4195_s16 + $0x98] sm:$0xff] %v2177_v22 }
 0x3f0   : > { %v2179_v29 = vpop.f32.mrf.mxu3 }
 0x3f1   : > { %v2180_v49 = vadd.f32 %v2179_v29, %v2114_v27  ;;  %v2126_v24 = vpop.f32.mrf.mxu2 }
 0x3f3   : > { %2219 = vst [vmem:[%s4195_s16 + $0xa0] sm:$0xff] %v2180_v49 }
 0x3f9   : > { %v2129_v35 = vpop.f32.mrf.mxu2 }
 0x3fa   : > { %v2182_v28 = vpop.f32.mrf.mxu3 }
 0x3fb   : > { %v2183_v57 = vadd.f32 %v2182_v28, %v2117_v43 }
 0x3fd   : > { %2220 = vst [vmem:[%s4195_s16 + $0xa8] sm:$0xff] %v2183_v57 }
 0x401   : > { %v2132_v18 = vpop.f32.mrf.mxu2 }
 0x409   : > { %v2185_v0 = vpop.f32.mrf.mxu3  ;;  %v2135_v9 = vpop.f32.mrf.mxu2 }
 0x40a   : > { %v2186_v11 = vadd.f32 %v2185_v0, %v2120_v58 }
 0x40c   : > { %2221 = vst [vmem:[%s4195_s16 + $0xb0] sm:$0xff] %v2186_v11 }
 0x411   : > { %v2188_v19 = vpop.f32.mrf.mxu3  ;;  %v2138_v21 = vpop.f32.mrf.mxu2 }
 0x412   : > { %v2189_v47 = vadd.f32 %v2188_v19, %v2123_v39 }
 0x414   : > { %2222 = vst [vmem:[%s4195_s16 + $0xb8] sm:$0xff] %v2189_v47 }
 0x419   : > { %v2141_v60 = vpop.f32.mrf.mxu2 }
 0x41b   : > { %v2191_v3 = vpop.f32.mrf.mxu3 }
 0x41c   : > { %v2192_v20 = vadd.f32 %v2191_v3, %v2126_v24 }
 0x41e   : > { %2223 = vst [vmem:[%s4195_s16 + $0xc0] sm:$0xff] %v2192_v20 }
 0x421   : > { %v2144_v62 = vpop.f32.mrf.mxu2 }
 0x423   : > { %v2194_v38 = vpop.f32.mrf.mxu3 }
 0x424   : > { %v2195_v54 = vadd.f32 %v2194_v38, %v2129_v35 }
 0x426   : > { %2224 = vst [vmem:[%s4195_s16 + $0xc8] sm:$0xff] %v2195_v54 }
 0x429   : > { %v2147_v55 = vpop.f32.mrf.mxu2 }
 0x42d   : > { %v2197_v34 = vpop.f32.mrf.mxu3 }
 0x42e   : > { %v2198_v5 = vadd.f32 %v2197_v34, %v2132_v18 }
 0x430   : > { %2225 = vst [vmem:[%s4195_s16 + $0xd0] sm:$0xff] %v2198_v5 }
 0x43c   : > { %v2200_v32 = vpop.f32.mrf.mxu3 }
 0x43d   : > { %v2201_v42 = vadd.f32 %v2200_v32, %v2135_v9 }
 0x43f   : > { %2226 = vst [vmem:[%s4195_s16 + $0xd8] sm:$0xff] %v2201_v42 }
 0x444   : > { %v2203_v33 = vpop.f32.mrf.mxu3 }
 0x445   : > { %v2204_v41 = vadd.f32 %v2203_v33, %v2138_v21 }
 0x447   : > { %2227 = vst [vmem:[%s4195_s16 + $0xe0] sm:$0xff] %v2204_v41 }
 0x44e   : > { %v2206_v53 = vpop.f32.mrf.mxu3 }
 0x44f   : > { %v2207_v46 = vadd.f32 %v2206_v53, %v2141_v60 }
 0x451   : > { %2228 = vst [vmem:[%s4195_s16 + $0xe8] sm:$0xff] %v2207_v46 }
 0x456   : > { %v2209_v13 = vpop.f32.mrf.mxu3 }
 0x457   : > { %v2210_v25 = vadd.f32 %v2209_v13, %v2144_v62 }
 0x459   : > { %2229 = vst [vmem:[%s4195_s16 + $0xf0] sm:$0xff] %v2210_v25 }
 0x467   : > { %v2212_v2 = vpop.f32.mrf.mxu3 }
 0x468   : > { %v2213_v6 = vadd.f32 %v2212_v2, %v2147_v55 }
 0x46a   : > { %2230 = vst [vmem:[%s4195_s16 + $0xf8] sm:$0xff] %v2213_v6 }
 0x46b   : > { %2606 = shalt.err (!%p2603_p3)
}
 0x46c   : > { %s2654_s5 = smov 128   ;;  %s2655_s6 = smov 8  }
 0x46d   : > { %2418 = dma.vmem_to_hbm [thread:$0]  (%p2709_p5), %s2245_s23, 4096, %s2247_s24, %s2232_s26, %s2654_s5, %s2654_s5, %s2655_s6  }
 0x46e PF: > { %p2424_p4 = scmp.ge.s32.totalorder %s2641_s12, 2  ;;  %s2261_s7 = sand.u32 1, %s2629_s9  }
 0x46f   : > { %s2262_s8 = scalar_lea.sflag [#allocation3], %s2261_s7 }
 0x470   : > { %p2421_p7 = pnand %p2424_p4, %p2713_p6 }
 0x472   : > { %p2422_p8 = pneg %p2421_p7 }
 0x474   : > { %2624 = dma.done.wait (%p2422_p8), %s2262_s8, 4096  }
 0x475   : > { %2626 = vsyncadd (%p2422_p8), %s2262_s8, 4294963200  ;;  %p12_p9 = scmp.ge.s32.totalorder %s2696_s15, 4   ;;  %s5004_s9 = smov %s2633_s10 }
 0x476   : > { %s5005_s10 = smov %s2637_s11  ;;  %s5006_s11 = smov %s2707_s18 }
 0x477   : > { %s5007_s12 = smov %s2696_s15  ;;  %14 = sbr.rel (!%p12_p9) target bundleno = 3 (0x3), region = 63 }
 0x47c   :  { %2268 = vsyncpa [#allocation3], 1 }
 0x47d   :  { %2270 = vsyncpa [#allocation3 + $0x1], 1 }

</bundles_post_ra>
